<compile_context>
chip_gen: v7x
topology: tpu7x:2x2x1
jax: 0.10.0
libtpu: 0.0.40
codegen_flags: <defaults>
</compile_context>

<pallas_src>
import math
import functools

import jax
import jax.numpy as jnp
from jax import lax
from jax.experimental import pallas as pl
from jax.experimental.pallas import tpu as pltpu


_NEG_INF = -1e30                          # large finite negative: no inf-inf -> NaN corner
_DEFAULT_VMEM_LIMIT = 48 * 1024 * 1024    # fits v5e/v6e (128 MiB VMEM) and v7x (64 MiB/TC)


def _pick_tile(n, target):
    """Largest power-of-two tile <= target dividing n (whole axis if none fits)."""
    if n <= target:
        return n
    t = target
    while t >= 8:
        if n % t == 0:
            return t
        t //= 2
    return n


def _resident_spec(block_shape, index_map, single_buffer):
    """BlockSpec for a weight/bias with a constant index_map (fetched once per kernel).

    With pipeline_mode=pl.Buffered(1) the resident block is single-buffered, halving its
    VMEM footprint (the difference between fitting and OOM at realistic C on v7x).  Falls
    back to the default double-buffered spec when this JAX has no pipeline_mode."""
    if single_buffer and hasattr(pl, "Buffered"):
        try:
            return pl.BlockSpec(block_shape, index_map, pipeline_mode=pl.Buffered(1))
        except Exception:
            pass
    return pl.BlockSpec(block_shape, index_map)


# --------------------------------------------------------------------------------------
# Kernel 1: fused QKV projection + head split (+ q pre-scaling)
# --------------------------------------------------------------------------------------
def _qkv_proj_kernel(x_ref, w_ref, b_ref, q_ref, k_ref, v_ref, *, n_head, scale):
    # x_ref: (1, tp, C)   w_ref: (C, 3C) compute dtype   b_ref: (1, 3C) f32
    # q_ref/k_ref/v_ref: (1, H, tp, hd) compute dtype
    x = x_ref[0]                                           # (tp, C)
    C = x.shape[-1]
    hd = C // n_head
    qkv = jnp.dot(x.astype(w_ref.dtype), w_ref[...],
                  preferred_element_type=jnp.float32)      # (tp, 3C) f32 accumulate
    qkv = qkv + b_ref[...]
    # Static head-split loop.  Column slices land at multiples of hd; for hd >= 128 these
    # stores are fully lane-dense.  The shuffle is paid once here (write side), keeping the
    # attention hot loop free of per-step relayouts.
    for h in range(n_head):
        q_ref[0, h] = (qkv[:, h * hd:(h + 1) * hd] * scale).astype(q_ref.dtype)
        k_ref[0, h] = qkv[:, C + h * hd:C + (h + 1) * hd].astype(k_ref.dtype)
        v_ref[0, h] = qkv[:, 2 * C + h * hd:2 * C + (h + 1) * hd].astype(v_ref.dtype)


# --------------------------------------------------------------------------------------
# Kernel 2: flash attention (all heads per step, causal-triangular grid) + fused c_proj
# --------------------------------------------------------------------------------------
def _flash_attn_proj_kernel(i_map, j_map, q_ref, k_ref, v_ref, w_ref, b_ref, o_ref,
                            m_ref, l_ref, acc_ref):
    # i_map/j_map: SMEM (n_tri,) int32 lookup tables (scalar prefetch)
    # q_ref/k_ref/v_ref: (1, H, tq, hd)   w_ref: (C, C)   b_ref: (1, C) f32
    # o_ref: (1, tq, C)   scratch: m/l (H, tq, 1) f32, acc (H, tq, hd) f32
    t = pl.program_id(1)
    i = i_map[t]                  # query block index
    j = j_map[t]                  # kv block index (j <= i by construction)

    @pl.when(j == 0)
    def _init():
        m_ref[...] = jnp.full_like(m_ref, _NEG_INF)
        l_ref[...] = jnp.zeros_like(l_ref)
        acc_ref[...] = jnp.zeros_like(acc_ref)

    q = q_ref[0]                                           # (H, tq, hd), pre-scaled
    k = k_ref[0]                                           # (H, tk, hd)
    v = v_ref[0]                                           # (H, tk, hd)
    H, tq, hd = q.shape
    tk = k.shape[1]

    # Batched scores for all heads at once (bf16 MXU operands, f32 accumulate).
    s = jnp.einsum("hqd,hkd->hqk", q, k,
                   preferred_element_type=jnp.float32)     # (H, tq, tk)

    # Causal mask: only the diagonal block (i == j) needs the triangular mask; blocks with
    # j < i are fully below the diagonal (all-keep).  Every row keeps >= 1 column, so l > 0.
    row = lax.broadcasted_iota(jnp.int32, (tq, tk), 0)
    col = lax.broadcasted_iota(jnp.int32, (tq, tk), 1)
    keep = jnp.logical_or(i > j, row >= col)
    s = jnp.where(keep, s, _NEG_INF)

    # Online softmax update (all statistics in f32).
    m_prev = m_ref[...]
    m_new = jnp.maximum(m_prev, jnp.max(s, axis=-1, keepdims=True))
    alpha = jnp.exp(m_prev - m_new)
    p = jnp.exp(s - m_new)
    l_ref[...] = alpha * l_ref[...] + jnp.sum(p, axis=-1, keepdims=True)
    acc_ref[...] = alpha * acc_ref[...] + jnp.einsum(
        "hqk,hkd->hqd", p.astype(v.dtype), v, preferred_element_type=jnp.float32)
    m_ref[...] = m_new

    @pl.when(j == i)              # last KV block of this query row-tile
    def _finish():
        C = w_ref.shape[-1]
        inv_l = pl.reciprocal(l_ref[...], approx=False)    # exact; once per row-tile
        # Fused output projection: concat_h(y_h) @ W == sum_h y_h @ W[h*hd:(h+1)*hd, :].
        out = jnp.zeros((tq, C), dtype=jnp.float32)
        for h in range(H):
            yh = (acc_ref[h] * inv_l[h]).astype(w_ref.dtype)          # (tq, hd)
            out = out + jnp.dot(yh, w_ref[h * hd:(h + 1) * hd, :],
                                preferred_element_type=jnp.float32)
        o_ref[0] = (out + b_ref[...]).astype(o_ref.dtype)  # lane-dense (tq, C) store


# --------------------------------------------------------------------------------------
# Wrapper
# --------------------------------------------------------------------------------------
def causal_self_attention(x, w_qkv, b_qkv, w_proj, b_proj, n_head, *,
                          block_q=256, block_proj=256,
                          compute_dtype=jnp.bfloat16,
                          vmem_limit_bytes=_DEFAULT_VMEM_LIMIT,
                          single_buffer_weights=True):
    """Forward pass of CausalSelfAttention.  Weights are (in_features, out_features)."""
    B, T, C = x.shape
    assert C % n_head == 0
    hd = C // n_head
    cd = jnp.dtype(compute_dtype) if compute_dtype is not None else jnp.dtype(x.dtype)
    scale = 1.0 / math.sqrt(hd)

    tq = _pick_tile(T, block_q)       # query tile == kv tile (square causal blocks)
    tp = _pick_tile(T, block_proj)    # row tile for the projection kernel
    assert T % tq == 0 and T % tp == 0
    nq = T // tq
    esize = jnp.dtype(cd).itemsize

    w_qkv_c = w_qkv.astype(cd)
    w_proj_c = w_proj.astype(cd)
    b_qkv2 = b_qkv.reshape(1, 3 * C).astype(jnp.float32)
    b_proj2 = b_proj.reshape(1, C).astype(jnp.float32)

    # ---- Kernel 1: QKV projection -----------------------------------------------------
    qkv_shape = jax.ShapeDtypeStruct((B, n_head, T, hd), cd)
    q, k, v = pl.pallas_call(
        functools.partial(_qkv_proj_kernel, n_head=n_head, scale=scale),
        out_shape=(qkv_shape, qkv_shape, qkv_shape),
        grid_spec=pltpu.PrefetchScalarGridSpec(
            num_scalar_prefetch=0,
            grid=(B, T // tp),
            in_specs=[
                pl.BlockSpec((1, tp, C), lambda b, t: (b, t, 0)),
                _resident_spec((C, 3 * C), lambda b, t: (0, 0), single_buffer_weights),
                _resident_spec((1, 3 * C), lambda b, t: (0, 0), single_buffer_weights),
            ],
            out_specs=[
                pl.BlockSpec((1, n_head, tp, hd), lambda b, t: (b, 0, t, 0)),
                pl.BlockSpec((1, n_head, tp, hd), lambda b, t: (b, 0, t, 0)),
                pl.BlockSpec((1, n_head, tp, hd), lambda b, t: (b, 0, t, 0)),
            ],
        ),
        compiler_params=pltpu.CompilerParams(
            dimension_semantics=("parallel", "parallel"),
            vmem_limit_bytes=vmem_limit_bytes,
        ),
        cost_estimate=pl.CostEstimate(
            flops=int(2 * B * T * C * 3 * C),
            transcendentals=0,
            bytes_accessed=int(B * T * C * x.dtype.itemsize
                               + 3 * C * C * esize + 3 * B * T * C * esize),
        ),
    )(x, w_qkv_c, b_qkv2)

    # ---- Kernel 2: flash attention over lower-triangular blocks + fused out-proj -------
    # Flattened causal grid: only (i, j) pairs with j <= i are enumerated; i/j come from
    # scalar-prefetched lookup tables feeding the index_maps, so the upper-triangular half
    # costs neither compute nor grid-step overhead.
    tri = [(i, j) for i in range(nq) for j in range(i + 1)]
    i_of = jnp.asarray([p[0] for p in tri], dtype=jnp.int32)
    j_of = jnp.asarray([p[1] for p in tri], dtype=jnp.int32)
    n_tri = len(tri)

    out = pl.pallas_call(
        _flash_attn_proj_kernel,
        out_shape=jax.ShapeDtypeStruct((B, T, C), x.dtype),
        grid_spec=pltpu.PrefetchScalarGridSpec(
            num_scalar_prefetch=2,
            # NOTE: the flattened KV axis must stay the innermost "arbitrary" dimension --
            # the m/l/acc scratch carries state across it and is re-initialised at j == 0.
            grid=(B, n_tri),
            in_specs=[
                pl.BlockSpec((1, n_head, tq, hd), lambda b, t, im, jm: (b, 0, im[t], 0)),
                pl.BlockSpec((1, n_head, tq, hd), lambda b, t, im, jm: (b, 0, jm[t], 0)),
                pl.BlockSpec((1, n_head, tq, hd), lambda b, t, im, jm: (b, 0, jm[t], 0)),
                _resident_spec((C, C), lambda b, t, im, jm: (0, 0), single_buffer_weights),
                _resident_spec((1, C), lambda b, t, im, jm: (0, 0), single_buffer_weights),
            ],
            out_specs=pl.BlockSpec((1, tq, C), lambda b, t, im, jm: (b, im[t], 0)),
            scratch_shapes=[
                pltpu.VMEM((n_head, tq, 1), jnp.float32),    # running max m
                pltpu.VMEM((n_head, tq, 1), jnp.float32),    # running sum l
                pltpu.VMEM((n_head, tq, hd), jnp.float32),   # f32 output accumulator
            ],
        ),
        compiler_params=pltpu.CompilerParams(
            # batch axis stays "parallel" so both v7x TensorCores get work (keep B >= 2).
            dimension_semantics=("parallel", "arbitrary"),
            vmem_limit_bytes=vmem_limit_bytes,
        ),
        cost_estimate=pl.CostEstimate(
            flops=int(2 * B * n_head * T * T * hd + 2 * B * T * C * C),
            transcendentals=int(B * n_head * T * T // 2),
            bytes_accessed=int(B * T * C * esize * (2 + nq)
                               + C * C * esize + B * T * C * x.dtype.itemsize),
        ),
    )(i_of, j_of, q, k, v, w_proj_c, b_proj2)

    return out


# --------------------------------------------------------------------------------------
# Pure-JAX reference (matches the PyTorch forward, eval mode)
# --------------------------------------------------------------------------------------
def reference(x, w_qkv, b_qkv, w_proj, b_proj, n_head):
    B, T, C = x.shape
    hd = C // n_head
    qkv = x @ w_qkv + b_qkv
    q, k, v = jnp.split(qkv, 3, axis=-1)

    def heads(t):
        return t.reshape(B, T, n_head, hd).transpose(0, 2, 1, 3)

    q, k, v = heads(q), heads(k), heads(v)
    s = jnp.einsum("bhqd,bhkd->bhqk", q, k) / math.sqrt(hd)
    mask = jnp.tril(jnp.ones((T, T), dtype=bool))
    s = jnp.where(mask, s, -jnp.inf)
    a = jax.nn.softmax(s, axis=-1)
    y = jnp.einsum("bhqk,bhkd->bhqd", a, v)
    y = y.transpose(0, 2, 1, 3).reshape(B, T, C)
    return y @ w_proj + b_proj


if __name__ == "__main__":
    # Small shapes consistent with the module (n_emb % n_head == 0).  T/C are chosen so the
    # attention kernel exercises several row tiles, off-diagonal causal blocks and the
    # flattened triangular grid; B = 2 keeps a >= 2-wide "parallel" axis (v7x megacore).
    B, T, C, n_head = 2, 256, 128, 4

    key = jax.random.PRNGKey(0)
    kx, k1, k2, k3, k4 = jax.random.split(key, 5)

    x = jax.random.normal(kx, (B, T, C), dtype=jnp.float32)

    # nn.Linear(C, 3C) / nn.Linear(C, C) parameters stored as (in, out).
    lim = 1.0 / math.sqrt(C)
    w_qkv = jax.random.uniform(k1, (C, 3 * C), minval=-lim, maxval=lim, dtype=jnp.float32)
    b_qkv = jax.random.uniform(k2, (3 * C,), minval=-lim, maxval=lim, dtype=jnp.float32)
    w_proj = jax.random.uniform(k3, (C, C), minval=-lim, maxval=lim, dtype=jnp.float32)
    b_proj = jax.random.uniform(k4, (C,), minval=-lim, maxval=lim, dtype=jnp.float32)

    def run(cd, single_buffer):
        return causal_self_attention(
            x, w_qkv, b_qkv, w_proj, b_proj, n_head,
            block_q=128, block_proj=128,          # small tiles so the demo hits nq > 1
            compute_dtype=cd, single_buffer_weights=single_buffer)

    single_buffer = True
    try:
        out_bf16 = jax.block_until_ready(run(jnp.bfloat16, single_buffer))
    except Exception:
        # pl.Buffered(1) single-buffering not supported on this JAX/libtpu combination:
        # fall back to default double-buffered resident weights.
        single_buffer = False
        out_bf16 = jax.block_until_ready(run(jnp.bfloat16, single_buffer))

    out_f32 = jax.block_until_ready(run(jnp.float32, single_buffer))

    ref = reference(x, w_qkv, b_qkv, w_proj, b_proj, n_head)
    assert out_f32.shape == (B, T, C) and out_bf16.shape == (B, T, C)

    err_f32 = float(jnp.max(jnp.abs(out_f32 - ref)))
    err_bf16 = float(jnp.max(jnp.abs(out_bf16.astype(jnp.float32) - ref)))
    assert err_f32 < 1e-2, f"f32 max abs err = {err_f32}"
    assert err_bf16 < 6e-2, f"bf16 max abs err = {err_bf16}"

    # TODO(synk): attention/residual dropout of the full nanoGPT block (train mode) is
    # intentionally omitted; this matches the eval-mode forward of the given module.
    print("KERNEL_OK")
</pallas_src>

<mosaic_0001>
module attributes {stable_mosaic.version = 11 : i64} {
  func.func @_qkv_proj_kernel(%arg0: i32, %arg1: i32, %arg2: memref<1x128x128xf32, #tpu.memory_space<vmem>>, %arg3: memref<128x384xbf16, #tpu.memory_space<vmem>>, %arg4: memref<1x384xf32, #tpu.memory_space<vmem>>, %arg5: memref<1x4x128x32xbf16, #tpu.memory_space<vmem>>, %arg6: memref<1x4x128x32xbf16, #tpu.memory_space<vmem>>, %arg7: memref<1x4x128x32xbf16, #tpu.memory_space<vmem>>) attributes {dimension_semantics = [#tpu.dimension_semantics<parallel>, #tpu.dimension_semantics<parallel>], iteration_bounds = array<i64: 2, 2>, scalar_prefetch = 0 : i64, scratch_operands = 0 : i64, tpu.core_type = #tpu.core_type<tc>, window_params = [{transform_indices = @transform_0, window_bounds = array<i64: 1, 128, 128>}, {pipeline_mode = #tpu.pipeline_mode<synchronous>, transform_indices = @transform_1, window_bounds = array<i64: 128, 384>}, {pipeline_mode = #tpu.pipeline_mode<synchronous>, transform_indices = @transform_2, window_bounds = array<i64: 1, 384>}, {transform_indices = @transform_3, window_bounds = array<i64: 1, 4, 128, 32>}, {transform_indices = @transform_4, window_bounds = array<i64: 1, 4, 128, 32>}, {transform_indices = @transform_5, window_bounds = array<i64: 1, 4, 128, 32>}]} {
    %c0 = arith.constant 0 : index
    %c0_0 = arith.constant 0 : index
    %c0_1 = arith.constant 0 : index
    %0 = vector.load %arg2[%c0, %c0_0, %c0_1] : memref<1x128x128xf32, #tpu.memory_space<vmem>>, vector<1x128x128xf32>
    %1 = vector.shape_cast %0 : vector<1x128x128xf32> to vector<128x128xf32>
    %2 = arith.truncf %1 : vector<128x128xf32> to vector<128x128xbf16>
    %c0_2 = arith.constant 0 : index
    %c0_3 = arith.constant 0 : index
    %3 = vector.load %arg3[%c0_2, %c0_3] : memref<128x384xbf16, #tpu.memory_space<vmem>>, vector<128x384xbf16>
    %cst = arith.constant dense<0.000000e+00> : vector<128x384xf32>
    %4 = tpu.matmul %2, %3, %cst {dimension_numbers = #tpu.dot_dimension_numbers<[1], [0], [0], [1], [0, 0, 1, 1], [], []>} : vector<128x128xbf16>, vector<128x384xbf16>, vector<128x384xf32> -> vector<128x384xf32>
    %c0_4 = arith.constant 0 : index
    %c0_5 = arith.constant 0 : index
    %5 = vector.load %arg4[%c0_4, %c0_5] : memref<1x384xf32, #tpu.memory_space<vmem>>, vector<1x384xf32>
    %6 = vector.broadcast %5 : vector<1x384xf32> to vector<128x384xf32>
    %7 = arith.addf %4, %6 : vector<128x384xf32>
    %8 = vector.extract_strided_slice %7 {offsets = [0, 0], sizes = [128, 32], strides = [1, 1]} : vector<128x384xf32> to vector<128x32xf32>
    %cst_6 = arith.constant 0.176776692 : f32
    %9 = vector.broadcast %cst_6 : f32 to vector<128x32xf32>
    %10 = arith.mulf %8, %9 : vector<128x32xf32>
    %11 = arith.truncf %10 : vector<128x32xf32> to vector<128x32xbf16>
    %c0_7 = arith.constant 0 : index
    %c0_8 = arith.constant 0 : index
    %c0_9 = arith.constant 0 : index
    %c0_10 = arith.constant 0 : index
    %12 = vector.load %arg5[%c0_7, %c0_8, %c0_9, %c0_10] : memref<1x4x128x32xbf16, #tpu.memory_space<vmem>>, vector<1x1x128x32xbf16>
    %13 = vector.shape_cast %12 : vector<1x1x128x32xbf16> to vector<128x32xbf16>
    %14 = vector.shape_cast %11 : vector<128x32xbf16> to vector<1x1x128x32xbf16>
    tpu.vector_store %arg5[%c0_7, %c0_8, %c0_9, %c0_10], %14 {strides = array<i32>} : memref<1x4x128x32xbf16, #tpu.memory_space<vmem>>, vector<1x1x128x32xbf16>,
    %15 = vector.extract_strided_slice %7 {offsets = [0, 128], sizes = [128, 32], strides = [1, 1]} : vector<128x384xf32> to vector<128x32xf32>
    %16 = arith.truncf %15 : vector<128x32xf32> to vector<128x32xbf16>
    %c0_11 = arith.constant 0 : index
    %c0_12 = arith.constant 0 : index
    %c0_13 = arith.constant 0 : index
    %c0_14 = arith.constant 0 : index
    %17 = vector.load %arg6[%c0_11, %c0_12, %c0_13, %c0_14] : memref<1x4x128x32xbf16, #tpu.memory_space<vmem>>, vector<1x1x128x32xbf16>
    %18 = vector.shape_cast %17 : vector<1x1x128x32xbf16> to vector<128x32xbf16>
    %19 = vector.shape_cast %16 : vector<128x32xbf16> to vector<1x1x128x32xbf16>
    tpu.vector_store %arg6[%c0_11, %c0_12, %c0_13, %c0_14], %19 {strides = array<i32>} : memref<1x4x128x32xbf16, #tpu.memory_space<vmem>>, vector<1x1x128x32xbf16>,
    %20 = vector.extract_strided_slice %7 {offsets = [0, 256], sizes = [128, 32], strides = [1, 1]} : vector<128x384xf32> to vector<128x32xf32>
    %21 = arith.truncf %20 : vector<128x32xf32> to vector<128x32xbf16>
    %c0_15 = arith.constant 0 : index
    %c0_16 = arith.constant 0 : index
    %c0_17 = arith.constant 0 : index
    %c0_18 = arith.constant 0 : index
    %22 = vector.load %arg7[%c0_15, %c0_16, %c0_17, %c0_18] : memref<1x4x128x32xbf16, #tpu.memory_space<vmem>>, vector<1x1x128x32xbf16>
    %23 = vector.shape_cast %22 : vector<1x1x128x32xbf16> to vector<128x32xbf16>
    %24 = vector.shape_cast %21 : vector<128x32xbf16> to vector<1x1x128x32xbf16>
    tpu.vector_store %arg7[%c0_15, %c0_16, %c0_17, %c0_18], %24 {strides = array<i32>} : memref<1x4x128x32xbf16, #tpu.memory_space<vmem>>, vector<1x1x128x32xbf16>,
    %25 = vector.extract_strided_slice %7 {offsets = [0, 32], sizes = [128, 32], strides = [1, 1]} : vector<128x384xf32> to vector<128x32xf32>
    %cst_19 = arith.constant 0.176776692 : f32
    %26 = vector.broadcast %cst_19 : f32 to vector<128x32xf32>
    %27 = arith.mulf %25, %26 : vector<128x32xf32>
    %28 = arith.truncf %27 : vector<128x32xf32> to vector<128x32xbf16>
    %c0_20 = arith.constant 0 : index
    %c1 = arith.constant 1 : index
    %c0_21 = arith.constant 0 : index
    %c0_22 = arith.constant 0 : index
    %29 = vector.load %arg5[%c0_20, %c1, %c0_21, %c0_22] : memref<1x4x128x32xbf16, #tpu.memory_space<vmem>>, vector<1x1x128x32xbf16>
    %30 = vector.shape_cast %29 : vector<1x1x128x32xbf16> to vector<128x32xbf16>
    %31 = vector.shape_cast %28 : vector<128x32xbf16> to vector<1x1x128x32xbf16>
    tpu.vector_store %arg5[%c0_20, %c1, %c0_21, %c0_22], %31 {strides = array<i32>} : memref<1x4x128x32xbf16, #tpu.memory_space<vmem>>, vector<1x1x128x32xbf16>,
    %32 = vector.extract_strided_slice %7 {offsets = [0, 160], sizes = [128, 32], strides = [1, 1]} : vector<128x384xf32> to vector<128x32xf32>
    %33 = arith.truncf %32 : vector<128x32xf32> to vector<128x32xbf16>
    %c0_23 = arith.constant 0 : index
    %c1_24 = arith.constant 1 : index
    %c0_25 = arith.constant 0 : index
    %c0_26 = arith.constant 0 : index
    %34 = vector.load %arg6[%c0_23, %c1_24, %c0_25, %c0_26] : memref<1x4x128x32xbf16, #tpu.memory_space<vmem>>, vector<1x1x128x32xbf16>
    %35 = vector.shape_cast %34 : vector<1x1x128x32xbf16> to vector<128x32xbf16>
    %36 = vector.shape_cast %33 : vector<128x32xbf16> to vector<1x1x128x32xbf16>
    tpu.vector_store %arg6[%c0_23, %c1_24, %c0_25, %c0_26], %36 {strides = array<i32>} : memref<1x4x128x32xbf16, #tpu.memory_space<vmem>>, vector<1x1x128x32xbf16>,
    %37 = vector.extract_strided_slice %7 {offsets = [0, 288], sizes = [128, 32], strides = [1, 1]} : vector<128x384xf32> to vector<128x32xf32>
    %38 = arith.truncf %37 : vector<128x32xf32> to vector<128x32xbf16>
    %c0_27 = arith.constant 0 : index
    %c1_28 = arith.constant 1 : index
    %c0_29 = arith.constant 0 : index
    %c0_30 = arith.constant 0 : index
    %39 = vector.load %arg7[%c0_27, %c1_28, %c0_29, %c0_30] : memref<1x4x128x32xbf16, #tpu.memory_space<vmem>>, vector<1x1x128x32xbf16>
    %40 = vector.shape_cast %39 : vector<1x1x128x32xbf16> to vector<128x32xbf16>
    %41 = vector.shape_cast %38 : vector<128x32xbf16> to vector<1x1x128x32xbf16>
    tpu.vector_store %arg7[%c0_27, %c1_28, %c0_29, %c0_30], %41 {strides = array<i32>} : memref<1x4x128x32xbf16, #tpu.memory_space<vmem>>, vector<1x1x128x32xbf16>,
    %42 = vector.extract_strided_slice %7 {offsets = [0, 64], sizes = [128, 32], strides = [1, 1]} : vector<128x384xf32> to vector<128x32xf32>
    %cst_31 = arith.constant 0.176776692 : f32
    %43 = vector.broadcast %cst_31 : f32 to vector<128x32xf32>
    %44 = arith.mulf %42, %43 : vector<128x32xf32>
    %45 = arith.truncf %44 : vector<128x32xf32> to vector<128x32xbf16>
    %c0_32 = arith.constant 0 : index
    %c2 = arith.constant 2 : index
    %c0_33 = arith.constant 0 : index
    %c0_34 = arith.constant 0 : index
    %46 = vector.load %arg5[%c0_32, %c2, %c0_33, %c0_34] : memref<1x4x128x32xbf16, #tpu.memory_space<vmem>>, vector<1x1x128x32xbf16>
    %47 = vector.shape_cast %46 : vector<1x1x128x32xbf16> to vector<128x32xbf16>
    %48 = vector.shape_cast %45 : vector<128x32xbf16> to vector<1x1x128x32xbf16>
    tpu.vector_store %arg5[%c0_32, %c2, %c0_33, %c0_34], %48 {strides = array<i32>} : memref<1x4x128x32xbf16, #tpu.memory_space<vmem>>, vector<1x1x128x32xbf16>,
    %49 = vector.extract_strided_slice %7 {offsets = [0, 192], sizes = [128, 32], strides = [1, 1]} : vector<128x384xf32> to vector<128x32xf32>
    %50 = arith.truncf %49 : vector<128x32xf32> to vector<128x32xbf16>
    %c0_35 = arith.constant 0 : index
    %c2_36 = arith.constant 2 : index
    %c0_37 = arith.constant 0 : index
    %c0_38 = arith.constant 0 : index
    %51 = vector.load %arg6[%c0_35, %c2_36, %c0_37, %c0_38] : memref<1x4x128x32xbf16, #tpu.memory_space<vmem>>, vector<1x1x128x32xbf16>
    %52 = vector.shape_cast %51 : vector<1x1x128x32xbf16> to vector<128x32xbf16>
    %53 = vector.shape_cast %50 : vector<128x32xbf16> to vector<1x1x128x32xbf16>
    tpu.vector_store %arg6[%c0_35, %c2_36, %c0_37, %c0_38], %53 {strides = array<i32>} : memref<1x4x128x32xbf16, #tpu.memory_space<vmem>>, vector<1x1x128x32xbf16>,
    %54 = vector.extract_strided_slice %7 {offsets = [0, 320], sizes = [128, 32], strides = [1, 1]} : vector<128x384xf32> to vector<128x32xf32>
    %55 = arith.truncf %54 : vector<128x32xf32> to vector<128x32xbf16>
    %c0_39 = arith.constant 0 : index
    %c2_40 = arith.constant 2 : index
    %c0_41 = arith.constant 0 : index
    %c0_42 = arith.constant 0 : index
    %56 = vector.load %arg7[%c0_39, %c2_40, %c0_41, %c0_42] : memref<1x4x128x32xbf16, #tpu.memory_space<vmem>>, vector<1x1x128x32xbf16>
    %57 = vector.shape_cast %56 : vector<1x1x128x32xbf16> to vector<128x32xbf16>
    %58 = vector.shape_cast %55 : vector<128x32xbf16> to vector<1x1x128x32xbf16>
    tpu.vector_store %arg7[%c0_39, %c2_40, %c0_41, %c0_42], %58 {strides = array<i32>} : memref<1x4x128x32xbf16, #tpu.memory_space<vmem>>, vector<1x1x128x32xbf16>,
    %59 = vector.extract_strided_slice %7 {offsets = [0, 96], sizes = [128, 32], strides = [1, 1]} : vector<128x384xf32> to vector<128x32xf32>
    %cst_43 = arith.constant 0.176776692 : f32
    %60 = vector.broadcast %cst_43 : f32 to vector<128x32xf32>
    %61 = arith.mulf %59, %60 : vector<128x32xf32>
    %62 = arith.truncf %61 : vector<128x32xf32> to vector<128x32xbf16>
    %c0_44 = arith.constant 0 : index
    %c3 = arith.constant 3 : index
    %c0_45 = arith.constant 0 : index
    %c0_46 = arith.constant 0 : index
    %63 = vector.load %arg5[%c0_44, %c3, %c0_45, %c0_46] : memref<1x4x128x32xbf16, #tpu.memory_space<vmem>>, vector<1x1x128x32xbf16>
    %64 = vector.shape_cast %63 : vector<1x1x128x32xbf16> to vector<128x32xbf16>
    %65 = vector.shape_cast %62 : vector<128x32xbf16> to vector<1x1x128x32xbf16>
    tpu.vector_store %arg5[%c0_44, %c3, %c0_45, %c0_46], %65 {strides = array<i32>} : memref<1x4x128x32xbf16, #tpu.memory_space<vmem>>, vector<1x1x128x32xbf16>,
    %66 = vector.extract_strided_slice %7 {offsets = [0, 224], sizes = [128, 32], strides = [1, 1]} : vector<128x384xf32> to vector<128x32xf32>
    %67 = arith.truncf %66 : vector<128x32xf32> to vector<128x32xbf16>
    %c0_47 = arith.constant 0 : index
    %c3_48 = arith.constant 3 : index
    %c0_49 = arith.constant 0 : index
    %c0_50 = arith.constant 0 : index
    %68 = vector.load %arg6[%c0_47, %c3_48, %c0_49, %c0_50] : memref<1x4x128x32xbf16, #tpu.memory_space<vmem>>, vector<1x1x128x32xbf16>
    %69 = vector.shape_cast %68 : vector<1x1x128x32xbf16> to vector<128x32xbf16>
    %70 = vector.shape_cast %67 : vector<128x32xbf16> to vector<1x1x128x32xbf16>
    tpu.vector_store %arg6[%c0_47, %c3_48, %c0_49, %c0_50], %70 {strides = array<i32>} : memref<1x4x128x32xbf16, #tpu.memory_space<vmem>>, vector<1x1x128x32xbf16>,
    %71 = vector.extract_strided_slice %7 {offsets = [0, 352], sizes = [128, 32], strides = [1, 1]} : vector<128x384xf32> to vector<128x32xf32>
    %72 = arith.truncf %71 : vector<128x32xf32> to vector<128x32xbf16>
    %c0_51 = arith.constant 0 : index
    %c3_52 = arith.constant 3 : index
    %c0_53 = arith.constant 0 : index
    %c0_54 = arith.constant 0 : index
    %73 = vector.load %arg7[%c0_51, %c3_52, %c0_53, %c0_54] : memref<1x4x128x32xbf16, #tpu.memory_space<vmem>>, vector<1x1x128x32xbf16>
    %74 = vector.shape_cast %73 : vector<1x1x128x32xbf16> to vector<128x32xbf16>
    %75 = vector.shape_cast %72 : vector<128x32xbf16> to vector<1x1x128x32xbf16>
    tpu.vector_store %arg7[%c0_51, %c3_52, %c0_53, %c0_54], %75 {strides = array<i32>} : memref<1x4x128x32xbf16, #tpu.memory_space<vmem>>, vector<1x1x128x32xbf16>,
    return
  }
  func.func @transform_0(%arg0: i32, %arg1: i32) -> (i32, i32, i32) {
    %c0_i32 = arith.constant 0 : i32
    %c0_i32_0 = arith.constant 0 : i32
    return %arg0, %arg1, %c0_i32 : i32, i32, i32
  }
  func.func @transform_1(%arg0: i32, %arg1: i32) -> (i32, i32) {
    %c0_i32 = arith.constant 0 : i32
    %c0_i32_0 = arith.constant 0 : i32
    %c0_i32_1 = arith.constant 0 : i32
    return %c0_i32, %c0_i32_0 : i32, i32
  }
  func.func @transform_2(%arg0: i32, %arg1: i32) -> (i32, i32) {
    %c0_i32 = arith.constant 0 : i32
    %c0_i32_0 = arith.constant 0 : i32
    %c0_i32_1 = arith.constant 0 : i32
    return %c0_i32, %c0_i32_0 : i32, i32
  }
  func.func @transform_3(%arg0: i32, %arg1: i32) -> (i32, i32, i32, i32) {
    %c0_i32 = arith.constant 0 : i32
    %c0_i32_0 = arith.constant 0 : i32
    %c0_i32_1 = arith.constant 0 : i32
    return %arg0, %c0_i32, %arg1, %c0_i32_0 : i32, i32, i32, i32
  }
  func.func @transform_4(%arg0: i32, %arg1: i32) -> (i32, i32, i32, i32) {
    %c0_i32 = arith.constant 0 : i32
    %c0_i32_0 = arith.constant 0 : i32
    %c0_i32_1 = arith.constant 0 : i32
    return %arg0, %c0_i32, %arg1, %c0_i32_0 : i32, i32, i32, i32
  }
  func.func @transform_5(%arg0: i32, %arg1: i32) -> (i32, i32, i32, i32) {
    %c0_i32 = arith.constant 0 : i32
    %c0_i32_0 = arith.constant 0 : i32
    %c0_i32_1 = arith.constant 0 : i32
    return %arg0, %c0_i32, %arg1, %c0_i32_0 : i32, i32, i32, i32
  }
}

module attributes {stable_mosaic.version = 11 : i64} {
  func.func @_qkv_proj_kernel(%arg0: i32, %arg1: i32, %arg2: memref<1x128x128xf32, #tpu.memory_space<vmem>>, %arg3: memref<128x384xbf16, #tpu.memory_space<vmem>>, %arg4: memref<1x384xf32, #tpu.memory_space<vmem>>, %arg5: memref<1x4x128x32xbf16, #tpu.memory_space<vmem>>, %arg6: memref<1x4x128x32xbf16, #tpu.memory_space<vmem>>, %arg7: memref<1x4x128x32xbf16, #tpu.memory_space<vmem>>) attributes {dimension_semantics = [#tpu.dimension_semantics<parallel>, #tpu.dimension_semantics<parallel>], iteration_bounds = array<i64: 2, 2>, scalar_prefetch = 0 : i64, scratch_operands = 0 : i64, tpu.core_type = #tpu.core_type<tc>, window_params = [{transform_indices = @transform_0, window_bounds = array<i64: 1, 128, 128>}, {pipeline_mode = #tpu.pipeline_mode<synchronous>, transform_indices = @transform_1, window_bounds = array<i64: 128, 384>}, {pipeline_mode = #tpu.pipeline_mode<synchronous>, transform_indices = @transform_2, window_bounds = array<i64: 1, 384>}, {transform_indices = @transform_3, window_bounds = array<i64: 1, 4, 128, 32>}, {transform_indices = @transform_4, window_bounds = array<i64: 1, 4, 128, 32>}, {transform_indices = @transform_5, window_bounds = array<i64: 1, 4, 128, 32>}]} {
    %c0 = arith.constant 0 : index
    %c0_0 = arith.constant 0 : index
    %c0_1 = arith.constant 0 : index
    %0 = vector.load %arg2[%c0, %c0_0, %c0_1] : memref<1x128x128xf32, #tpu.memory_space<vmem>>, vector<1x128x128xf32>
    %1 = vector.shape_cast %0 : vector<1x128x128xf32> to vector<128x128xf32>
    %2 = arith.truncf %1 : vector<128x128xf32> to vector<128x128xbf16>
    %c0_2 = arith.constant 0 : index
    %c0_3 = arith.constant 0 : index
    %3 = vector.load %arg3[%c0_2, %c0_3] : memref<128x384xbf16, #tpu.memory_space<vmem>>, vector<128x384xbf16>
    %cst = arith.constant dense<0.000000e+00> : vector<128x384xf32>
    %4 = tpu.matmul %2, %3, %cst {dimension_numbers = #tpu.dot_dimension_numbers<[1], [0], [0], [1], [0, 0, 1, 1], [], []>} : vector<128x128xbf16>, vector<128x384xbf16>, vector<128x384xf32> -> vector<128x384xf32>
    %c0_4 = arith.constant 0 : index
    %c0_5 = arith.constant 0 : index
    %5 = vector.load %arg4[%c0_4, %c0_5] : memref<1x384xf32, #tpu.memory_space<vmem>>, vector<1x384xf32>
    %6 = vector.broadcast %5 : vector<1x384xf32> to vector<128x384xf32>
    %7 = arith.addf %4, %6 : vector<128x384xf32>
    %8 = vector.extract_strided_slice %7 {offsets = [0, 0], sizes = [128, 32], strides = [1, 1]} : vector<128x384xf32> to vector<128x32xf32>
    %cst_6 = arith.constant 0.176776692 : f32
    %9 = vector.broadcast %cst_6 : f32 to vector<128x32xf32>
    %10 = arith.mulf %8, %9 : vector<128x32xf32>
    %11 = arith.truncf %10 : vector<128x32xf32> to vector<128x32xbf16>
    %c0_7 = arith.constant 0 : index
    %c0_8 = arith.constant 0 : index
    %c0_9 = arith.constant 0 : index
    %c0_10 = arith.constant 0 : index
    %12 = vector.load %arg5[%c0_7, %c0_8, %c0_9, %c0_10] : memref<1x4x128x32xbf16, #tpu.memory_space<vmem>>, vector<1x1x128x32xbf16>
    %13 = vector.shape_cast %12 : vector<1x1x128x32xbf16> to vector<128x32xbf16>
    %14 = vector.shape_cast %11 : vector<128x32xbf16> to vector<1x1x128x32xbf16>
    tpu.vector_store %arg5[%c0_7, %c0_8, %c0_9, %c0_10], %14 {strides = array<i32>} : memref<1x4x128x32xbf16, #tpu.memory_space<vmem>>, vector<1x1x128x32xbf16>,
    %15 = vector.extract_strided_slice %7 {offsets = [0, 128], sizes = [128, 32], strides = [1, 1]} : vector<128x384xf32> to vector<128x32xf32>
    %16 = arith.truncf %15 : vector<128x32xf32> to vector<128x32xbf16>
    %c0_11 = arith.constant 0 : index
    %c0_12 = arith.constant 0 : index
    %c0_13 = arith.constant 0 : index
    %c0_14 = arith.constant 0 : index
    %17 = vector.load %arg6[%c0_11, %c0_12, %c0_13, %c0_14] : memref<1x4x128x32xbf16, #tpu.memory_space<vmem>>, vector<1x1x128x32xbf16>
    %18 = vector.shape_cast %17 : vector<1x1x128x32xbf16> to vector<128x32xbf16>
    %19 = vector.shape_cast %16 : vector<128x32xbf16> to vector<1x1x128x32xbf16>
    tpu.vector_store %arg6[%c0_11, %c0_12, %c0_13, %c0_14], %19 {strides = array<i32>} : memref<1x4x128x32xbf16, #tpu.memory_space<vmem>>, vector<1x1x128x32xbf16>,
    %20 = vector.extract_strided_slice %7 {offsets = [0, 256], sizes = [128, 32], strides = [1, 1]} : vector<128x384xf32> to vector<128x32xf32>
    %21 = arith.truncf %20 : vector<128x32xf32> to vector<128x32xbf16>
    %c0_15 = arith.constant 0 : index
    %c0_16 = arith.constant 0 : index
    %c0_17 = arith.constant 0 : index
    %c0_18 = arith.constant 0 : index
    %22 = vector.load %arg7[%c0_15, %c0_16, %c0_17, %c0_18] : memref<1x4x128x32xbf16, #tpu.memory_space<vmem>>, vector<1x1x128x32xbf16>
    %23 = vector.shape_cast %22 : vector<1x1x128x32xbf16> to vector<128x32xbf16>
    %24 = vector.shape_cast %21 : vector<128x32xbf16> to vector<1x1x128x32xbf16>
    tpu.vector_store %arg7[%c0_15, %c0_16, %c0_17, %c0_18], %24 {strides = array<i32>} : memref<1x4x128x32xbf16, #tpu.memory_space<vmem>>, vector<1x1x128x32xbf16>,
    %25 = vector.extract_strided_slice %7 {offsets = [0, 32], sizes = [128, 32], strides = [1, 1]} : vector<128x384xf32> to vector<128x32xf32>
    %cst_19 = arith.constant 0.176776692 : f32
    %26 = vector.broadcast %cst_19 : f32 to vector<128x32xf32>
    %27 = arith.mulf %25, %26 : vector<128x32xf32>
    %28 = arith.truncf %27 : vector<128x32xf32> to vector<128x32xbf16>
    %c0_20 = arith.constant 0 : index
    %c1 = arith.constant 1 : index
    %c0_21 = arith.constant 0 : index
    %c0_22 = arith.constant 0 : index
    %29 = vector.load %arg5[%c0_20, %c1, %c0_21, %c0_22] : memref<1x4x128x32xbf16, #tpu.memory_space<vmem>>, vector<1x1x128x32xbf16>
    %30 = vector.shape_cast %29 : vector<1x1x128x32xbf16> to vector<128x32xbf16>
    %31 = vector.shape_cast %28 : vector<128x32xbf16> to vector<1x1x128x32xbf16>
    tpu.vector_store %arg5[%c0_20, %c1, %c0_21, %c0_22], %31 {strides = array<i32>} : memref<1x4x128x32xbf16, #tpu.memory_space<vmem>>, vector<1x1x128x32xbf16>,
    %32 = vector.extract_strided_slice %7 {offsets = [0, 160], sizes = [128, 32], strides = [1, 1]} : vector<128x384xf32> to vector<128x32xf32>
    %33 = arith.truncf %32 : vector<128x32xf32> to vector<128x32xbf16>
    %c0_23 = arith.constant 0 : index
    %c1_24 = arith.constant 1 : index
    %c0_25 = arith.constant 0 : index
    %c0_26 = arith.constant 0 : index
    %34 = vector.load %arg6[%c0_23, %c1_24, %c0_25, %c0_26] : memref<1x4x128x32xbf16, #tpu.memory_space<vmem>>, vector<1x1x128x32xbf16>
    %35 = vector.shape_cast %34 : vector<1x1x128x32xbf16> to vector<128x32xbf16>
    %36 = vector.shape_cast %33 : vector<128x32xbf16> to vector<1x1x128x32xbf16>
    tpu.vector_store %arg6[%c0_23, %c1_24, %c0_25, %c0_26], %36 {strides = array<i32>} : memref<1x4x128x32xbf16, #tpu.memory_space<vmem>>, vector<1x1x128x32xbf16>,
    %37 = vector.extract_strided_slice %7 {offsets = [0, 288], sizes = [128, 32], strides = [1, 1]} : vector<128x384xf32> to vector<128x32xf32>
    %38 = arith.truncf %37 : vector<128x32xf32> to vector<128x32xbf16>
    %c0_27 = arith.constant 0 : index
    %c1_28 = arith.constant 1 : index
    %c0_29 = arith.constant 0 : index
    %c0_30 = arith.constant 0 : index
    %39 = vector.load %arg7[%c0_27, %c1_28, %c0_29, %c0_30] : memref<1x4x128x32xbf16, #tpu.memory_space<vmem>>, vector<1x1x128x32xbf16>
    %40 = vector.shape_cast %39 : vector<1x1x128x32xbf16> to vector<128x32xbf16>
    %41 = vector.shape_cast %38 : vector<128x32xbf16> to vector<1x1x128x32xbf16>
    tpu.vector_store %arg7[%c0_27, %c1_28, %c0_29, %c0_30], %41 {strides = array<i32>} : memref<1x4x128x32xbf16, #tpu.memory_space<vmem>>, vector<1x1x128x32xbf16>,
    %42 = vector.extract_strided_slice %7 {offsets = [0, 64], sizes = [128, 32], strides = [1, 1]} : vector<128x384xf32> to vector<128x32xf32>
    %cst_31 = arith.constant 0.176776692 : f32
    %43 = vector.broadcast %cst_31 : f32 to vector<128x32xf32>
    %44 = arith.mulf %42, %43 : vector<128x32xf32>
    %45 = arith.truncf %44 : vector<128x32xf32> to vector<128x32xbf16>
    %c0_32 = arith.constant 0 : index
    %c2 = arith.constant 2 : index
    %c0_33 = arith.constant 0 : index
    %c0_34 = arith.constant 0 : index
    %46 = vector.load %arg5[%c0_32, %c2, %c0_33, %c0_34] : memref<1x4x128x32xbf16, #tpu.memory_space<vmem>>, vector<1x1x128x32xbf16>
    %47 = vector.shape_cast %46 : vector<1x1x128x32xbf16> to vector<128x32xbf16>
    %48 = vector.shape_cast %45 : vector<128x32xbf16> to vector<1x1x128x32xbf16>
    tpu.vector_store %arg5[%c0_32, %c2, %c0_33, %c0_34], %48 {strides = array<i32>} : memref<1x4x128x32xbf16, #tpu.memory_space<vmem>>, vector<1x1x128x32xbf16>,
    %49 = vector.extract_strided_slice %7 {offsets = [0, 192], sizes = [128, 32], strides = [1, 1]} : vector<128x384xf32> to vector<128x32xf32>
    %50 = arith.truncf %49 : vector<128x32xf32> to vector<128x32xbf16>
    %c0_35 = arith.constant 0 : index
    %c2_36 = arith.constant 2 : index
    %c0_37 = arith.constant 0 : index
    %c0_38 = arith.constant 0 : index
    %51 = vector.load %arg6[%c0_35, %c2_36, %c0_37, %c0_38] : memref<1x4x128x32xbf16, #tpu.memory_space<vmem>>, vector<1x1x128x32xbf16>
    %52 = vector.shape_cast %51 : vector<1x1x128x32xbf16> to vector<128x32xbf16>
    %53 = vector.shape_cast %50 : vector<128x32xbf16> to vector<1x1x128x32xbf16>
    tpu.vector_store %arg6[%c0_35, %c2_36, %c0_37, %c0_38], %53 {strides = array<i32>} : memref<1x4x128x32xbf16, #tpu.memory_space<vmem>>, vector<1x1x128x32xbf16>,
    %54 = vector.extract_strided_slice %7 {offsets = [0, 320], sizes = [128, 32], strides = [1, 1]} : vector<128x384xf32> to vector<128x32xf32>
    %55 = arith.truncf %54 : vector<128x32xf32> to vector<128x32xbf16>
    %c0_39 = arith.constant 0 : index
    %c2_40 = arith.constant 2 : index
    %c0_41 = arith.constant 0 : index
    %c0_42 = arith.constant 0 : index
    %56 = vector.load %arg7[%c0_39, %c2_40, %c0_41, %c0_42] : memref<1x4x128x32xbf16, #tpu.memory_space<vmem>>, vector<1x1x128x32xbf16>
    %57 = vector.shape_cast %56 : vector<1x1x128x32xbf16> to vector<128x32xbf16>
    %58 = vector.shape_cast %55 : vector<128x32xbf16> to vector<1x1x128x32xbf16>
    tpu.vector_store %arg7[%c0_39, %c2_40, %c0_41, %c0_42], %58 {strides = array<i32>} : memref<1x4x128x32xbf16, #tpu.memory_space<vmem>>, vector<1x1x128x32xbf16>,
    %59 = vector.extract_strided_slice %7 {offsets = [0, 96], sizes = [128, 32], strides = [1, 1]} : vector<128x384xf32> to vector<128x32xf32>
    %cst_43 = arith.constant 0.176776692 : f32
    %60 = vector.broadcast %cst_43 : f32 to vector<128x32xf32>
    %61 = arith.mulf %59, %60 : vector<128x32xf32>
    %62 = arith.truncf %61 : vector<128x32xf32> to vector<128x32xbf16>
    %c0_44 = arith.constant 0 : index
    %c3 = arith.constant 3 : index
    %c0_45 = arith.constant 0 : index
    %c0_46 = arith.constant 0 : index
    %63 = vector.load %arg5[%c0_44, %c3, %c0_45, %c0_46] : memref<1x4x128x32xbf16, #tpu.memory_space<vmem>>, vector<1x1x128x32xbf16>
    %64 = vector.shape_cast %63 : vector<1x1x128x32xbf16> to vector<128x32xbf16>
    %65 = vector.shape_cast %62 : vector<128x32xbf16> to vector<1x1x128x32xbf16>
    tpu.vector_store %arg5[%c0_44, %c3, %c0_45, %c0_46], %65 {strides = array<i32>} : memref<1x4x128x32xbf16, #tpu.memory_space<vmem>>, vector<1x1x128x32xbf16>,
    %66 = vector.extract_strided_slice %7 {offsets = [0, 224], sizes = [128, 32], strides = [1, 1]} : vector<128x384xf32> to vector<128x32xf32>
    %67 = arith.truncf %66 : vector<128x32xf32> to vector<128x32xbf16>
    %c0_47 = arith.constant 0 : index
    %c3_48 = arith.constant 3 : index
    %c0_49 = arith.constant 0 : index
    %c0_50 = arith.constant 0 : index
    %68 = vector.load %arg6[%c0_47, %c3_48, %c0_49, %c0_50] : memref<1x4x128x32xbf16, #tpu.memory_space<vmem>>, vector<1x1x128x32xbf16>
    %69 = vector.shape_cast %68 : vector<1x1x128x32xbf16> to vector<128x32xbf16>
    %70 = vector.shape_cast %67 : vector<128x32xbf16> to vector<1x1x128x32xbf16>
    tpu.vector_store %arg6[%c0_47, %c3_48, %c0_49, %c0_50], %70 {strides = array<i32>} : memref<1x4x128x32xbf16, #tpu.memory_space<vmem>>, vector<1x1x128x32xbf16>,
    %71 = vector.extract_strided_slice %7 {offsets = [0, 352], sizes = [128, 32], strides = [1, 1]} : vector<128x384xf32> to vector<128x32xf32>
    %72 = arith.truncf %71 : vector<128x32xf32> to vector<128x32xbf16>
    %c0_51 = arith.constant 0 : index
    %c3_52 = arith.constant 3 : index
    %c0_53 = arith.constant 0 : index
    %c0_54 = arith.constant 0 : index
    %73 = vector.load %arg7[%c0_51, %c3_52, %c0_53, %c0_54] : memref<1x4x128x32xbf16, #tpu.memory_space<vmem>>, vector<1x1x128x32xbf16>
    %74 = vector.shape_cast %73 : vector<1x1x128x32xbf16> to vector<128x32xbf16>
    %75 = vector.shape_cast %72 : vector<128x32xbf16> to vector<1x1x128x32xbf16>
    tpu.vector_store %arg7[%c0_51, %c3_52, %c0_53, %c0_54], %75 {strides = array<i32>} : memref<1x4x128x32xbf16, #tpu.memory_space<vmem>>, vector<1x1x128x32xbf16>,
    return
  }
  func.func @transform_0(%arg0: i32, %arg1: i32) -> (i32, i32, i32) {
    %c0_i32 = arith.constant 0 : i32
    %c0_i32_0 = arith.constant 0 : i32
    return %arg0, %arg1, %c0_i32 : i32, i32, i32
  }
  func.func @transform_1(%arg0: i32, %arg1: i32) -> (i32, i32) {
    %c0_i32 = arith.constant 0 : i32
    %c0_i32_0 = arith.constant 0 : i32
    %c0_i32_1 = arith.constant 0 : i32
    return %c0_i32, %c0_i32_0 : i32, i32
  }
  func.func @transform_2(%arg0: i32, %arg1: i32) -> (i32, i32) {
    %c0_i32 = arith.constant 0 : i32
    %c0_i32_0 = arith.constant 0 : i32
    %c0_i32_1 = arith.constant 0 : i32
    return %c0_i32, %c0_i32_0 : i32, i32
  }
  func.func @transform_3(%arg0: i32, %arg1: i32) -> (i32, i32, i32, i32) {
    %c0_i32 = arith.constant 0 : i32
    %c0_i32_0 = arith.constant 0 : i32
    %c0_i32_1 = arith.constant 0 : i32
    return %arg0, %c0_i32, %arg1, %c0_i32_0 : i32, i32, i32, i32
  }
  func.func @transform_4(%arg0: i32, %arg1: i32) -> (i32, i32, i32, i32) {
    %c0_i32 = arith.constant 0 : i32
    %c0_i32_0 = arith.constant 0 : i32
    %c0_i32_1 = arith.constant 0 : i32
    return %arg0, %c0_i32, %arg1, %c0_i32_0 : i32, i32, i32, i32
  }
  func.func @transform_5(%arg0: i32, %arg1: i32) -> (i32, i32, i32, i32) {
    %c0_i32 = arith.constant 0 : i32
    %c0_i32_0 = arith.constant 0 : i32
    %c0_i32_1 = arith.constant 0 : i32
    return %arg0, %c0_i32, %arg1, %c0_i32_0 : i32, i32, i32, i32
  }
}

</mosaic_0001>

<bundles_post_ra>
// kernel: tpu_custom_call.1
= control target key start
LH: loop header
LB: loop body
LE: loop exit
PB: predicated region body
PF: predicated region fallthrough
CT: control target
= control target key end

     0   :  { %s4556_s0 = inlined_call_operand.hbm [shape: f32[2,256,128], index: 0, kind: input, shape index: {}]   ;;  %s4557_s1 = inlined_call_operand.hbm [shape: bf16[128,384], index: 1, kind: input, shape index: {}]   ;;  %s4558_s2 = inlined_call_operand.vmem [shape: f32[1,384], index: 2, kind: input, shape index: {}]   ;;  %s4559_s3 = inlined_call_operand.vmem [shape: bf16[2,4,256,32], index: 3, kind: output, shape index: {0}]   ;;  %s4560_s4 = inlined_call_operand.vmem [shape: bf16[2,4,256,32], index: 4, kind: output, shape index: {1}]   ;;  %s4561_s5 = inlined_call_operand.vmem [shape: bf16[2,4,256,32], index: 5, kind: output, shape index: {2}]  }
   0x1   :  { %4567 = sst [smem:[#allocation12_spill]] %s4557_s1 }
   0x2   :  { %4568 = sst [smem:[#allocation13_spill]] %s4559_s3 }
   0x3   :  { %4569 = sst [smem:[#allocation14_spill]] %s4560_s4 }
   0x4   :  { %4570 = sst [smem:[#allocation15_spill]] %s4561_s5 }
   0x5   :  { %11 = vsyncpa [#allocation3], 0 }
   0x6   :  { %13 = vsyncpa [#allocation3 + $0x1], 0 }
   0x7   :  { %14 = vsyncpa [#allocation5], 0  ;;  %s3240_s18 = smov 0   ;;  %s3242_s19 = smov 0  }
   0x8   :  { %s3244_s20 = smov 0   ;;  %s3246_s21 = smov 0  }
   0x9   :  { %s3248_s22 = smov 0   ;;  %s3250_s23 = smov 0  }
   0xa   :  { %s3252_s24 = smov 0   ;;  %s3254_s25 = smov 0  }
   0xb LB: > { %s2607_s26 = sadd.s32 4294967295, %s3198_s25   ;;  %p54_p0 = scmp.ne.s32.totalorder %s3174_s19, %s3170_s18  ;;  %s3198_s25 = sphi %s3254_s25, %s20_s25   ;;  %s3194_s24 = sphi %s3252_s24, %s4595_s24   ;;  %s3190_s23 = sphi %s3250_s23, %s4594_s23   ;;  %s3186_s22 = sphi %s3248_s22, %s4593_s22   ;;  %s3182_s21 = sphi %s3246_s21, %s4592_s21   ;;  %s3178_s20 = sphi %s3244_s20, %s4591_s20   ;;  %s3174_s19 = sphi %s3242_s19, %s4590_s19   ;;  %s3170_s18 = sphi %s3240_s18, %s4589_s18  }
   0xc   : > { %p3280_p1 = scmp.eq.s32.totalorder %s2607_s26, 0  ;;  %p3284_p2 = scmp.eq.s32.totalorder %s2607_s26, 3 }
   0xd   : > { %p2609_p3 = scmp.ge.s32.totalorder %s3198_s25, 1  ;;  %p191_p4 = scmp.lt.s32.totalorder %s3198_s25, 5 }
   0xe   : > { %s4571_s27 = scalar_select %p3280_p1, 1, 0 }
   0xf   : > { %s4572_s28 = scalar_select %p3284_p2, 1, 0 }
  0x10   : > { %p3292_p5 = por %p3280_p1, %p54_p0  ;;  %p3296_p6 = pnand %p2609_p3, %p191_p4 }
  0x11   : > { %s3200_s6 = smov [#allocation4]   ;;  %s4576_s1 = sld [smem:[#allocation12_spill]] }
  0x12   : > { %s4573_s29 = scalar_select %p3292_p5, 1, 0 }
  0x13   : > { %s4574_s30 = scalar_select %p3296_p6, 1, 0 }
  0x14   : > { %s203_s7 = sshll.u32 %s3200_s6, 4  ;;  %p2954_p7 = pneg %p3296_p6  ;;  %s204_s7 = int_to_ptr.vmem [resolvable:$true] %s203_s7 }
  0x16   : > { %p3304_p8 = pnand %p2954_p7, %p3280_p1 }
  0x17   : > { %s3070_s11 = scalar_lea.hbm %s4576_s1, 3072 }
  0x18   : > { %p3071_p9 = scmp.ne.s32.totalorder %s4576_s1, %s3070_s11  ;;  %p3072_p10 = pneg %p3304_p8 }
  0x19   : > { %p3077_p13 = scmp.lt.u32.totalorder %s3070_s11, %s4576_s1 }
  0x1a   : > { %p3073_p11 = pnand %p3072_p10, %p3071_p9 }
  0x1c   : > { %p3074_p12 = pneg %p3073_p11 }
  0x1e   : > { %p3079_p0 = pnand %p3077_p13, %p3074_p12 }
  0x20   : > { %3082 = shalt.err (!%p3079_p0)
}
  0x21   : > { %s3083_s16 = scalar_lea.vmem %s204_s7, 3072  ;;  %p3091_p1 = scmp.lt.s32.totalorder %s204_s7, %s204_s7 }
  0x22   : > { %p3084_p3 = scmp.ne.s32.totalorder %s204_s7, %s3083_s16  ;;  %p3092_p5 = scmp.lt.s32.totalorder %s3083_s16, %s3083_s16 }
  0x24   : > { %p3086_p4 = pnand %p3084_p3, %p3072_p10  ;;  %p3093_p6 = por %p3092_p5, %p3091_p1 }
  0x26   : > { %p3087_p7 = pneg %p3086_p4 }
  0x28   : > { %p3094_p2 = pnand %p3093_p6, %p3087_p7 }
  0x2a   : > { %3097 = shalt.err (!%p3094_p2)
}
  0x2b   : > { %s3201_s17 = smov 192   ;;  %s3202_s18 = smov 12  }
  0x2c   : > { %2957 = dma.hbm_to_vmem [thread:$0]  (!%p3304_p8), %s4576_s1, 3072, %s204_s7, [#allocation5], %s3201_s17, %s3201_s17, %s3202_s18  }
  0x2d   : > { %s29_s9 = sadd.s32 1, %s3190_s23  ;;  %s32_s10 = sadd.s32 1, %s3194_s24 }
  0x2e   : > { %p30_p1 = scmp.ge.s32.totalorder %s29_s9, 2  ;;  %s41_s11 = sadd.s32 1, %s3178_s20 }
  0x2f   : > { %p48_p2 = scmp.ne.s32.totalorder %s3178_s20, %s3174_s19  ;;  %p49_p5 = scmp.eq.s32.totalorder %s3198_s25, 0 }
  0x30   : > { %s4597_s9 = smov (%p30_p1, %s29_s9), 0  ;;  %s4599_s10 = smov (!%p30_p1, %s32_s10), %s3194_s24 }
  0x31   : > { %4577 = sst [smem:[#allocation11_spill]] %s4597_s9  ;;  %s37_s12 = ssub.s32 %s3190_s23, %s4597_s9 }
  0x32   : > { %p3335_p6 = por %p49_p5, %p48_p2  ;;  %p34_p8 = scmp.ge.s32.totalorder %s4599_s10, 2 }
  0x33   : > { %p4579_p9 = scmp.ne.s32.totalorder %s4572_s28, 0  ;;  %p2963_p11 = scmp.lt.s32.totalorder %s3198_s25, 4 }
  0x34   : > { %s220_s13 = sand.u32 1, %s3178_s20   ;;  %s4601_s10 = smov (%p34_p8, %s4599_s10), 0 }
  0x35   : > { %p3341_p10 = por %p4579_p9, %p48_p2  ;;  %s2612_s14 = sshll.u32 %s220_s13, 7 }
  0x36   : > { %s36_s15 = ssub.s32 %s3194_s24, %s4601_s10  ;;  %s2613_s17 = sshll.u32 %s3190_s23, 4 }
  0x37   : > { %s38_s16 = sor.u32 %s37_s12, %s36_s15  ;;  %s2614_s18 = sshll.u32 %s3194_s24, 5 }
  0x38   : > { %p39_p12 = scmp.eq.s32.totalorder %s38_s16, 0  ;;  %s230_s26 = sadd.s32 %s2614_s18, %s2613_s17 }
  0x39   : > { %s224_s6 = scalar_lea.vmem [#allocation2], %s2612_s14  ;;  %s2615_s9 = sshll.u32 %s230_s26, 7 }
  0x3a   : > { %s233_s28 = sshll.u32 %s224_s6, 4  ;;  %s3361_s3 = scalar_lea.hbm %s4556_s0, %s2615_s9  ;;  %s3356_s28 = int_to_ptr.vmem [resolvable:$true] %s233_s28 }
  0x3b   : > { %s3354_s1 = scalar_select %p39_p12, %s3178_s20, %s41_s11  }
  0x3c   : > { %p3367_p13 = pnand %p2963_p11, %p3335_p6  ;;  %s3371_s11 = scalar_lea.sflag [#allocation3], %s220_s13 }
  0x3d   : > { %s3098_s14 = scalar_lea.hbm %s3361_s3, 2048  ;;  %s3103_s9 = scalar_lea.hbm %s4556_s0, 8192 }
  0x3e   : > { %p3099_p0 = scmp.ne.s32.totalorder %s3361_s3, %s3098_s14  ;;  %p3100_p3 = pneg %p3367_p13 }
  0x3f   : > { %p3104_p1 = scmp.lt.u32.totalorder %s3361_s3, %s4556_s0  ;;  %p3105_p2 = scmp.lt.u32.totalorder %s3103_s9, %s3098_s14 }
  0x40   : > { %p3101_p4 = pnand %p3100_p3, %p3099_p0  ;;  %p3107_p6 = scmp.lt.u32.totalorder %s3098_s14, %s3361_s3 }
  0x41   : > { %p3106_p5 = por %p3105_p2, %p3104_p1 }
  0x42   : > { %p3102_p7 = pneg %p3101_p4 }
  0x43   : > { %p3108_p8 = por %p3107_p6, %p3106_p5 }
  0x45   : > { %p3109_p9 = pnand %p3108_p8, %p3102_p7 }
  0x47   : > { %3112 = shalt.err (!%p3109_p9)
}
  0x48   : > { %s3113_s13 = scalar_lea.vmem %s3356_s28, 2048  ;;  %s3203_s16 = smov [#allocation2]  }
  0x49   : > { %p3114_p11 = scmp.ne.s32.totalorder %s3356_s28, %s3113_s13  ;;  %s3118_s17 = sshll.u32 %s3203_s16, 4  ;;  %s3119_s17 = int_to_ptr.vmem [resolvable:$false] %s3118_s17 }
  0x4a   : > { %s3120_s18 = scalar_lea.vmem %s3119_s17, 4096  ;;  %p3121_p4 = scmp.lt.s32.totalorder %s3356_s28, %s3119_s17 }
  0x4b   : > { %p3116_p12 = pnand %p3114_p11, %p3100_p3  ;;  %p3122_p1 = scmp.lt.s32.totalorder %s3120_s18, %s3113_s13 }
  0x4d   : > { %p3117_p0 = pneg %p3116_p12  ;;  %p3123_p2 = por %p3122_p1, %p3121_p4 }
  0x4f   : > { %p3124_p5 = pnand %p3123_p2, %p3117_p0 }
  0x51   : > { %3127 = shalt.err (!%p3124_p5)
}
  0x52   : > { %s3204_s26 = smov 128   ;;  %s3205_s6 = smov 8  }
  0x53   : > { %2961 = dma.hbm_to_vmem [thread:$0]  (!%p3367_p13), %s3361_s3, 2048, %s3356_s28, %s3371_s11, %s3204_s26, %s3204_s26, %s3205_s6  }
  0x54   : > { %p4582_p3 = scmp.ne.s32.totalorder %s4574_s30, 0 }
  0x55   : > { %s3402_s14 = sand.u32 (!%p4582_p3), 1, %s3174_s19   ;;  %p4583_p7 = scmp.ne.s32.totalorder (!%p4582_p3), %s4573_s29, 0 }
  0x56   : > { %245 = sbr.rel (%p4582_p3) target bundleno = 800 (0x320), region = 32  ;;  %s2617_s4 = sshll.u32 (!%p4582_p3), %s3402_s14, 7 }
  0x57   : > { %s248_s5 = scalar_lea.sflag (!%p4582_p3), [#allocation3], %s3402_s14  ;;  %s3406_s9 = scalar_lea.vmem (!%p4582_p3), [#allocation2], %s2617_s4 }
  0x5d   : > { %3161 = dma.done.wait (%p4583_p7), %s248_s5, 2048  }
  0x5e   : > { %3163 = vsyncadd (%p4583_p7), %s248_s5, 4294965248  ;;  %p4584_p13 = scmp.ne.s32.totalorder %s4571_s27, 0 }
  0x60   : > { %3165 = dma.done.wait (%p4584_p13), [#allocation5], 3072  }
  0x61   : > { %3167 = vsyncadd (%p4584_p13), [#allocation5], 4294964224  ;;  %v3206_v0 = vmov 0   ;;  %v3038_v1 = vld [vmem:[#allocation4 + $0x8] ss:$12 sps:$4 sm:$0xff]   ;;  %v294_v16 = vld [vmem:[%s3406_s9] sm:$0xff]  ;;  %v352_v49 = vlaneseq }
  0x62   : > { %527 = vmatprep.mubr.bf16.mxu0 %v3206_v0  ;;  %v3039_v2 = vld [vmem:[#allocation4 + $0x20] ss:$12 sps:$4 sm:$0xff]   ;;  %2916 = vmatprep.subr.bf16.mxu1 %v3038_v1  ;;  %v3040_v3 = vld [vmem:[#allocation4 + $0x4] ss:$12 sps:$4 sm:$0xff]   ;;  %v3044_v6 = vld [vmem:[#allocation4 + $0x1c] ss:$12 sps:$4 sm:$0xff]  }
  0x63   : > { %2917 = vmatpush3.bf16.msra.mxu1 %v3038_v1  ;;  %v3042_v4 = vld [vmem:[#allocation4 + $0x38] ss:$12 sps:$4 sm:$0xff]   ;;  %495 = vmatprep.subr.bf16.mxu0 %v3040_v3  ;;  %v3043_v5 = vld [vmem:[#allocation4] ss:$12 sps:$4 sm:$0xff]   ;;  %v3046_v9 = vld [vmem:[#allocation4 + $0x50] ss:$12 sps:$4 sm:$0xff]  }
  0x64   : > { %2918 = vmatprep.subr.bf16.mxu1 %v3039_v2  ;;  %496 = vmatpush1.bf16.msra.mxu0 %v3043_v5  ;;  %v3047_v7 = vld [vmem:[#allocation4 + $0x18] ss:$12 sps:$4 sm:$0xff]   ;;  %v3048_v8 = vld [vmem:[#allocation4 + $0x34] ss:$12 sps:$4 sm:$0xff]   ;;  %v3051_v10 = vld [vmem:[#allocation4 + $0x30] ss:$12 sps:$4 sm:$0xff]  }
  0x65   : > { %497 = vmatprep.subr.bf16.mxu0 %v3044_v6  ;;  %v3052_v11 = vld [vmem:[#allocation4 + $0x4c] ss:$12 sps:$4 sm:$0xff]   ;;  %v3050_v12 = vld [vmem:[#allocation4 + $0x68] ss:$12 sps:$4 sm:$0xff]   ;;  %v3056_v15 = vld [vmem:[#allocation4 + $0x64] ss:$12 sps:$4 sm:$0xff]  }
  0x66   : > { %v3055_v13 = vld [vmem:[#allocation4 + $0x48] ss:$12 sps:$4 sm:$0xff]   ;;  %v3054_v14 = vld [vmem:[#allocation4 + $0x80] ss:$12 sps:$4 sm:$0xff]   ;;  %v3058_v21 = vld [vmem:[#allocation4 + $0x98] ss:$12 sps:$4 sm:$0xff]  }
  0x67   : > { %2919 = vmatpush3.bf16.msra.mxu1 %v3039_v2  ;;  %v295_v17 = vld [vmem:[%s3406_s9 + $0x8] sm:$0xff]  ;;  %v3063_v22 = vld [vmem:[#allocation4 + $0x78] ss:$12 sps:$4 sm:$0xff]   ;;  %v3064_v23 = vld [vmem:[#allocation4 + $0x94] ss:$12 sps:$4 sm:$0xff]   ;;  %v353_v50 = vshrl.u32 %v352_v49, 7 }
  0x68   : > { %2920 = vmatprep.subr.bf16.mxu1 %v3042_v4  ;;  %498 = vmatpush1.bf16.msra.mxu0 %v3047_v7  ;;  %v310_v18 = vpack.c.bf16 %v295_v17, %v294_v16  ;;  %v3059_v19 = vld [vmem:[#allocation4 + $0x60] ss:$12 sps:$4 sm:$0xff]   ;;  %v3060_v20 = vld [vmem:[#allocation4 + $0x7c] ss:$12 sps:$4 sm:$0xff]   ;;  %v296_v26 = vld [vmem:[%s3406_s9 + $0x10] sm:$0xff]  ;;  %s3446_s29 = sshll.u32 %s3402_s14, 8 }
  0x69   : > { %499 = vmatprep.subr.bf16.mxu0 %v3048_v8  ;;  %v3062_v24 = vld [vmem:[#allocation4 + $0xb0] ss:$12 sps:$4 sm:$0xff]   ;;  %v3067_v28 = vld [vmem:[#allocation4 + $0xac] ss:$12 sps:$4 sm:$0xff]   ;;  %v298_v29 = vld [vmem:[%s3406_s9 + $0x20] sm:$0xff]  ;;  %v362_v51 = vsub.s32 2, %v353_v50 }
  0x6a   : > { %2932 = vmatprep.mubr.bf16.mxu1 %v310_v18  ;;  %v3066_v25 = vld [vmem:[#allocation4 + $0x90] ss:$12 sps:$4 sm:$0xff]   ;;  %v299_v30 = vld [vmem:[%s3406_s9 + $0x28] sm:$0xff]  ;;  %v302_v36 = vld [vmem:[%s3406_s9 + $0x40] sm:$0xff]  ;;  %v354_v53 = vsub.s32 0, %v353_v50  ;;  %v358_v55 = vsub.s32 1, %v353_v50 }
  0x6b   : > { %2921 = vmatpush3.bf16.msra.mxu1 %v3042_v4  ;;  %v297_v27 = vld [vmem:[%s3406_s9 + $0x18] sm:$0xff]  ;;  %v3069_v32 = vld [vmem:[#allocation4 + $0xa8] ss:$12 sps:$4 sm:$0xff]   ;;  %v312_v33 = vpack.c.bf16 %v299_v30, %v298_v29  ;;  %v306_v42 = vld [vmem:[%s3406_s9 + $0x60] sm:$0xff]  ;;  %vm785_vm0 = vcmask 257024   ;;  %s3460_s30 = scalar_lea.vmem [#allocation8], %s3446_s29 }
  0x6c   : > { %2922 = vmatprep.subr.bf16.mxu1 %v3046_v9  ;;  %500 = vmatpush1.bf16.msra.mxu0 %v3051_v10  ;;  %v311_v31 = vpack.c.bf16 %v297_v27, %v296_v26  ;;  %v300_v34 = vld [vmem:[%s3406_s9 + $0x30] sm:$0xff]  ;;  %v301_v35 = vld [vmem:[%s3406_s9 + $0x38] sm:$0xff]  ;;  %v303_v37 = vld [vmem:[%s3406_s9 + $0x48] sm:$0xff]  ;;  %s3207_s28 = smov 96   ;;  %s3208_s12 = smov 64  }
  0x6d   : > { %501 = vmatprep.subr.bf16.mxu0 %v3052_v11  ;;  %v313_v38 = vpack.c.bf16 %v301_v35, %v300_v34  ;;  %v314_v39 = vpack.c.bf16 %v303_v37, %v302_v36  ;;  %v304_v40 = vld [vmem:[%s3406_s9 + $0x50] sm:$0xff]  ;;  %v305_v41 = vld [vmem:[%s3406_s9 + $0x58] sm:$0xff]  ;;  %v307_v43 = vld [vmem:[%s3406_s9 + $0x68] sm:$0xff]  ;;  %s3485_s11 = scalar_lea.vmem [#allocation7], %s3446_s29  ;;  %s3494_s8 = scalar_lea.vmem [#allocation6], %s3446_s29 }
  0x6e   : > { %v315_v44 = vpack.c.bf16 %v305_v41, %v304_v40  ;;  %v316_v45 = vpack.c.bf16 %v307_v43, %v306_v42  ;;  %v308_v46 = vld [vmem:[%s3406_s9 + $0x70] sm:$0xff]  ;;  %v309_v47 = vld [vmem:[%s3406_s9 + $0x78] sm:$0xff]  ;;  %v350_v52 = vld [vmem:[%s4558_s2] sm:$0x7]  ;;  %s3209_s15 = smov 32   ;;  %s2841_s13 = sshll.u32 (%p3341_p10), %s3182_s21, 4 }
  0x6f   : > { %2923 = vmatpush3.bf16.msra.mxu1 %v3046_v9  ;;  %v317_v48 = vpack.c.bf16 %v309_v47, %v308_v46  ;;  %v3443_v54 = vrot.slane %v350_v52, %v362_v51  ;;  %v3448_v57 = vrot.slane %v350_v52, %v354_v53  ;;  %v3451_v60 = vrot.slane %v350_v52, %v358_v55  ;;  %s2842_s16 = sshll.u32 (%p3341_p10), %s3186_s22, 7  ;;  %s4585_s14 = sld [smem:[#allocation13_spill]] (%p3341_p10) }
  0x70   : > { %2924 = vmatprep.subr.bf16.mxu1 %v3050_v12  ;;  %502 = vmatpush1.bf16.msra.mxu0 %v3055_v13  ;;  %s1564_s17 = sadd.s32 (%p3341_p10), %s2842_s16, %s2841_s13 }
  0x71   : > { %503 = vmatprep.subr.bf16.mxu0 %v3056_v15  ;;  %s2843_s18 = sshll.u32 (%p3341_p10), %s1564_s17, 2 }
  0x73   : > { %2925 = vmatpush3.bf16.msra.mxu1 %v3050_v12 }
  0x74   : > { %2926 = vmatprep.subr.bf16.mxu1 %v3054_v14  ;;  %504 = vmatpush1.bf16.msra.mxu0 %v3059_v19 }
  0x75   : > { %505 = vmatprep.subr.bf16.mxu0 %v3060_v20  ;;  %s4329_s4 = scalar_lea.vmem (%p3341_p10), %s4585_s14, %s2843_s18 }
  0x77   : > { %2927 = vmatpush3.bf16.msra.mxu1 %v3054_v14 }
  0x78   : > { %2928 = vmatprep.subr.bf16.mxu1 %v3058_v21  ;;  %506 = vmatpush1.bf16.msra.mxu0 %v3063_v22 }
  0x79   : > { %507 = vmatprep.subr.bf16.mxu0 %v3064_v23 }
  0x7b   : > { %2929 = vmatpush3.bf16.msra.mxu1 %v3058_v21 }
  0x7c   : > { %2930 = vmatprep.subr.bf16.mxu1 %v3062_v24  ;;  %508 = vmatpush1.bf16.msra.mxu0 %v3066_v25 }
  0x7d   : > { %509 = vmatprep.subr.bf16.mxu0 %v3067_v28 }
  0x7f   : > { %2931 = vmatpush3.bf16.msra.mxu1 %v3062_v24 }
  0x80   : > { %510 = vmatpush1.bf16.msra.mxu0 %v3069_v32 }
  0x82   : > { %2933 = vmatmul.mubr.bf16.vlgmr.msra.gmra.mrb[0].mxu1 %v311_v31 }
  0x83   : > { %2936 = vmatprep.mubr.bf16.mxu1 %v312_v33  ;;  %528 = vmatmul.mubr.bf16.vlgmr.msra.gmra.mrb[0].mxu0 %v310_v18 }
  0x84   : > { %537 = vmatprep.mubr.bf16.mxu0 %v3206_v0 }
  0x8a   : > { %2937 = vmatmul.mubr.bf16.gmra.mrb[4].mxu1 %v313_v38 }
  0x8b   : > { %2940 = vmatprep.mubr.bf16.mxu1 %v314_v39  ;;  %538 = vmatmul.mubr.bf16.gmra.mrb[4].mxu0 %v311_v31 }
  0x8c   : > { %547 = vmatprep.mubr.bf16.mxu0 %v3206_v0 }
  0x92   : > { %2941 = vmatmul.mubr.bf16.gmra.mrb[8].mxu1 %v315_v44 }
  0x93   : > { %2944 = vmatprep.mubr.bf16.mxu1 %v316_v45  ;;  %548 = vmatmul.mubr.bf16.gmra.mrb[8].mxu0 %v312_v33 }
  0x94   : > { %557 = vmatprep.mubr.bf16.mxu0 %v3206_v0 }
  0x9a   : > { %2945 = vmatmul.mubr.bf16.gmra.mrb[12].mxu1 %v317_v48 }
  0x9b   : > { %558 = vmatmul.mubr.bf16.gmra.mrb[12].mxu0 %v313_v38 }
  0x9c   : > { %567 = vmatprep.mubr.bf16.mxu0 %v3206_v0 }
  0xa3   : > { %568 = vmatmul.mubr.bf16.gmra.mrb[16].mxu0 %v314_v39 }
  0xa4   : > { %577 = vmatprep.mubr.bf16.mxu0 %v3206_v0 }
  0xab   : > { %578 = vmatmul.mubr.bf16.gmra.mrb[20].mxu0 %v315_v44 }
  0xac   : > { %587 = vmatprep.mubr.bf16.mxu0 %v3206_v0 }
  0xb3   : > { %588 = vmatmul.mubr.bf16.gmra.mrb[24].mxu0 %v316_v45 }
  0xb4   : > { %597 = vmatprep.mubr.bf16.mxu0 %v3206_v0 }
  0xbb   : > { %598 = vmatmul.mubr.bf16.gmra.mrb[28].mxu0 %v317_v48 }
 0x155   : > { %v2934_v56 = vpop.f32.mrb[0].mxu1 }
 0x156   : > { %v651_v58 = vadd.f32 %v2934_v56, %v3443_v54  ;;  %v642_v59 = vpop.f32.mrb[1].mxu1  ;;  %v529_v2 = vpop.f32.mrb[0].mxu0 }
 0x157   : > { %v643_v61 = vadd.f32 %v642_v59, %v3443_v54  ;;  %v2935_v62 = vpop.f32.mrb[2].mxu1  ;;  %v530_v5 = vadd.f32 %v529_v2, %v3448_v57  ;;  %v531_v6 = vpop.f32.mrb[1].mxu0 }
 0x158   : > { %v2886_v63 = vpack.c.bf16 %v651_v58, %v651_v58  ;;  %v654_v0 = vadd.f32 %v2935_v62, %v3443_v54  ;;  %v645_v1 = vpop.f32.mrb[3].mxu1  ;;  %v532_v8 = vadd.f32 %v531_v6, %v3451_v60  ;;  %v533_v9 = vpop.f32.mrb[2].mxu0 }
 0x159   : > { %v3455_v3 = vpack.c.bf16 %v643_v61, %v643_v61  ;;  %v646_v4 = vadd.f32 %v645_v1, %v3443_v54  ;;  %v705_v11 = vmul.f32 0.17677669, %v530_v5  ;;  %v534_v12 = vadd.f32 %v533_v9, %v3448_v57  ;;  %v535_v13 = vpop.f32.mrb[3].mxu0 }
 0x15a   : > { %948 = vst.msk [vmem:[%s3460_s30 + $0x8] sm:$0xf] %vm785_vm0, %v2886_v63  ;;  %v2887_v7 = vpack.c.bf16 %v654_v0, %v654_v0  ;;  %1096 = vrot.lane.b32.xlu0 %v2886_v63, %s3207_s28  ;;  %v3475_v14 = vpack.c.bf16 %v532_v8, %v532_v8  ;;  %v536_v15 = vadd.f32 %v535_v13, %v3451_v60 }
 0x15b   : > { %946 = vst.msk [vmem:[%s3460_s30] sm:$0xf] %vm785_vm0, %v3455_v3  ;;  %v3469_v10 = vpack.c.bf16 %v646_v4, %v646_v4  ;;  %v3481_v16 = vpack.c.bf16 %v705_v11, %v705_v11  ;;  %v706_v17 = vmul.f32 0.17677669, %v534_v12 }
 0x15c   : > { %949 = vst.msk [vmem:[%s3460_s30 + $0xc] sm:$0xf] %vm785_vm0, %v2887_v7  ;;  %1098 = vrot.lane.b32.xlu1 %v2887_v7, %s3207_s28  ;;  %866 = vst.msk [vmem:[%s3485_s11] sm:$0xf] %vm785_vm0, %v3475_v14  ;;  %v3490_v19 = vpack.c.bf16 %v536_v15, %v536_v15 }
 0x15d   : > { %947 = vst.msk [vmem:[%s3460_s30 + $0x4] sm:$0xf] %vm785_vm0, %v3469_v10  ;;  %v2938_v18 = vpop.f32.mrb[4].mxu1  ;;  %786 = vst.msk [vmem:[%s3494_s8] sm:$0xf] %vm785_vm0, %v3481_v16  ;;  %v3499_v22 = vpack.c.bf16 %v706_v17, %v706_v17 }
 0x15e   : > { %1291 = vrot.lane.b32.xlu0 %v2886_v63, %s3208_s12  ;;  %v667_v20 = vadd.f32 %v2938_v18, %v3443_v54  ;;  %v658_v21 = vpop.f32.mrb[5].mxu1  ;;  %867 = vst.msk [vmem:[%s3485_s11 + $0x4] sm:$0xf] %vm785_vm0, %v3490_v19  ;;  %v539_v25 = vpop.f32.mrb[4].mxu0 }
 0x15f   : > { %v659_v23 = vadd.f32 %v658_v21, %v3443_v54  ;;  %v2939_v24 = vpop.f32.mrb[6].mxu1  ;;  %787 = vst.msk [vmem:[%s3494_s8 + $0x4] sm:$0xf] %vm785_vm0, %v3499_v22  ;;  %v540_v29 = vadd.f32 %v539_v25, %v3448_v57  ;;  %v541_v30 = vpop.f32.mrb[5].mxu0 }
 0x160   : > { %1293 = vrot.lane.b32.xlu1 %v2887_v7, %s3208_s12  ;;  %v3506_v26 = vpack.c.bf16 %v667_v20, %v667_v20  ;;  %v670_v27 = vadd.f32 %v2939_v24, %v3443_v54  ;;  %v661_v28 = vpop.f32.mrb[7].mxu1  ;;  %v542_v33 = vadd.f32 %v541_v30, %v3451_v60  ;;  %v543_v34 = vpop.f32.mrb[6].mxu0 }
 0x161   : > { %v3513_v31 = vpack.c.bf16 %v659_v23, %v659_v23  ;;  %v662_v32 = vadd.f32 %v661_v28, %v3443_v54  ;;  %v707_v36 = vmul.f32 0.17677669, %v540_v29  ;;  %v544_v37 = vadd.f32 %v543_v34, %v3448_v57  ;;  %v545_v38 = vpop.f32.mrb[7].mxu0 }
 0x162   : > { %1486 = vrot.lane.b32.xlu0 %v2886_v63, %s3209_s15  ;;  %952 = vst.msk [vmem:[%s3460_s30 + $0x18] sm:$0xf] %vm785_vm0, %v3506_v26  ;;  %v3521_v35 = vpack.c.bf16 %v670_v27, %v670_v27  ;;  %v3530_v40 = vpack.c.bf16 %v542_v33, %v542_v33  ;;  %v546_v41 = vadd.f32 %v545_v38, %v3451_v60 }
 0x163   : > { %950 = vst.msk [vmem:[%s3460_s30 + $0x10] sm:$0xf] %vm785_vm0, %v3513_v31  ;;  %v3527_v39 = vpack.c.bf16 %v662_v32, %v662_v32  ;;  %v3536_v42 = vpack.c.bf16 %v707_v36, %v707_v36  ;;  %v708_v43 = vmul.f32 0.17677669, %v544_v37 }
 0x164   : > { %1488 = vrot.lane.b32.xlu1 %v2887_v7, %s3209_s15  ;;  %953 = vst.msk [vmem:[%s3460_s30 + $0x1c] sm:$0xf] %vm785_vm0, %v3521_v35  ;;  %868 = vst.msk [vmem:[%s3485_s11 + $0x8] sm:$0xf] %vm785_vm0, %v3530_v40  ;;  %v3546_v45 = vpack.c.bf16 %v546_v41, %v546_v41 }
 0x165   : > { %951 = vst.msk [vmem:[%s3460_s30 + $0x14] sm:$0xf] %vm785_vm0, %v3527_v39  ;;  %v2942_v44 = vpop.f32.mrb[8].mxu1  ;;  %788 = vst.msk [vmem:[%s3494_s8 + $0x8] sm:$0xf] %vm785_vm0, %v3536_v42  ;;  %v3552_v48 = vpack.c.bf16 %v708_v43, %v708_v43 }
 0x166   : > { %1027 = vrot.lane.b32.xlu0 %v3475_v14, %s3207_s28  ;;  %v683_v46 = vadd.f32 %v2942_v44, %v3443_v54  ;;  %v674_v47 = vpop.f32.mrb[9].mxu1  ;;  %869 = vst.msk [vmem:[%s3485_s11 + $0xc] sm:$0xf] %vm785_vm0, %v3546_v45  ;;  %v549_v55 = vpop.f32.mrb[8].mxu0 }
 0x167   : > { %v675_v49 = vadd.f32 %v674_v47, %v3443_v54  ;;  %v2943_v50 = vpop.f32.mrb[10].mxu1  ;;  %789 = vst.msk [vmem:[%s3494_s8 + $0xc] sm:$0xf] %vm785_vm0, %v3552_v48  ;;  %v550_v59 = vadd.f32 %v549_v55, %v3448_v57  ;;  %v551_v61 = vpop.f32.mrb[9].mxu0 }
 0x168   : > { %1029 = vrot.lane.b32.xlu1 %v3490_v19, %s3207_s28  ;;  %v3560_v51 = vpack.c.bf16 %v683_v46, %v683_v46  ;;  %v686_v52 = vadd.f32 %v2943_v50, %v3443_v54  ;;  %v677_v53 = vpop.f32.mrb[11].mxu1  ;;  %v552_v63 = vadd.f32 %v551_v61, %v3451_v60  ;;  %v553_v0 = vpop.f32.mrb[10].mxu0 }
 0x169   : > { %v3566_v56 = vpack.c.bf16 %v675_v49, %v675_v49  ;;  %v678_v58 = vadd.f32 %v677_v53, %v3443_v54  ;;  %v709_v2 = vmul.f32 0.17677669, %v550_v59  ;;  %v554_v4 = vadd.f32 %v553_v0, %v3448_v57  ;;  %v555_v5 = vpop.f32.mrb[11].mxu0 }
 0x16a   : > { %1092 = vrot.lane.b32.xlu0 %v3455_v3, %s3207_s28  ;;  %956 = vst.msk [vmem:[%s3460_s30 + $0x28] sm:$0xf] %vm785_vm0, %v3560_v51  ;;  %v3575_v62 = vpack.c.bf16 %v686_v52, %v686_v52  ;;  %v3589_v6 = vpack.c.bf16 %v552_v63, %v552_v63  ;;  %v556_v7 = vadd.f32 %v555_v5, %v3451_v60 }
 0x16b   : > { %954 = vst.msk [vmem:[%s3460_s30 + $0x20] sm:$0xf] %vm785_vm0, %v3566_v56  ;;  %v3581_v1 = vpack.c.bf16 %v678_v58, %v678_v58  ;;  %v3595_v8 = vpack.c.bf16 %v709_v2, %v709_v2  ;;  %v710_v9 = vmul.f32 0.17677669, %v554_v4 }
 0x16c   : > { %1094 = vrot.lane.b32.xlu1 %v3469_v10, %s3207_s28  ;;  %957 = vst.msk [vmem:[%s3460_s30 + $0x2c] sm:$0xf] %vm785_vm0, %v3575_v62  ;;  %870 = vst.msk [vmem:[%s3485_s11 + $0x10] sm:$0xf] %vm785_vm0, %v3589_v6  ;;  %v3602_v12 = vpack.c.bf16 %v556_v7, %v556_v7 }
 0x16d   : > { %955 = vst.msk [vmem:[%s3460_s30 + $0x24] sm:$0xf] %vm785_vm0, %v3581_v1  ;;  %v2946_v11 = vpop.f32.mrb[12].mxu1  ;;  %790 = vst.msk [vmem:[%s3494_s8 + $0x10] sm:$0xf] %vm785_vm0, %v3595_v8  ;;  %v3608_v17 = vpack.c.bf16 %v710_v9, %v710_v9 }
 0x16e   : > { %1222 = vrot.lane.b32.xlu0 %v3475_v14, %s3208_s12  ;;  %v699_v13 = vadd.f32 %v2946_v11, %v3443_v54  ;;  %v690_v15 = vpop.f32.mrb[13].mxu1  ;;  %871 = vst.msk [vmem:[%s3485_s11 + $0x14] sm:$0xf] %vm785_vm0, %v3602_v12  ;;  %v559_v25 = vpop.f32.mrb[12].mxu0 }
 0x16f   : > { %v691_v18 = vadd.f32 %v690_v15, %v3443_v54  ;;  %v2947_v20 = vpop.f32.mrb[14].mxu1  ;;  %791 = vst.msk [vmem:[%s3494_s8 + $0x14] sm:$0xf] %vm785_vm0, %v3608_v17  ;;  %v560_v29 = vadd.f32 %v559_v25, %v3448_v57  ;;  %v561_v30 = vpop.f32.mrb[13].mxu0 }
 0x170   : > { %1224 = vrot.lane.b32.xlu1 %v3490_v19, %s3208_s12  ;;  %v3616_v21 = vpack.c.bf16 %v699_v13, %v699_v13  ;;  %v702_v23 = vadd.f32 %v2947_v20, %v3443_v54  ;;  %v693_v24 = vpop.f32.mrb[15].mxu1  ;;  %v562_v33 = vadd.f32 %v561_v30, %v3451_v60  ;;  %v563_v34 = vpop.f32.mrb[14].mxu0 }
 0x171   : > { %v3622_v27 = vpack.c.bf16 %v691_v18, %v691_v18  ;;  %v694_v28 = vadd.f32 %v693_v24, %v3443_v54  ;;  %v711_v36 = vmul.f32 0.17677669, %v560_v29  ;;  %v564_v37 = vadd.f32 %v563_v34, %v3448_v57  ;;  %v565_v38 = vpop.f32.mrb[15].mxu0 }
 0x172   : > { %1287 = vrot.lane.b32.xlu0 %v3455_v3, %s3208_s12  ;;  %960 = vst.msk [vmem:[%s3460_s30 + $0x38] sm:$0xf] %vm785_vm0, %v3616_v21  ;;  %v3631_v32 = vpack.c.bf16 %v702_v23, %v702_v23  ;;  %v3645_v41 = vpack.c.bf16 %v562_v33, %v562_v33  ;;  %v566_v43 = vadd.f32 %v565_v38, %v3451_v60 }
 0x173   : > { %958 = vst.msk [vmem:[%s3460_s30 + $0x30] sm:$0xf] %vm785_vm0, %v3622_v27  ;;  %v3637_v54 = vpack.c.bf16 %v694_v28, %v694_v28  ;;  %v3651_v44 = vpack.c.bf16 %v711_v36, %v711_v36  ;;  %v712_v46 = vmul.f32 0.17677669, %v564_v37 }
 0x174   : > { %1289 = vrot.lane.b32.xlu1 %v3469_v10, %s3208_s12  ;;  %961 = vst.msk [vmem:[%s3460_s30 + $0x3c] sm:$0xf] %vm785_vm0, %v3631_v32  ;;  %872 = vst.msk [vmem:[%s3485_s11 + $0x18] sm:$0xf] %vm785_vm0, %v3645_v41  ;;  %v3658_v47 = vpack.c.bf16 %v566_v43, %v566_v43 }
 0x175   : > { %959 = vst.msk [vmem:[%s3460_s30 + $0x34] sm:$0xf] %vm785_vm0, %v3637_v54  ;;  %792 = vst.msk [vmem:[%s3494_s8 + $0x18] sm:$0xf] %vm785_vm0, %v3651_v44  ;;  %v3663_v49 = vpack.c.bf16 %v712_v46, %v712_v46 }
 0x176   : > { %1417 = vrot.lane.b32.xlu0 %v3475_v14, %s3209_s15  ;;  %873 = vst.msk [vmem:[%s3485_s11 + $0x1c] sm:$0xf] %vm785_vm0, %v3658_v47 }
 0x177   : > { %793 = vst.msk [vmem:[%s3494_s8 + $0x1c] sm:$0xf] %vm785_vm0, %v3663_v49 }
 0x178   : > { %1419 = vrot.lane.b32.xlu1 %v3490_v19, %s3209_s15 }
 0x17a   : > { %1482 = vrot.lane.b32.xlu0 %v3455_v3, %s3209_s15  ;;  %v569_v3 = vpop.f32.mrb[16].mxu0 }
 0x17b   : > { %v571_v14 = vpop.f32.mrb[17].mxu0 }
 0x17c   : > { %1484 = vrot.lane.b32.xlu1 %v3469_v10, %s3209_s15  ;;  %v570_v10 = vadd.f32 %v569_v3, %v3448_v57  ;;  %v573_v19 = vpop.f32.mrb[18].mxu0 }
 0x17d   : > { %v574_v50 = vadd.f32 %v573_v19, %v3448_v57  ;;  %v575_v52 = vpop.f32.mrb[19].mxu0 }
 0x17e   : > { %962 = vrot.lane.b32.xlu0 %v3481_v16, %s3207_s28  ;;  %v576_v55 = vadd.f32 %v575_v52, %v3451_v60 }
 0x17f   : > { %v714_v59 = vmul.f32 0.17677669, %v574_v50 }
 0x180   : > { %1159 = vrot.lane.b32.xlu1 %v3499_v22, %s3208_s12  ;;  %v3710_v61 = vpack.c.bf16 %v576_v55, %v576_v55 }
 0x181   : > { %v3717_v63 = vpack.c.bf16 %v714_v59, %v714_v59 }
 0x182   : > { %1157 = vrot.lane.b32.xlu0 %v3481_v16, %s3208_s12  ;;  %875 = vst.msk [vmem:[%s3485_s11 + $0x24] sm:$0xf] %vm785_vm0, %v3710_v61 }
 0x183   : > { %795 = vst.msk [vmem:[%s3494_s8 + $0x24] sm:$0xf] %vm785_vm0, %v3717_v63 }
 0x184   : > { %1354 = vrot.lane.b32.xlu1 %v3499_v22, %s3209_s15 }
 0x186   : > { %1352 = vrot.lane.b32.xlu0 %v3481_v16, %s3209_s15  ;;  %v572_v16 = vadd.f32 %v571_v14, %v3451_v60 }
 0x188   : > { %966 = vrot.lane.b32.xlu1 %v3536_v42, %s3207_s28  ;;  %v3700_v53 = vpack.c.bf16 %v572_v16, %v572_v16 }
 0x18a   : > { %964 = vrot.lane.b32.xlu0 %v3499_v22, %s3207_s28  ;;  %v713_v22 = vmul.f32 0.17677669, %v570_v10  ;;  %874 = vst.msk [vmem:[%s3485_s11 + $0x20] sm:$0xf] %vm785_vm0, %v3700_v53 }
 0x18c   : > { %1106 = vrot.lane.b32.xlu1 %v3521_v35, %s3207_s28  ;;  %v3705_v58 = vpack.c.bf16 %v713_v22, %v713_v22 }
 0x18e   : > { %1104 = vrot.lane.b32.xlu0 %v3506_v26, %s3207_s28  ;;  %794 = vst.msk [vmem:[%s3494_s8 + $0x20] sm:$0xf] %vm785_vm0, %v3705_v58 }
 0x190   : > { %1301 = vrot.lane.b32.xlu1 %v3521_v35, %s3208_s12 }
 0x192   : > { %1299 = vrot.lane.b32.xlu0 %v3506_v26, %s3208_s12 }
 0x194   : > { %1496 = vrot.lane.b32.xlu1 %v3521_v35, %s3209_s15 }
 0x196   : > { %1494 = vrot.lane.b32.xlu0 %v3506_v26, %s3209_s15  ;;  %v579_v26 = vpop.f32.mrb[20].mxu0 }
 0x197   : > { %v580_v35 = vadd.f32 %v579_v26, %v3448_v57  ;;  %v581_v0 = vpop.f32.mrb[21].mxu0 }
 0x198   : > { %1033 = vrot.lane.b32.xlu1 %v3546_v45, %s3207_s28  ;;  %v582_v2 = vadd.f32 %v581_v0, %v3451_v60  ;;  %v583_v4 = vpop.f32.mrb[22].mxu0 }
 0x199   : > { %v715_v5 = vmul.f32 0.17677669, %v580_v35  ;;  %v584_v7 = vadd.f32 %v583_v4, %v3448_v57  ;;  %v585_v9 = vpop.f32.mrb[23].mxu0 }
 0x19a   : > { %1031 = vrot.lane.b32.xlu0 %v3530_v40, %s3207_s28  ;;  %v3748_v11 = vpack.c.bf16 %v582_v2, %v582_v2  ;;  %v586_v13 = vadd.f32 %v585_v9, %v3451_v60 }
 0x19b   : > { %v3753_v15 = vpack.c.bf16 %v715_v5, %v715_v5  ;;  %v716_v18 = vmul.f32 0.17677669, %v584_v7 }
 0x19c   : > { %1102 = vrot.lane.b32.xlu1 %v3527_v39, %s3207_s28  ;;  %876 = vst.msk [vmem:[%s3485_s11 + $0x28] sm:$0xf] %vm785_vm0, %v3748_v11  ;;  %v3758_v20 = vpack.c.bf16 %v586_v13, %v586_v13 }
 0x19d   : > { %796 = vst.msk [vmem:[%s3494_s8 + $0x28] sm:$0xf] %vm785_vm0, %v3753_v15 }
 0x19e   : > { %1100 = vrot.lane.b32.xlu0 %v3513_v31, %s3207_s28  ;;  %877 = vst.msk [vmem:[%s3485_s11 + $0x2c] sm:$0xf] %vm785_vm0, %v3758_v20 }
 0x1a0   : > { %1228 = vrot.lane.b32.xlu1 %v3546_v45, %s3208_s12 }
 0x1a2   : > { %1226 = vrot.lane.b32.xlu0 %v3530_v40, %s3208_s12 }
 0x1a4   : > { %1297 = vrot.lane.b32.xlu1 %v3527_v39, %s3208_s12 }
 0x1a6   : > { %1295 = vrot.lane.b32.xlu0 %v3513_v31, %s3208_s12 }
 0x1a8   : > { %1423 = vrot.lane.b32.xlu1 %v3546_v45, %s3209_s15  ;;  %v3765_v45 = vpack.c.bf16 %v716_v18, %v716_v18 }
 0x1aa   : > { %1421 = vrot.lane.b32.xlu0 %v3530_v40, %s3209_s15  ;;  %797 = vst.msk [vmem:[%s3494_s8 + $0x2c] sm:$0xf] %vm785_vm0, %v3765_v45 }
 0x1ac   : > { %1492 = vrot.lane.b32.xlu1 %v3527_v39, %s3209_s15 }
 0x1ae   : > { %1490 = vrot.lane.b32.xlu0 %v3513_v31, %s3209_s15  ;;  %v589_v31 = vpop.f32.mrb[24].mxu0 }
 0x1af   : > { %v590_v39 = vadd.f32 %v589_v31, %v3448_v57  ;;  %v591_v40 = vpop.f32.mrb[25].mxu0 }
 0x1b0   : > { %968 = vrot.lane.b32.xlu1 %v3552_v48, %s3207_s28  ;;  %v593_v23 = vpop.f32.mrb[26].mxu0 }
 0x1b1   : > { %v594_v24 = vadd.f32 %v593_v23, %v3448_v57  ;;  %v595_v25 = vpop.f32.mrb[27].mxu0 }
 0x1b2   : > { %1161 = vrot.lane.b32.xlu0 %v3536_v42, %s3208_s12  ;;  %v596_v29 = vadd.f32 %v595_v25, %v3451_v60  ;;  %v599_v46 = vpop.f32.mrb[28].mxu0 }
 0x1b3   : > { %v718_v33 = vmul.f32 0.17677669, %v594_v24  ;;  %v600_v10 = vadd.f32 %v599_v46, %v3448_v57  ;;  %v601_v14 = vpop.f32.mrb[29].mxu0 }
 0x1b4   : > { %1163 = vrot.lane.b32.xlu1 %v3552_v48, %s3208_s12  ;;  %v3806_v34 = vpack.c.bf16 %v596_v29, %v596_v29  ;;  %v602_v16 = vadd.f32 %v601_v14, %v3451_v60  ;;  %v603_v19 = vpop.f32.mrb[30].mxu0 }
 0x1b5   : > { %v3813_v36 = vpack.c.bf16 %v718_v33, %v718_v33  ;;  %v719_v50 = vmul.f32 0.17677669, %v600_v10  ;;  %v604_v52 = vadd.f32 %v603_v19, %v3448_v57 }
 0x1b6   : > { %1356 = vrot.lane.b32.xlu0 %v3536_v42, %s3209_s15  ;;  %v592_v42 = vadd.f32 %v591_v40, %v3451_v60  ;;  %879 = vst.msk [vmem:[%s3485_s11 + $0x34] sm:$0xf] %vm785_vm0, %v3806_v34  ;;  %v3858_v55 = vpack.c.bf16 %v602_v16, %v602_v16 }
 0x1b7   : > { %799 = vst.msk [vmem:[%s3494_s8 + $0x34] sm:$0xf] %vm785_vm0, %v3813_v36  ;;  %v720_v35 = vmul.f32 0.17677669, %v604_v52 }
 0x1b8   : > { %1358 = vrot.lane.b32.xlu1 %v3552_v48, %s3209_s15  ;;  %v717_v48 = vmul.f32 0.17677669, %v590_v39  ;;  %v3796_v28 = vpack.c.bf16 %v592_v42, %v592_v42  ;;  %880 = vst.msk [vmem:[%s3485_s11 + $0x38] sm:$0xf] %vm785_vm0, %v3858_v55 }
 0x1ba   : > { %1112 = vrot.lane.b32.xlu0 %v3560_v51, %s3207_s28  ;;  %v3801_v30 = vpack.c.bf16 %v717_v48, %v717_v48  ;;  %878 = vst.msk [vmem:[%s3485_s11 + $0x30] sm:$0xf] %vm785_vm0, %v3796_v28 }
 0x1bc   : > { %1114 = vrot.lane.b32.xlu1 %v3575_v62, %s3207_s28  ;;  %798 = vst.msk [vmem:[%s3494_s8 + $0x30] sm:$0xf] %vm785_vm0, %v3801_v30 }
 0x1be   : > { %1307 = vrot.lane.b32.xlu0 %v3560_v51, %s3208_s12 }
 0x1c0   : > { %1309 = vrot.lane.b32.xlu1 %v3575_v62, %s3208_s12 }
 0x1c2   : > { %1502 = vrot.lane.b32.xlu0 %v3560_v51, %s3209_s15 }
 0x1c4   : > { %1504 = vrot.lane.b32.xlu1 %v3575_v62, %s3209_s15 }
 0x1c6   : > { %1035 = vrot.lane.b32.xlu0 %v3589_v6, %s3207_s28 }
 0x1c8   : > { %1037 = vrot.lane.b32.xlu1 %v3602_v12, %s3207_s28 }
 0x1ca   : > { %1108 = vrot.lane.b32.xlu0 %v3566_v56, %s3207_s28 }
 0x1cc   : > { %v1097_v51 = vpop.permute.xlu0 %1096  ;;  %1110 = vrot.lane.b32.xlu1 %v3581_v1, %s3207_s28 }
 0x1cd   : > { %2728 = vst.msk [vmem:[%s3460_s30 + $0x48] sm:$0xf] %vm785_vm0, %v1097_v51 }
 0x1ce   : > { %v1099_v62 = vpop.permute.xlu1 %1098  ;;  %1230 = vrot.lane.b32.xlu0 %v3589_v6, %s3208_s12 }
 0x1cf   : > { %2729 = vst.msk [vmem:[%s3460_s30 + $0x4c] sm:$0xf] %vm785_vm0, %v1099_v62 }
 0x1d0   : > { %v1292_v37 = vpop.permute.xlu0 %1291  ;;  %1232 = vrot.lane.b32.xlu1 %v3602_v12, %s3208_s12 }
 0x1d1   : > { %2776 = vst.msk [vmem:[%s3460_s30 + $0x88] sm:$0xf] %vm785_vm0, %v1292_v37 }
 0x1d2   : > { %v1294_v38 = vpop.permute.xlu1 %1293  ;;  %1303 = vrot.lane.b32.xlu0 %v3566_v56, %s3208_s12 }
 0x1d3   : > { %2777 = vst.msk [vmem:[%s3460_s30 + $0x8c] sm:$0xf] %vm785_vm0, %v1294_v38 }
 0x1d4   : > { %v1487_v43 = vpop.permute.xlu0 %1486  ;;  %1305 = vrot.lane.b32.xlu1 %v3581_v1, %s3208_s12 }
 0x1d5   : > { %2824 = vst.msk [vmem:[%s3460_s30 + $0xc8] sm:$0xf] %vm785_vm0, %v1487_v43 }
 0x1d6   : > { %v1489_v3 = vpop.permute.xlu1 %1488  ;;  %1425 = vrot.lane.b32.xlu0 %v3589_v6, %s3209_s15  ;;  %v605_v6 = vpop.f32.mrb[31].mxu0 }
 0x1d7   : > { %2825 = vst.msk [vmem:[%s3460_s30 + $0xcc] sm:$0xf] %vm785_vm0, %v1489_v3  ;;  %v606_v59 = vadd.f32 %v605_v6, %v3451_v60 }
 0x1d8   : > { %1427 = vrot.lane.b32.xlu1 %v3602_v12, %s3209_s15  ;;  %v1028_v22 = vpop.permute.xlu0 %1027  ;;  %v3863_v12 = vpack.c.bf16 %v719_v50, %v719_v50 }
 0x1d9   : > { %2710 = vst.msk [vmem:[%s3485_s11 + $0x40] sm:$0xf] %vm785_vm0, %v1028_v22  ;;  %v3870_v57 = vpack.c.bf16 %v606_v59, %v606_v59 }
 0x1da   : > { %v1030_v26 = vpop.permute.xlu1 %1029  ;;  %1498 = vrot.lane.b32.xlu0 %v3566_v56, %s3209_s15  ;;  %800 = vst.msk [vmem:[%s3494_s8 + $0x38] sm:$0xf] %vm785_vm0, %v3863_v12  ;;  %v3877_v56 = vpack.c.bf16 %v720_v35, %v720_v35 }
 0x1db   : > { %2711 = vst.msk [vmem:[%s3485_s11 + $0x44] sm:$0xf] %vm785_vm0, %v1030_v26  ;;  %881 = vst.msk [vmem:[%s3485_s11 + $0x3c] sm:$0xf] %vm785_vm0, %v3870_v57 }
 0x1dc   : > { %1500 = vrot.lane.b32.xlu1 %v3581_v1, %s3209_s15  ;;  %v1093_v60 = vpop.permute.xlu0 %1092  ;;  %801 = vst.msk [vmem:[%s3494_s8 + $0x3c] sm:$0xf] %vm785_vm0, %v3877_v56 }
 0x1dd   : > { %2726 = vst.msk [vmem:[%s3460_s30 + $0x40] sm:$0xf] %vm785_vm0, %v1093_v60 }
 0x1de   : > { %v1095_v0 = vpop.permute.xlu1 %1094  ;;  %970 = vrot.lane.b32.xlu0 %v3595_v8, %s3207_s28 }
 0x1df   : > { %2727 = vst.msk [vmem:[%s3460_s30 + $0x44] sm:$0xf] %vm785_vm0, %v1095_v0 }
 0x1e0   : > { %972 = vrot.lane.b32.xlu1 %v3608_v17, %s3207_s28  ;;  %v1223_v1 = vpop.permute.xlu0 %1222 }
 0x1e1   : > { %2758 = vst.msk [vmem:[%s3485_s11 + $0x80] sm:$0xf] %vm785_vm0, %v1223_v1 }
 0x1e2   : > { %v1225_v2 = vpop.permute.xlu1 %1224  ;;  %1165 = vrot.lane.b32.xlu0 %v3595_v8, %s3208_s12 }
 0x1e3   : > { %2759 = vst.msk [vmem:[%s3485_s11 + $0x84] sm:$0xf] %vm785_vm0, %v1225_v2 }
 0x1e4   : > { %1167 = vrot.lane.b32.xlu1 %v3608_v17, %s3208_s12  ;;  %v1288_v4 = vpop.permute.xlu0 %1287 }
 0x1e5   : > { %2774 = vst.msk [vmem:[%s3460_s30 + $0x80] sm:$0xf] %vm785_vm0, %v1288_v4 }
 0x1e6   : > { %v1290_v5 = vpop.permute.xlu1 %1289  ;;  %1360 = vrot.lane.b32.xlu0 %v3595_v8, %s3209_s15 }
 0x1e7   : > { %2775 = vst.msk [vmem:[%s3460_s30 + $0x84] sm:$0xf] %vm785_vm0, %v1290_v5 }
 0x1e8   : > { %1362 = vrot.lane.b32.xlu1 %v3608_v17, %s3209_s15  ;;  %v1418_v7 = vpop.permute.xlu0 %1417 }
 0x1e9   : > { %2806 = vst.msk [vmem:[%s3485_s11 + $0xc0] sm:$0xf] %vm785_vm0, %v1418_v7 }
 0x1ea   : > { %v1420_v9 = vpop.permute.xlu1 %1419  ;;  %1120 = vrot.lane.b32.xlu0 %v3616_v21, %s3207_s28 }
 0x1eb   : > { %2807 = vst.msk [vmem:[%s3485_s11 + $0xc4] sm:$0xf] %vm785_vm0, %v1420_v9 }
 0x1ec   : > { %1122 = vrot.lane.b32.xlu1 %v3631_v32, %s3207_s28  ;;  %v1483_v8 = vpop.permute.xlu0 %1482 }
 0x1ed   : > { %2822 = vst.msk [vmem:[%s3460_s30 + $0xc0] sm:$0xf] %vm785_vm0, %v1483_v8 }
 0x1ee   : > { %v1485_v13 = vpop.permute.xlu1 %1484  ;;  %1315 = vrot.lane.b32.xlu0 %v3616_v21, %s3208_s12 }
 0x1ef   : > { %2823 = vst.msk [vmem:[%s3460_s30 + $0xc4] sm:$0xf] %vm785_vm0, %v1485_v13 }
 0x1f0   : > { %1317 = vrot.lane.b32.xlu1 %v3631_v32, %s3208_s12  ;;  %v963_v17 = vpop.permute.xlu0 %962 }
 0x1f1   : > { %2694 = vst.msk [vmem:[%s3494_s8 + $0x40] sm:$0xf] %vm785_vm0, %v963_v17 }
 0x1f2   : > { %v1160_v18 = vpop.permute.xlu1 %1159  ;;  %1039 = vrot.lane.b32.xlu0 %v3645_v41, %s3207_s28 }
 0x1f3   : > { %2743 = vst.msk [vmem:[%s3494_s8 + $0x84] sm:$0xf] %vm785_vm0, %v1160_v18 }
 0x1f4   : > { %1041 = vrot.lane.b32.xlu1 %v3658_v47, %s3207_s28  ;;  %v1158_v31 = vpop.permute.xlu0 %1157 }
 0x1f5   : > { %2742 = vst.msk [vmem:[%s3494_s8 + $0x80] sm:$0xf] %vm785_vm0, %v1158_v31 }
 0x1f6   : > { %v1355_v39 = vpop.permute.xlu1 %1354  ;;  %1116 = vrot.lane.b32.xlu0 %v3622_v27, %s3207_s28 }
 0x1f7   : > { %2791 = vst.msk [vmem:[%s3494_s8 + $0xc4] sm:$0xf] %vm785_vm0, %v1355_v39 }
 0x1f8   : > { %1118 = vrot.lane.b32.xlu1 %v3637_v54, %s3207_s28  ;;  %v1353_v40 = vpop.permute.xlu0 %1352 }
 0x1f9   : > { %2790 = vst.msk [vmem:[%s3494_s8 + $0xc0] sm:$0xf] %vm785_vm0, %v1353_v40 }
 0x1fa   : > { %v967_v42 = vpop.permute.xlu1 %966  ;;  %1234 = vrot.lane.b32.xlu0 %v3645_v41, %s3208_s12 }
 0x1fb   : > { %2696 = vst.msk [vmem:[%s3494_s8 + $0x48] sm:$0xf] %vm785_vm0, %v967_v42 }
 0x1fc   : > { %1236 = vrot.lane.b32.xlu1 %v3658_v47, %s3208_s12  ;;  %v965_v23 = vpop.permute.xlu0 %964 }
 0x1fd   : > { %2695 = vst.msk [vmem:[%s3494_s8 + $0x44] sm:$0xf] %vm785_vm0, %v965_v23 }
 0x1fe   : > { %v1107_v48 = vpop.permute.xlu1 %1106  ;;  %1311 = vrot.lane.b32.xlu0 %v3622_v27, %s3208_s12 }
 0x1ff   : > { %2733 = vst.msk [vmem:[%s3460_s30 + $0x5c] sm:$0xf] %vm785_vm0, %v1107_v48 }
 0x200   : > { %1313 = vrot.lane.b32.xlu1 %v3637_v54, %s3208_s12  ;;  %v1105_v24 = vpop.permute.xlu0 %1104 }
 0x201   : > { %2732 = vst.msk [vmem:[%s3460_s30 + $0x58] sm:$0xf] %vm785_vm0, %v1105_v24 }
 0x202   : > { %v1302_v25 = vpop.permute.xlu1 %1301  ;;  %1429 = vrot.lane.b32.xlu0 %v3645_v41, %s3209_s15 }
 0x203   : > { %2781 = vst.msk [vmem:[%s3460_s30 + $0x9c] sm:$0xf] %vm785_vm0, %v1302_v25 }
 0x204   : > { %1431 = vrot.lane.b32.xlu1 %v3658_v47, %s3209_s15  ;;  %v1300_v29 = vpop.permute.xlu0 %1299 }
 0x205   : > { %2780 = vst.msk [vmem:[%s3460_s30 + $0x98] sm:$0xf] %vm785_vm0, %v1300_v29 }
 0x206   : > { %v1497_v33 = vpop.permute.xlu1 %1496  ;;  %1506 = vrot.lane.b32.xlu0 %v3622_v27, %s3209_s15 }
 0x207   : > { %2829 = vst.msk [vmem:[%s3460_s30 + $0xdc] sm:$0xf] %vm785_vm0, %v1497_v33 }
 0x208   : > { %1508 = vrot.lane.b32.xlu1 %v3637_v54, %s3209_s15  ;;  %v1495_v41 = vpop.permute.xlu0 %1494 }
 0x209   : > { %2828 = vst.msk [vmem:[%s3460_s30 + $0xd8] sm:$0xf] %vm785_vm0, %v1495_v41 }
 0x20a   : > { %v1034_v51 = vpop.permute.xlu1 %1033  ;;  %974 = vrot.lane.b32.xlu0 %v3651_v44, %s3207_s28 }
 0x20b   : > { %2713 = vst.msk [vmem:[%s3485_s11 + $0x4c] sm:$0xf] %vm785_vm0, %v1034_v51 }
 0x20c   : > { %976 = vrot.lane.b32.xlu1 %v3663_v49, %s3207_s28  ;;  %v1032_v27 = vpop.permute.xlu0 %1031 }
 0x20d   : > { %2712 = vst.msk [vmem:[%s3485_s11 + $0x48] sm:$0xf] %vm785_vm0, %v1032_v27 }
 0x20e   : > { %v1103_v47 = vpop.permute.xlu1 %1102  ;;  %1169 = vrot.lane.b32.xlu0 %v3651_v44, %s3208_s12 }
 0x20f   : > { %2731 = vst.msk [vmem:[%s3460_s30 + $0x54] sm:$0xf] %vm785_vm0, %v1103_v47 }
 0x210   : > { %1171 = vrot.lane.b32.xlu1 %v3663_v49, %s3208_s12  ;;  %v1101_v54 = vpop.permute.xlu0 %1100 }
 0x211   : > { %2730 = vst.msk [vmem:[%s3460_s30 + $0x50] sm:$0xf] %vm785_vm0, %v1101_v54 }
 0x212   : > { %v1229_v62 = vpop.permute.xlu1 %1228  ;;  %1364 = vrot.lane.b32.xlu0 %v3651_v44, %s3209_s15 }
 0x213   : > { %2761 = vst.msk [vmem:[%s3485_s11 + $0x8c] sm:$0xf] %vm785_vm0, %v1229_v62 }
 0x214   : > { %1366 = vrot.lane.b32.xlu1 %v3663_v49, %s3209_s15  ;;  %v1227_v37 = vpop.permute.xlu0 %1226 }
 0x215   : > { %2760 = vst.msk [vmem:[%s3485_s11 + $0x88] sm:$0xf] %vm785_vm0, %v1227_v37 }
 0x216   : > { %v1298_v38 = vpop.permute.xlu1 %1297  ;;  %1043 = vrot.lane.b32.xlu0 %v3700_v53, %s3207_s28 }
 0x217   : > { %2779 = vst.msk [vmem:[%s3460_s30 + $0x94] sm:$0xf] %vm785_vm0, %v1298_v38 }
 0x218   : > { %1045 = vrot.lane.b32.xlu1 %v3710_v61, %s3207_s28  ;;  %v1296_v44 = vpop.permute.xlu0 %1295 }
 0x219   : > { %2778 = vst.msk [vmem:[%s3460_s30 + $0x90] sm:$0xf] %vm785_vm0, %v1296_v44 }
 0x21a   : > { %v1424_v43 = vpop.permute.xlu1 %1423  ;;  %1238 = vrot.lane.b32.xlu0 %v3700_v53, %s3208_s12 }
 0x21b   : > { %2809 = vst.msk [vmem:[%s3485_s11 + $0xcc] sm:$0xf] %vm785_vm0, %v1424_v43 }
 0x21c   : > { %1240 = vrot.lane.b32.xlu1 %v3710_v61, %s3208_s12  ;;  %v1422_v49 = vpop.permute.xlu0 %1421 }
 0x21d   : > { %2808 = vst.msk [vmem:[%s3485_s11 + $0xc8] sm:$0xf] %vm785_vm0, %v1422_v49 }
 0x21e   : > { %v1493_v46 = vpop.permute.xlu1 %1492  ;;  %1433 = vrot.lane.b32.xlu0 %v3700_v53, %s3209_s15 }
 0x21f   : > { %2827 = vst.msk [vmem:[%s3460_s30 + $0xd4] sm:$0xf] %vm785_vm0, %v1493_v46 }
 0x220   : > { %1435 = vrot.lane.b32.xlu1 %v3710_v61, %s3209_s15  ;;  %v1491_v3 = vpop.permute.xlu0 %1490 }
 0x221   : > { %2826 = vst.msk [vmem:[%s3460_s30 + $0xd0] sm:$0xf] %vm785_vm0, %v1491_v3 }
 0x222   : > { %v969_v10 = vpop.permute.xlu1 %968  ;;  %978 = vrot.lane.b32.xlu0 %v3705_v58, %s3207_s28 }
 0x223   : > { %2697 = vst.msk [vmem:[%s3494_s8 + $0x4c] sm:$0xf] %vm785_vm0, %v969_v10 }
 0x224   : > { %980 = vrot.lane.b32.xlu1 %v3717_v63, %s3207_s28  ;;  %v1162_v53 = vpop.permute.xlu0 %1161 }
 0x225   : > { %2744 = vst.msk [vmem:[%s3494_s8 + $0x88] sm:$0xf] %vm785_vm0, %v1162_v53 }
 0x226   : > { %v1164_v14 = vpop.permute.xlu1 %1163  ;;  %1173 = vrot.lane.b32.xlu0 %v3705_v58, %s3208_s12 }
 0x227   : > { %2745 = vst.msk [vmem:[%s3494_s8 + $0x8c] sm:$0xf] %vm785_vm0, %v1164_v14 }
 0x228   : > { %1175 = vrot.lane.b32.xlu1 %v3717_v63, %s3208_s12  ;;  %v1357_v61 = vpop.permute.xlu0 %1356 }
 0x229   : > { %2792 = vst.msk [vmem:[%s3494_s8 + $0xc8] sm:$0xf] %vm785_vm0, %v1357_v61 }
 0x22a   : > { %v1359_v16 = vpop.permute.xlu1 %1358  ;;  %1368 = vrot.lane.b32.xlu0 %v3705_v58, %s3209_s15 }
 0x22b   : > { %2793 = vst.msk [vmem:[%s3494_s8 + $0xcc] sm:$0xf] %vm785_vm0, %v1359_v16 }
 0x22c   : > { %1370 = vrot.lane.b32.xlu1 %v3717_v63, %s3209_s15  ;;  %v1113_v19 = vpop.permute.xlu0 %1112 }
 0x22d   : > { %2736 = vst.msk [vmem:[%s3460_s30 + $0x68] sm:$0xf] %vm785_vm0, %v1113_v19 }
 0x22e   : > { %v1115_v22 = vpop.permute.xlu1 %1114  ;;  %1047 = vrot.lane.b32.xlu0 %v3748_v11, %s3207_s28 }
 0x22f   : > { %2737 = vst.msk [vmem:[%s3460_s30 + $0x6c] sm:$0xf] %vm785_vm0, %v1115_v22 }
 0x230   : > { %1049 = vrot.lane.b32.xlu1 %v3758_v20, %s3207_s28  ;;  %v1308_v58 = vpop.permute.xlu0 %1307 }
 0x231   : > { %2784 = vst.msk [vmem:[%s3460_s30 + $0xa8] sm:$0xf] %vm785_vm0, %v1308_v58 }
 0x232   : > { %v1310_v50 = vpop.permute.xlu1 %1309  ;;  %1242 = vrot.lane.b32.xlu0 %v3748_v11, %s3208_s12 }
 0x233   : > { %2785 = vst.msk [vmem:[%s3460_s30 + $0xac] sm:$0xf] %vm785_vm0, %v1310_v50 }
 0x234   : > { %1244 = vrot.lane.b32.xlu1 %v3758_v20, %s3208_s12  ;;  %v1503_v63 = vpop.permute.xlu0 %1502 }
 0x235   : > { %2832 = vst.msk [vmem:[%s3460_s30 + $0xe8] sm:$0xf] %vm785_vm0, %v1503_v63 }
 0x236   : > { %v1505_v52 = vpop.permute.xlu1 %1504  ;;  %1437 = vrot.lane.b32.xlu0 %v3748_v11, %s3209_s15 }
 0x237   : > { %2833 = vst.msk [vmem:[%s3460_s30 + $0xec] sm:$0xf] %vm785_vm0, %v1505_v52 }
 0x238   : > { %1439 = vrot.lane.b32.xlu1 %v3758_v20, %s3209_s15  ;;  %v1036_v6 = vpop.permute.xlu0 %1035 }
 0x239   : > { %2714 = vst.msk [vmem:[%s3485_s11 + $0x50] sm:$0xf] %vm785_vm0, %v1036_v6 }
 0x23a   : > { %v1038_v59 = vpop.permute.xlu1 %1037  ;;  %982 = vrot.lane.b32.xlu0 %v3753_v15, %s3207_s28 }
 0x23b   : > { %2715 = vst.msk [vmem:[%s3485_s11 + $0x54] sm:$0xf] %vm785_vm0, %v1038_v59 }
 0x23c   : > { %984 = vrot.lane.b32.xlu1 %v3765_v45, %s3207_s28  ;;  %v1109_v11 = vpop.permute.xlu0 %1108 }
 0x23d   : > { %2734 = vst.msk [vmem:[%s3460_s30 + $0x60] sm:$0xf] %vm785_vm0, %v1109_v11 }
 0x23e   : > { %v1111_v26 = vpop.permute.xlu1 %1110  ;;  %1177 = vrot.lane.b32.xlu0 %v3753_v15, %s3208_s12 }
 0x23f   : > { %2735 = vst.msk [vmem:[%s3460_s30 + $0x64] sm:$0xf] %vm785_vm0, %v1111_v26 }
 0x240   : > { %1179 = vrot.lane.b32.xlu1 %v3765_v45, %s3208_s12  ;;  %v1231_v20 = vpop.permute.xlu0 %1230 }
 0x241   : > { %2762 = vst.msk [vmem:[%s3485_s11 + $0x90] sm:$0xf] %vm785_vm0, %v1231_v20 }
 0x242   : > { %v1233_v35 = vpop.permute.xlu1 %1232  ;;  %1372 = vrot.lane.b32.xlu0 %v3753_v15, %s3209_s15 }
 0x243   : > { %2763 = vst.msk [vmem:[%s3485_s11 + $0x94] sm:$0xf] %vm785_vm0, %v1233_v35 }
 0x244   : > { %1374 = vrot.lane.b32.xlu1 %v3765_v45, %s3209_s15  ;;  %v1304_v60 = vpop.permute.xlu0 %1303 }
 0x245   : > { %2782 = vst.msk [vmem:[%s3460_s30 + $0xa0] sm:$0xf] %vm785_vm0, %v1304_v60 }
 0x246   : > { %v1306_v0 = vpop.permute.xlu1 %1305  ;;  %1051 = vrot.lane.b32.xlu0 %v3796_v28, %s3207_s28 }
 0x247   : > { %2783 = vst.msk [vmem:[%s3460_s30 + $0xa4] sm:$0xf] %vm785_vm0, %v1306_v0 }
 0x248   : > { %1053 = vrot.lane.b32.xlu1 %v3806_v34, %s3207_s28  ;;  %v1426_v15 = vpop.permute.xlu0 %1425 }
 0x249   : > { %2810 = vst.msk [vmem:[%s3485_s11 + $0xd0] sm:$0xf] %vm785_vm0, %v1426_v15 }
 0x24a   : > { %v1428_v1 = vpop.permute.xlu1 %1427  ;;  %1246 = vrot.lane.b32.xlu0 %v3796_v28, %s3208_s12 }
 0x24b   : > { %2811 = vst.msk [vmem:[%s3485_s11 + $0xd4] sm:$0xf] %vm785_vm0, %v1428_v1 }
 0x24c   : > { %1248 = vrot.lane.b32.xlu1 %v3806_v34, %s3208_s12  ;;  %v1499_v45 = vpop.permute.xlu0 %1498 }
 0x24d   : > { %2830 = vst.msk [vmem:[%s3460_s30 + $0xe0] sm:$0xf] %vm785_vm0, %v1499_v45 }
 0x24e   : > { %v1501_v2 = vpop.permute.xlu1 %1500  ;;  %1441 = vrot.lane.b32.xlu0 %v3796_v28, %s3209_s15 }
 0x24f   : > { %2831 = vst.msk [vmem:[%s3460_s30 + $0xe4] sm:$0xf] %vm785_vm0, %v1501_v2 }
 0x250   : > { %1443 = vrot.lane.b32.xlu1 %v3806_v34, %s3209_s15  ;;  %v971_v4 = vpop.permute.xlu0 %970 }
 0x251   : > { %2698 = vst.msk [vmem:[%s3494_s8 + $0x50] sm:$0xf] %vm785_vm0, %v971_v4 }
 0x252   : > { %v973_v5 = vpop.permute.xlu1 %972  ;;  %986 = vrot.lane.b32.xlu0 %v3801_v30, %s3207_s28 }
 0x253   : > { %2699 = vst.msk [vmem:[%s3494_s8 + $0x54] sm:$0xf] %vm785_vm0, %v973_v5 }
 0x254   : > { %988 = vrot.lane.b32.xlu1 %v3813_v36, %s3207_s28  ;;  %v1166_v28 = vpop.permute.xlu0 %1165 }
 0x255   : > { %2746 = vst.msk [vmem:[%s3494_s8 + $0x90] sm:$0xf] %vm785_vm0, %v1166_v28 }
 0x256   : > { %v1168_v7 = vpop.permute.xlu1 %1167  ;;  %1181 = vrot.lane.b32.xlu0 %v3801_v30, %s3208_s12 }
 0x257   : > { %2747 = vst.msk [vmem:[%s3494_s8 + $0x94] sm:$0xf] %vm785_vm0, %v1168_v7 }
 0x258   : > { %1183 = vrot.lane.b32.xlu1 %v3813_v36, %s3208_s12  ;;  %v1361_v34 = vpop.permute.xlu0 %1360 }
 0x259   : > { %2794 = vst.msk [vmem:[%s3494_s8 + $0xd0] sm:$0xf] %vm785_vm0, %v1361_v34 }
 0x25a   : > { %v1363_v9 = vpop.permute.xlu1 %1362  ;;  %1376 = vrot.lane.b32.xlu0 %v3801_v30, %s3209_s15 }
 0x25b   : > { %2795 = vst.msk [vmem:[%s3494_s8 + $0xd4] sm:$0xf] %vm785_vm0, %v1363_v9 }
 0x25c   : > { %1378 = vrot.lane.b32.xlu1 %v3813_v36, %s3209_s15  ;;  %v1121_v8 = vpop.permute.xlu0 %1120 }
 0x25d   : > { %2740 = vst.msk [vmem:[%s3460_s30 + $0x78] sm:$0xf] %vm785_vm0, %v1121_v8 }
 0x25e   : > { %v1123_v13 = vpop.permute.xlu1 %1122  ;;  %1055 = vrot.lane.b32.xlu0 %v3858_v55, %s3207_s28 }
 0x25f   : > { %2741 = vst.msk [vmem:[%s3460_s30 + $0x7c] sm:$0xf] %vm785_vm0, %v1123_v13 }
 0x260   : > { %1057 = vrot.lane.b32.xlu1 %v3870_v57, %s3207_s28  ;;  %v1316_v30 = vpop.permute.xlu0 %1315 }
 0x261   : > { %2788 = vst.msk [vmem:[%s3460_s30 + $0xb8] sm:$0xf] %vm785_vm0, %v1316_v30 }
 0x262   : > { %v1318_v17 = vpop.permute.xlu1 %1317  ;;  %1250 = vrot.lane.b32.xlu0 %v3858_v55, %s3208_s12 }
 0x263   : > { %2789 = vst.msk [vmem:[%s3460_s30 + $0xbc] sm:$0xf] %vm785_vm0, %v1318_v17 }
 0x264   : > { %1252 = vrot.lane.b32.xlu1 %v3870_v57, %s3208_s12  ;;  %v1040_v36 = vpop.permute.xlu0 %1039 }
 0x265   : > { %2716 = vst.msk [vmem:[%s3485_s11 + $0x58] sm:$0xf] %vm785_vm0, %v1040_v36 }
 0x266   : > { %v1042_v18 = vpop.permute.xlu1 %1041  ;;  %1445 = vrot.lane.b32.xlu0 %v3858_v55, %s3209_s15 }
 0x267   : > { %2717 = vst.msk [vmem:[%s3485_s11 + $0x5c] sm:$0xf] %vm785_vm0, %v1042_v18 }
 0x268   : > { %1447 = vrot.lane.b32.xlu1 %v3870_v57, %s3209_s15  ;;  %v1117_v31 = vpop.permute.xlu0 %1116 }
 0x269   : > { %2738 = vst.msk [vmem:[%s3460_s30 + $0x70] sm:$0xf] %vm785_vm0, %v1117_v31 }
 0x26a   : > { %v1119_v39 = vpop.permute.xlu1 %1118  ;;  %990 = vrot.lane.b32.xlu0 %v3863_v12, %s3207_s28 }
 0x26b   : > { %2739 = vst.msk [vmem:[%s3460_s30 + $0x74] sm:$0xf] %vm785_vm0, %v1119_v39 }
 0x26c   : > { %992 = vrot.lane.b32.xlu1 %v3877_v56, %s3207_s28  ;;  %v1235_v55 = vpop.permute.xlu0 %1234 }
 0x26d   : > { %2764 = vst.msk [vmem:[%s3485_s11 + $0x98] sm:$0xf] %vm785_vm0, %v1235_v55  ;;  %v1582_v55 = vld [vmem:[%s3494_s8] sm:$0xff] (%p3341_p10)  }
 0x26e   : > { %v1237_v40 = vpop.permute.xlu1 %1236  ;;  %1185 = vrot.lane.b32.xlu0 %v3863_v12, %s3208_s12  ;;  %1583 = vst [vmem:[%s4329_s4] sm:$0xff] (%p3341_p10), %v1582_v55  }
 0x26f   : > { %2765 = vst.msk [vmem:[%s3485_s11 + $0x9c] sm:$0xf] %vm785_vm0, %v1237_v40  ;;  %v1586_v40 = vld [vmem:[%s3494_s8 + $0x8] sm:$0xff] (%p3341_p10)  }
 0x270   : > { %1187 = vrot.lane.b32.xlu1 %v3877_v56, %s3208_s12  ;;  %v1312_v57 = vpop.permute.xlu0 %1311  ;;  %1587 = vst [vmem:[%s4329_s4 + $0x8] sm:$0xff] (%p3341_p10), %v1586_v40  }
 0x271   : > { %2786 = vst.msk [vmem:[%s3460_s30 + $0xb0] sm:$0xf] %vm785_vm0, %v1312_v57  ;;  %v1590_v57 = vld [vmem:[%s3494_s8 + $0x10] sm:$0xff] (%p3341_p10)  }
 0x272   : > { %v1314_v42 = vpop.permute.xlu1 %1313  ;;  %1380 = vrot.lane.b32.xlu0 %v3863_v12, %s3209_s15  ;;  %1591 = vst [vmem:[%s4329_s4 + $0x10] sm:$0xff] (%p3341_p10), %v1590_v57  }
 0x273   : > { %2787 = vst.msk [vmem:[%s3460_s30 + $0xb4] sm:$0xf] %vm785_vm0, %v1314_v42  ;;  %v1594_v42 = vld [vmem:[%s3494_s8 + $0x18] sm:$0xff] (%p3341_p10)  }
 0x274   : > { %1382 = vrot.lane.b32.xlu1 %v3877_v56, %s3209_s15  ;;  %v1430_v23 = vpop.permute.xlu0 %1429  ;;  %1595 = vst [vmem:[%s4329_s4 + $0x18] sm:$0xff] (%p3341_p10), %v1594_v42  }
 0x275   : > { %2812 = vst.msk [vmem:[%s3485_s11 + $0xd8] sm:$0xf] %vm785_vm0, %v1430_v23  ;;  %v1598_v23 = vld [vmem:[%s3494_s8 + $0x20] sm:$0xff] (%p3341_p10)  }
 0x276   : > { %v1432_v48 = vpop.permute.xlu1 %1431  ;;  %1510 = vrot.lane.b32.xlu0 %v3616_v21, %s3209_s15  ;;  %1599 = vst [vmem:[%s4329_s4 + $0x20] sm:$0xff] (%p3341_p10), %v1598_v23  }
 0x277   : > { %2813 = vst.msk [vmem:[%s3485_s11 + $0xdc] sm:$0xf] %vm785_vm0, %v1432_v48  ;;  %v1602_v48 = vld [vmem:[%s3494_s8 + $0x28] sm:$0xff] (%p3341_p10)  }
 0x278   : > { %1512 = vrot.lane.b32.xlu1 %v3631_v32, %s3209_s15  ;;  %v1507_v12 = vpop.permute.xlu0 %1506  ;;  %1603 = vst [vmem:[%s4329_s4 + $0x28] sm:$0xff] (%p3341_p10), %v1602_v48  }
 0x279   : > { %2834 = vst.msk [vmem:[%s3460_s30 + $0xf0] sm:$0xf] %vm785_vm0, %v1507_v12  ;;  %v1606_v12 = vld [vmem:[%s3494_s8 + $0x30] sm:$0xff] (%p3341_p10)  }
 0x27a   : > { %v1509_v56 = vpop.permute.xlu1 %1508  ;;  %1607 = vst [vmem:[%s4329_s4 + $0x30] sm:$0xff] (%p3341_p10), %v1606_v12  }
 0x27b   : > { %2835 = vst.msk [vmem:[%s3460_s30 + $0xf4] sm:$0xf] %vm785_vm0, %v1509_v56  ;;  %v1610_v56 = vld [vmem:[%s3494_s8 + $0x38] sm:$0xff] (%p3341_p10)  }
 0x27c   : > { %v975_v24 = vpop.permute.xlu0 %974  ;;  %1611 = vst [vmem:[%s4329_s4 + $0x38] sm:$0xff] (%p3341_p10), %v1610_v56  }
 0x27d   : > { %2700 = vst.msk [vmem:[%s3494_s8 + $0x58] sm:$0xf] %vm785_vm0, %v975_v24  ;;  %v1614_v24 = vld [vmem:[%s3494_s8 + $0x40] sm:$0xff] (%p3341_p10)  }
 0x27e   : > { %v977_v21 = vpop.permute.xlu1 %976  ;;  %1615 = vst [vmem:[%s4329_s4 + $0x80] sm:$0xff] (%p3341_p10), %v1614_v24  }
 0x27f   : > { %2701 = vst.msk [vmem:[%s3494_s8 + $0x5c] sm:$0xf] %vm785_vm0, %v977_v21  ;;  %v1618_v21 = vld [vmem:[%s3494_s8 + $0x48] sm:$0xff] (%p3341_p10)  }
 0x280   : > { %v1170_v25 = vpop.permute.xlu0 %1169  ;;  %1619 = vst [vmem:[%s4329_s4 + $0x88] sm:$0xff] (%p3341_p10), %v1618_v21  }
 0x281   : > { %2748 = vst.msk [vmem:[%s3494_s8 + $0x98] sm:$0xf] %vm785_vm0, %v1170_v25  ;;  %v1622_v25 = vld [vmem:[%s3494_s8 + $0x50] sm:$0xff] (%p3341_p10)  }
 0x282   : > { %v1172_v32 = vpop.permute.xlu1 %1171  ;;  %1623 = vst [vmem:[%s4329_s4 + $0x90] sm:$0xff] (%p3341_p10), %v1622_v25  }
 0x283   : > { %2749 = vst.msk [vmem:[%s3494_s8 + $0x9c] sm:$0xf] %vm785_vm0, %v1172_v32 }
 0x284   : > { %v1365_v29 = vpop.permute.xlu0 %1364 }
 0x285   : > { %2796 = vst.msk [vmem:[%s3494_s8 + $0xd8] sm:$0xf] %vm785_vm0, %v1365_v29 }
 0x286   : > { %v1367_v33 = vpop.permute.xlu1 %1366  ;;  %v1626_v32 = vld [vmem:[%s3494_s8 + $0x58] sm:$0xff] (%p3341_p10)  }
 0x287   : > { %2797 = vst.msk [vmem:[%s3494_s8 + $0xdc] sm:$0xf] %vm785_vm0, %v1367_v33  ;;  %1627 = vst [vmem:[%s4329_s4 + $0x98] sm:$0xff] (%p3341_p10), %v1626_v32  }
 0x288   : > { %v1044_v41 = vpop.permute.xlu0 %1043 }
 0x289   : > { %2718 = vst.msk [vmem:[%s3485_s11 + $0x60] sm:$0xf] %vm785_vm0, %v1044_v41 }
 0x28a   : > { %v1046_v51 = vpop.permute.xlu1 %1045 }
 0x28b   : > { %2719 = vst.msk [vmem:[%s3485_s11 + $0x64] sm:$0xf] %vm785_vm0, %v1046_v51 }
 0x28c   : > { %v1239_v27 = vpop.permute.xlu0 %1238 }
 0x28d   : > { %2766 = vst.msk [vmem:[%s3485_s11 + $0xa0] sm:$0xf] %vm785_vm0, %v1239_v27  ;;  %v1646_v27 = vld [vmem:[%s3494_s8 + $0x80] sm:$0xff] (%p3341_p10)  }
 0x28e   : > { %v1241_v47 = vpop.permute.xlu1 %1240  ;;  %1647 = vst [vmem:[%s4329_s4 + $0x100] sm:$0xff] (%p3341_p10), %v1646_v27  }
 0x28f   : > { %2767 = vst.msk [vmem:[%s3485_s11 + $0xa4] sm:$0xf] %vm785_vm0, %v1241_v47  ;;  %v1650_v47 = vld [vmem:[%s3494_s8 + $0x88] sm:$0xff] (%p3341_p10)  }
 0x290   : > { %v1434_v54 = vpop.permute.xlu0 %1433  ;;  %1651 = vst [vmem:[%s4329_s4 + $0x108] sm:$0xff] (%p3341_p10), %v1650_v47  }
 0x291   : > { %2814 = vst.msk [vmem:[%s3485_s11 + $0xe0] sm:$0xf] %vm785_vm0, %v1434_v54  ;;  %v1654_v54 = vld [vmem:[%s3494_s8 + $0x90] sm:$0xff] (%p3341_p10)  }
 0x292   : > { %v1436_v62 = vpop.permute.xlu1 %1435  ;;  %1655 = vst [vmem:[%s4329_s4 + $0x110] sm:$0xff] (%p3341_p10), %v1654_v54  }
 0x293   : > { %2815 = vst.msk [vmem:[%s3485_s11 + $0xe4] sm:$0xf] %vm785_vm0, %v1436_v62  ;;  %v1658_v62 = vld [vmem:[%s3494_s8 + $0x98] sm:$0xff] (%p3341_p10)  }
 0x294   : > { %v979_v37 = vpop.permute.xlu0 %978  ;;  %1659 = vst [vmem:[%s4329_s4 + $0x118] sm:$0xff] (%p3341_p10), %v1658_v62  }
 0x295   : > { %2702 = vst.msk [vmem:[%s3494_s8 + $0x60] sm:$0xf] %vm785_vm0, %v979_v37 }
 0x296   : > { %v981_v38 = vpop.permute.xlu1 %980 }
 0x297   : > { %2703 = vst.msk [vmem:[%s3494_s8 + $0x64] sm:$0xf] %vm785_vm0, %v981_v38 }
 0x298   : > { %v1174_v44 = vpop.permute.xlu0 %1173 }
 0x299   : > { %2750 = vst.msk [vmem:[%s3494_s8 + $0xa0] sm:$0xf] %vm785_vm0, %v1174_v44 }
 0x29a   : > { %v1176_v43 = vpop.permute.xlu1 %1175 }
 0x29b   : > { %2751 = vst.msk [vmem:[%s3494_s8 + $0xa4] sm:$0xf] %vm785_vm0, %v1176_v43 }
 0x29c   : > { %v1369_v49 = vpop.permute.xlu0 %1368 }
 0x29d   : > { %2798 = vst.msk [vmem:[%s3494_s8 + $0xe0] sm:$0xf] %vm785_vm0, %v1369_v49  ;;  %v1678_v49 = vld [vmem:[%s3494_s8 + $0xc0] sm:$0xff] (%p3341_p10)  }
 0x29e   : > { %v1371_v46 = vpop.permute.xlu1 %1370  ;;  %v1630_v29 = vld [vmem:[%s3494_s8 + $0x60] sm:$0xff] (%p3341_p10)   ;;  %1679 = vst [vmem:[%s4329_s4 + $0x180] sm:$0xff] (%p3341_p10), %v1678_v49  }
 0x29f   : > { %2799 = vst.msk [vmem:[%s3494_s8 + $0xe4] sm:$0xf] %vm785_vm0, %v1371_v46  ;;  %1631 = vst [vmem:[%s4329_s4 + $0xa0] sm:$0xff] (%p3341_p10), %v1630_v29   ;;  %v1682_v46 = vld [vmem:[%s3494_s8 + $0xc8] sm:$0xff] (%p3341_p10)  }
 0x2a0   : > { %v1048_v3 = vpop.permute.xlu0 %1047  ;;  %1683 = vst [vmem:[%s4329_s4 + $0x188] sm:$0xff] (%p3341_p10), %v1682_v46  }
 0x2a1   : > { %2720 = vst.msk [vmem:[%s3485_s11 + $0x68] sm:$0xf] %vm785_vm0, %v1048_v3  ;;  %v1686_v3 = vld [vmem:[%s3494_s8 + $0xd0] sm:$0xff] (%p3341_p10)  }
 0x2a2   : > { %v1050_v10 = vpop.permute.xlu1 %1049  ;;  %v1662_v37 = vld [vmem:[%s3494_s8 + $0xa0] sm:$0xff] (%p3341_p10)   ;;  %1687 = vst [vmem:[%s4329_s4 + $0x190] sm:$0xff] (%p3341_p10), %v1686_v3  }
 0x2a3   : > { %2721 = vst.msk [vmem:[%s3485_s11 + $0x6c] sm:$0xf] %vm785_vm0, %v1050_v10  ;;  %1663 = vst [vmem:[%s4329_s4 + $0x120] sm:$0xff] (%p3341_p10), %v1662_v37   ;;  %v1690_v10 = vld [vmem:[%s3494_s8 + $0xd8] sm:$0xff] (%p3341_p10)  }
 0x2a4   : > { %v1243_v53 = vpop.permute.xlu0 %1242  ;;  %1691 = vst [vmem:[%s4329_s4 + $0x198] sm:$0xff] (%p3341_p10), %v1690_v10  }
 0x2a5   : > { %2768 = vst.msk [vmem:[%s3485_s11 + $0xa8] sm:$0xf] %vm785_vm0, %v1243_v53 }
 0x2a6   : > { %v1245_v14 = vpop.permute.xlu1 %1244  ;;  %v1694_v53 = vld [vmem:[%s3494_s8 + $0xe0] sm:$0xff] (%p3341_p10)  }
 0x2a7   : > { %2769 = vst.msk [vmem:[%s3485_s11 + $0xac] sm:$0xf] %vm785_vm0, %v1245_v14  ;;  %1695 = vst [vmem:[%s4329_s4 + $0x1a0] sm:$0xff] (%p3341_p10), %v1694_v53  }
 0x2a8   : > { %v1438_v61 = vpop.permute.xlu0 %1437 }
 0x2a9   : > { %2816 = vst.msk [vmem:[%s3485_s11 + $0xe8] sm:$0xf] %vm785_vm0, %v1438_v61 }
 0x2aa   : > { %v1440_v16 = vpop.permute.xlu1 %1439 }
 0x2ab   : > { %2817 = vst.msk [vmem:[%s3485_s11 + $0xec] sm:$0xf] %vm785_vm0, %v1440_v16 }
 0x2ac   : > { %v983_v19 = vpop.permute.xlu0 %982 }
 0x2ad   : > { %2704 = vst.msk [vmem:[%s3494_s8 + $0x68] sm:$0xf] %vm785_vm0, %v983_v19 }
 0x2ae   : > { %v985_v22 = vpop.permute.xlu1 %984 }
 0x2af   : > { %2705 = vst.msk [vmem:[%s3494_s8 + $0x6c] sm:$0xf] %vm785_vm0, %v985_v22 }
 0x2b0   : > { %v1178_v58 = vpop.permute.xlu0 %1177 }
 0x2b1   : > { %2752 = vst.msk [vmem:[%s3494_s8 + $0xa8] sm:$0xf] %vm785_vm0, %v1178_v58 }
 0x2b2   : > { %v1180_v50 = vpop.permute.xlu1 %1179 }
 0x2b3   : > { %2753 = vst.msk [vmem:[%s3494_s8 + $0xac] sm:$0xf] %vm785_vm0, %v1180_v50 }
 0x2b4   : > { %v1373_v63 = vpop.permute.xlu0 %1372 }
 0x2b5   : > { %2800 = vst.msk [vmem:[%s3494_s8 + $0xe8] sm:$0xf] %vm785_vm0, %v1373_v63 }
 0x2b6   : > { %v1375_v52 = vpop.permute.xlu1 %1374  ;;  %v1634_v33 = vld [vmem:[%s3494_s8 + $0x68] sm:$0xff] (%p3341_p10)  }
 0x2b7   : > { %2801 = vst.msk [vmem:[%s3494_s8 + $0xec] sm:$0xf] %vm785_vm0, %v1375_v52  ;;  %1635 = vst [vmem:[%s4329_s4 + $0xa8] sm:$0xff] (%p3341_p10), %v1634_v33  }
 0x2b8   : > { %v1052_v6 = vpop.permute.xlu0 %1051 }
 0x2b9   : > { %2722 = vst.msk [vmem:[%s3485_s11 + $0x70] sm:$0xf] %vm785_vm0, %v1052_v6 }
 0x2ba   : > { %v1054_v59 = vpop.permute.xlu1 %1053  ;;  %v1666_v38 = vld [vmem:[%s3494_s8 + $0xa8] sm:$0xff] (%p3341_p10)  }
 0x2bb   : > { %2723 = vst.msk [vmem:[%s3485_s11 + $0x74] sm:$0xf] %vm785_vm0, %v1054_v59  ;;  %1667 = vst [vmem:[%s4329_s4 + $0x128] sm:$0xff] (%p3341_p10), %v1666_v38  }
 0x2bc   : > { %v1247_v11 = vpop.permute.xlu0 %1246 }
 0x2bd   : > { %2770 = vst.msk [vmem:[%s3485_s11 + $0xb0] sm:$0xf] %vm785_vm0, %v1247_v11 }
 0x2be   : > { %v1249_v26 = vpop.permute.xlu1 %1248  ;;  %v1698_v14 = vld [vmem:[%s3494_s8 + $0xe8] sm:$0xff] (%p3341_p10)  }
 0x2bf   : > { %2771 = vst.msk [vmem:[%s3485_s11 + $0xb4] sm:$0xf] %vm785_vm0, %v1249_v26  ;;  %1699 = vst [vmem:[%s4329_s4 + $0x1a8] sm:$0xff] (%p3341_p10), %v1698_v14  }
 0x2c0   : > { %v1442_v20 = vpop.permute.xlu0 %1441 }
 0x2c1   : > { %2818 = vst.msk [vmem:[%s3485_s11 + $0xf0] sm:$0xf] %vm785_vm0, %v1442_v20 }
 0x2c2   : > { %v1444_v35 = vpop.permute.xlu1 %1443 }
 0x2c3   : > { %2819 = vst.msk [vmem:[%s3485_s11 + $0xf4] sm:$0xf] %vm785_vm0, %v1444_v35 }
 0x2c4   : > { %v987_v60 = vpop.permute.xlu0 %986 }
 0x2c5   : > { %2706 = vst.msk [vmem:[%s3494_s8 + $0x70] sm:$0xf] %vm785_vm0, %v987_v60 }
 0x2c6   : > { %v989_v0 = vpop.permute.xlu1 %988 }
 0x2c7   : > { %2707 = vst.msk [vmem:[%s3494_s8 + $0x74] sm:$0xf] %vm785_vm0, %v989_v0 }
 0x2c8   : > { %v1182_v15 = vpop.permute.xlu0 %1181 }
 0x2c9   : > { %2754 = vst.msk [vmem:[%s3494_s8 + $0xb0] sm:$0xf] %vm785_vm0, %v1182_v15 }
 0x2ca   : > { %v1184_v1 = vpop.permute.xlu1 %1183 }
 0x2cb   : > { %2755 = vst.msk [vmem:[%s3494_s8 + $0xb4] sm:$0xf] %vm785_vm0, %v1184_v1 }
 0x2cc   : > { %v1377_v45 = vpop.permute.xlu0 %1376 }
 0x2cd   : > { %2802 = vst.msk [vmem:[%s3494_s8 + $0xf0] sm:$0xf] %vm785_vm0, %v1377_v45 }
 0x2ce   : > { %v1379_v2 = vpop.permute.xlu1 %1378  ;;  %v1638_v41 = vld [vmem:[%s3494_s8 + $0x70] sm:$0xff] (%p3341_p10)  }
 0x2cf   : > { %2803 = vst.msk [vmem:[%s3494_s8 + $0xf4] sm:$0xf] %vm785_vm0, %v1379_v2  ;;  %1639 = vst [vmem:[%s4329_s4 + $0xb0] sm:$0xff] (%p3341_p10), %v1638_v41  }
 0x2d0   : > { %v1056_v4 = vpop.permute.xlu0 %1055 }
 0x2d1   : > { %2724 = vst.msk [vmem:[%s3485_s11 + $0x78] sm:$0xf] %vm785_vm0, %v1056_v4 }
 0x2d2   : > { %v1058_v5 = vpop.permute.xlu1 %1057  ;;  %v1670_v44 = vld [vmem:[%s3494_s8 + $0xb0] sm:$0xff] (%p3341_p10)  }
 0x2d3   : > { %2725 = vst.msk [vmem:[%s3485_s11 + $0x7c] sm:$0xf] %vm785_vm0, %v1058_v5  ;;  %1671 = vst [vmem:[%s4329_s4 + $0x130] sm:$0xff] (%p3341_p10), %v1670_v44  }
 0x2d4   : > { %v1251_v28 = vpop.permute.xlu0 %1250 }
 0x2d5   : > { %2772 = vst.msk [vmem:[%s3485_s11 + $0xb8] sm:$0xf] %vm785_vm0, %v1251_v28 }
 0x2d6   : > { %v1253_v7 = vpop.permute.xlu1 %1252  ;;  %v1702_v61 = vld [vmem:[%s3494_s8 + $0xf0] sm:$0xff] (%p3341_p10)  }
 0x2d7   : > { %2773 = vst.msk [vmem:[%s3485_s11 + $0xbc] sm:$0xf] %vm785_vm0, %v1253_v7  ;;  %1703 = vst [vmem:[%s4329_s4 + $0x1b0] sm:$0xff] (%p3341_p10), %v1702_v61  }
 0x2d8   : > { %v1446_v34 = vpop.permute.xlu0 %1445 }
 0x2d9   : > { %2820 = vst.msk [vmem:[%s3485_s11 + $0xf8] sm:$0xf] %vm785_vm0, %v1446_v34 }
 0x2da   : > { %v1448_v9 = vpop.permute.xlu1 %1447 }
 0x2db   : > { %2821 = vst.msk [vmem:[%s3485_s11 + $0xfc] sm:$0xf] %vm785_vm0, %v1448_v9 }
 0x2dc   : > { %v991_v8 = vpop.permute.xlu0 %990 }
 0x2dd   : > { %2708 = vst.msk [vmem:[%s3494_s8 + $0x78] sm:$0xf] %vm785_vm0, %v991_v8 }
 0x2de   : > { %v993_v13 = vpop.permute.xlu1 %992 }
 0x2df   : > { %2709 = vst.msk [vmem:[%s3494_s8 + $0x7c] sm:$0xf] %vm785_vm0, %v993_v13 }
 0x2e0   : > { %v1186_v30 = vpop.permute.xlu0 %1185 }
 0x2e1   : > { %2756 = vst.msk [vmem:[%s3494_s8 + $0xb8] sm:$0xf] %vm785_vm0, %v1186_v30 }
 0x2e2   : > { %v1188_v17 = vpop.permute.xlu1 %1187 }
 0x2e3   : > { %2757 = vst.msk [vmem:[%s3494_s8 + $0xbc] sm:$0xf] %vm785_vm0, %v1188_v17 }
 0x2e4   : > { %v1381_v36 = vpop.permute.xlu0 %1380 }
 0x2e5   : > { %2804 = vst.msk [vmem:[%s3494_s8 + $0xf8] sm:$0xf] %vm785_vm0, %v1381_v36  ;;  %1561 = sbr.rel (!%p3341_p10) target bundleno = 752 (0x2f0), region = 44 }
 0x2e6   : > { %v1383_v18 = vpop.permute.xlu1 %1382  ;;  %v1642_v51 = vld [vmem:[%s3494_s8 + $0x78] sm:$0xff] (%p3341_p10)  }
 0x2e7   : > { %2805 = vst.msk [vmem:[%s3494_s8 + $0xfc] sm:$0xf] %vm785_vm0, %v1383_v18  ;;  %1643 = vst [vmem:[%s4329_s4 + $0xb8] sm:$0xff] (%p3341_p10), %v1642_v51  }
 0x2e8   : > { %v1511_v31 = vpop.permute.xlu0 %1510 }
 0x2e9   : > { %2836 = vst.msk [vmem:[%s3460_s30 + $0xf8] sm:$0xf] %vm785_vm0, %v1511_v31 }
 0x2ea   : > { %v1513_v39 = vpop.permute.xlu1 %1512  ;;  %v1674_v43 = vld [vmem:[%s3494_s8 + $0xb8] sm:$0xff] (%p3341_p10)  }
 0x2eb   : > { %2837 = vst.msk [vmem:[%s3460_s30 + $0xfc] sm:$0xf] %vm785_vm0, %v1513_v39  ;;  %1675 = vst [vmem:[%s4329_s4 + $0x138] sm:$0xff] (%p3341_p10), %v1674_v43  }
 0x2ee   : > { %v1706_v16 = vld [vmem:[%s3494_s8 + $0xf8] sm:$0xff]  }
 0x2ef   : > { %1707 = vst [vmem:[%s4329_s4 + $0x1b8] sm:$0xff] %v1706_v16  }
 0x2f0 PF: > { %1860 = sbr.rel (!%p3341_p10) target bundleno = 776 (0x308), region = 85  ;;  %s2844_s5 = sshll.u32 (%p3341_p10), %s3182_s21, 4  ;;  %v1881_v19 = vld [vmem:[%s3485_s11] sm:$0xff] (%p3341_p10)   ;;  %v1885_v22 = vld [vmem:[%s3485_s11 + $0x8] sm:$0xff] (%p3341_p10)   ;;  %v1889_v58 = vld [vmem:[%s3485_s11 + $0x10] sm:$0xff] (%p3341_p10)  }
 0x2f1   : > { %s2845_s9 = sshll.u32 (%p3341_p10), %s3186_s22, 7  ;;  %v1893_v50 = vld [vmem:[%s3485_s11 + $0x18] sm:$0xff] (%p3341_p10)   ;;  %v1897_v63 = vld [vmem:[%s3485_s11 + $0x20] sm:$0xff] (%p3341_p10)   ;;  %v1901_v52 = vld [vmem:[%s3485_s11 + $0x28] sm:$0xff] (%p3341_p10)   ;;  %s4586_s12 = sld [smem:[#allocation14_spill]] (%p3341_p10) }
 0x2f2   : > { %s1863_s3 = sadd.s32 (%p3341_p10), %s2845_s9, %s2844_s5  ;;  %v1905_v6 = vld [vmem:[%s3485_s11 + $0x30] sm:$0xff] (%p3341_p10)   ;;  %v1909_v59 = vld [vmem:[%s3485_s11 + $0x38] sm:$0xff] (%p3341_p10)   ;;  %v1913_v11 = vld [vmem:[%s3485_s11 + $0x40] sm:$0xff] (%p3341_p10)  }
 0x2f3   : > { %s2846_s27 = sshll.u32 (%p3341_p10), %s1863_s3, 2  ;;  %v1917_v26 = vld [vmem:[%s3485_s11 + $0x48] sm:$0xff] (%p3341_p10)   ;;  %v1921_v20 = vld [vmem:[%s3485_s11 + $0x50] sm:$0xff] (%p3341_p10)   ;;  %v1925_v35 = vld [vmem:[%s3485_s11 + $0x58] sm:$0xff] (%p3341_p10)  }
 0x2f4   : > { %v1929_v60 = vld [vmem:[%s3485_s11 + $0x60] sm:$0xff] (%p3341_p10)   ;;  %v1933_v0 = vld [vmem:[%s3485_s11 + $0x68] sm:$0xff] (%p3341_p10)   ;;  %v1937_v15 = vld [vmem:[%s3485_s11 + $0x70] sm:$0xff] (%p3341_p10)  }
 0x2f5   : > { %v1941_v1 = vld [vmem:[%s3485_s11 + $0x78] sm:$0xff] (%p3341_p10)   ;;  %v1945_v45 = vld [vmem:[%s3485_s11 + $0x80] sm:$0xff] (%p3341_p10)   ;;  %v1949_v2 = vld [vmem:[%s3485_s11 + $0x88] sm:$0xff] (%p3341_p10)  }
 0x2f6   : > { %v1953_v4 = vld [vmem:[%s3485_s11 + $0x90] sm:$0xff] (%p3341_p10)   ;;  %v1957_v5 = vld [vmem:[%s3485_s11 + $0x98] sm:$0xff] (%p3341_p10)   ;;  %v1961_v28 = vld [vmem:[%s3485_s11 + $0xa0] sm:$0xff] (%p3341_p10)  }
 0x2f7   : > { %s4402_s8 = scalar_lea.vmem %s4586_s12, %s2846_s27  ;;  %v1965_v7 = vld [vmem:[%s3485_s11 + $0xa8] sm:$0xff]   ;;  %v1969_v34 = vld [vmem:[%s3485_s11 + $0xb0] sm:$0xff]   ;;  %v1973_v9 = vld [vmem:[%s3485_s11 + $0xb8] sm:$0xff]  }
 0x2f8   : > { %1882 = vst [vmem:[%s4402_s8] sm:$0xff] %v1881_v19   ;;  %1886 = vst [vmem:[%s4402_s8 + $0x8] sm:$0xff] %v1885_v22   ;;  %v1977_v8 = vld [vmem:[%s3485_s11 + $0xc0] sm:$0xff]   ;;  %v1981_v13 = vld [vmem:[%s3485_s11 + $0xc8] sm:$0xff]  }
 0x2f9   : > { %1890 = vst [vmem:[%s4402_s8 + $0x10] sm:$0xff] %v1889_v58   ;;  %1894 = vst [vmem:[%s4402_s8 + $0x18] sm:$0xff] %v1893_v50   ;;  %v1985_v30 = vld [vmem:[%s3485_s11 + $0xd0] sm:$0xff]   ;;  %v1989_v17 = vld [vmem:[%s3485_s11 + $0xd8] sm:$0xff]  }
 0x2fa   : > { %1898 = vst [vmem:[%s4402_s8 + $0x20] sm:$0xff] %v1897_v63   ;;  %1902 = vst [vmem:[%s4402_s8 + $0x28] sm:$0xff] %v1901_v52   ;;  %v1993_v36 = vld [vmem:[%s3485_s11 + $0xe0] sm:$0xff]   ;;  %v1997_v18 = vld [vmem:[%s3485_s11 + $0xe8] sm:$0xff]  }
 0x2fb   : > { %1906 = vst [vmem:[%s4402_s8 + $0x30] sm:$0xff] %v1905_v6   ;;  %1910 = vst [vmem:[%s4402_s8 + $0x38] sm:$0xff] %v1909_v59   ;;  %v2001_v31 = vld [vmem:[%s3485_s11 + $0xf0] sm:$0xff]   ;;  %v2005_v39 = vld [vmem:[%s3485_s11 + $0xf8] sm:$0xff]  }
 0x2fc   : > { %1914 = vst [vmem:[%s4402_s8 + $0x80] sm:$0xff] %v1913_v11   ;;  %1918 = vst [vmem:[%s4402_s8 + $0x88] sm:$0xff] %v1917_v26  }
 0x2fd   : > { %1922 = vst [vmem:[%s4402_s8 + $0x90] sm:$0xff] %v1921_v20   ;;  %1926 = vst [vmem:[%s4402_s8 + $0x98] sm:$0xff] %v1925_v35  }
 0x2fe   : > { %1930 = vst [vmem:[%s4402_s8 + $0xa0] sm:$0xff] %v1929_v60   ;;  %1934 = vst [vmem:[%s4402_s8 + $0xa8] sm:$0xff] %v1933_v0  }
 0x2ff   : > { %1938 = vst [vmem:[%s4402_s8 + $0xb0] sm:$0xff] %v1937_v15   ;;  %1942 = vst [vmem:[%s4402_s8 + $0xb8] sm:$0xff] %v1941_v1  }
 0x300   : > { %1946 = vst [vmem:[%s4402_s8 + $0x100] sm:$0xff] %v1945_v45   ;;  %1950 = vst [vmem:[%s4402_s8 + $0x108] sm:$0xff] %v1949_v2  }
 0x301   : > { %1954 = vst [vmem:[%s4402_s8 + $0x110] sm:$0xff] %v1953_v4   ;;  %1958 = vst [vmem:[%s4402_s8 + $0x118] sm:$0xff] %v1957_v5  }
 0x302   : > { %1962 = vst [vmem:[%s4402_s8 + $0x120] sm:$0xff] %v1961_v28   ;;  %1966 = vst [vmem:[%s4402_s8 + $0x128] sm:$0xff] %v1965_v7  }
 0x303   : > { %1970 = vst [vmem:[%s4402_s8 + $0x130] sm:$0xff] %v1969_v34   ;;  %1974 = vst [vmem:[%s4402_s8 + $0x138] sm:$0xff] %v1973_v9  }
 0x304   : > { %1978 = vst [vmem:[%s4402_s8 + $0x180] sm:$0xff] %v1977_v8   ;;  %1982 = vst [vmem:[%s4402_s8 + $0x188] sm:$0xff] %v1981_v13  }
 0x305   : > { %1986 = vst [vmem:[%s4402_s8 + $0x190] sm:$0xff] %v1985_v30   ;;  %1990 = vst [vmem:[%s4402_s8 + $0x198] sm:$0xff] %v1989_v17  }
 0x306   : > { %1994 = vst [vmem:[%s4402_s8 + $0x1a0] sm:$0xff] %v1993_v36   ;;  %1998 = vst [vmem:[%s4402_s8 + $0x1a8] sm:$0xff] %v1997_v18  }
 0x307   : > { %2002 = vst [vmem:[%s4402_s8 + $0x1b0] sm:$0xff] %v2001_v31   ;;  %2006 = vst [vmem:[%s4402_s8 + $0x1b8] sm:$0xff] %v2005_v39  }
 0x308 PF: > { %2159 = sbr.rel (!%p3341_p10) target bundleno = 800 (0x320), region = 126  ;;  %s2847_s11 = sshll.u32 (%p3341_p10), %s3182_s21, 4  ;;  %v2180_v55 = vld [vmem:[%s3460_s30] sm:$0xff] (%p3341_p10)   ;;  %v2184_v40 = vld [vmem:[%s3460_s30 + $0x8] sm:$0xff] (%p3341_p10)   ;;  %v2188_v57 = vld [vmem:[%s3460_s30 + $0x10] sm:$0xff] (%p3341_p10)  }
 0x309   : > { %s2848_s15 = sshll.u32 (%p3341_p10), %s3186_s22, 7  ;;  %v2192_v42 = vld [vmem:[%s3460_s30 + $0x18] sm:$0xff] (%p3341_p10)   ;;  %v2196_v23 = vld [vmem:[%s3460_s30 + $0x20] sm:$0xff] (%p3341_p10)   ;;  %v2200_v48 = vld [vmem:[%s3460_s30 + $0x28] sm:$0xff] (%p3341_p10)   ;;  %s4587_s18 = sld [smem:[#allocation15_spill]] (%p3341_p10) }
 0x30a   : > { %s2162_s7 = sadd.s32 (%p3341_p10), %s2848_s15, %s2847_s11  ;;  %v2204_v12 = vld [vmem:[%s3460_s30 + $0x30] sm:$0xff] (%p3341_p10)   ;;  %v2208_v56 = vld [vmem:[%s3460_s30 + $0x38] sm:$0xff] (%p3341_p10)   ;;  %v2212_v24 = vld [vmem:[%s3460_s30 + $0x40] sm:$0xff] (%p3341_p10)  }
 0x30b   : > { %s2849_s13 = sshll.u32 (%p3341_p10), %s2162_s7, 2  ;;  %v2216_v21 = vld [vmem:[%s3460_s30 + $0x48] sm:$0xff] (%p3341_p10)   ;;  %v2220_v25 = vld [vmem:[%s3460_s30 + $0x50] sm:$0xff] (%p3341_p10)   ;;  %v2224_v32 = vld [vmem:[%s3460_s30 + $0x58] sm:$0xff] (%p3341_p10)  }
 0x30c   : > { %v2228_v29 = vld [vmem:[%s3460_s30 + $0x60] sm:$0xff] (%p3341_p10)   ;;  %v2232_v33 = vld [vmem:[%s3460_s30 + $0x68] sm:$0xff] (%p3341_p10)   ;;  %v2236_v41 = vld [vmem:[%s3460_s30 + $0x70] sm:$0xff] (%p3341_p10)  }
 0x30d   : > { %v2240_v51 = vld [vmem:[%s3460_s30 + $0x78] sm:$0xff] (%p3341_p10)   ;;  %v2244_v27 = vld [vmem:[%s3460_s30 + $0x80] sm:$0xff] (%p3341_p10)   ;;  %v2248_v47 = vld [vmem:[%s3460_s30 + $0x88] sm:$0xff] (%p3341_p10)  }
 0x30e   : > { %v2252_v54 = vld [vmem:[%s3460_s30 + $0x90] sm:$0xff] (%p3341_p10)   ;;  %v2256_v62 = vld [vmem:[%s3460_s30 + $0x98] sm:$0xff] (%p3341_p10)   ;;  %v2260_v37 = vld [vmem:[%s3460_s30 + $0xa0] sm:$0xff] (%p3341_p10)  }
 0x30f   : > { %s4475_s26 = scalar_lea.vmem %s4587_s18, %s2849_s13  ;;  %v2264_v38 = vld [vmem:[%s3460_s30 + $0xa8] sm:$0xff]   ;;  %v2268_v44 = vld [vmem:[%s3460_s30 + $0xb0] sm:$0xff]   ;;  %v2272_v43 = vld [vmem:[%s3460_s30 + $0xb8] sm:$0xff]  }
 0x310   : > { %2181 = vst [vmem:[%s4475_s26] sm:$0xff] %v2180_v55   ;;  %2185 = vst [vmem:[%s4475_s26 + $0x8] sm:$0xff] %v2184_v40   ;;  %v2276_v49 = vld [vmem:[%s3460_s30 + $0xc0] sm:$0xff]   ;;  %v2280_v46 = vld [vmem:[%s3460_s30 + $0xc8] sm:$0xff]  }
 0x311   : > { %2189 = vst [vmem:[%s4475_s26 + $0x10] sm:$0xff] %v2188_v57   ;;  %2193 = vst [vmem:[%s4475_s26 + $0x18] sm:$0xff] %v2192_v42   ;;  %v2284_v3 = vld [vmem:[%s3460_s30 + $0xd0] sm:$0xff]   ;;  %v2288_v10 = vld [vmem:[%s3460_s30 + $0xd8] sm:$0xff]  }
 0x312   : > { %2197 = vst [vmem:[%s4475_s26 + $0x20] sm:$0xff] %v2196_v23   ;;  %2201 = vst [vmem:[%s4475_s26 + $0x28] sm:$0xff] %v2200_v48   ;;  %v2292_v53 = vld [vmem:[%s3460_s30 + $0xe0] sm:$0xff]   ;;  %v2296_v14 = vld [vmem:[%s3460_s30 + $0xe8] sm:$0xff]  }
 0x313   : > { %2205 = vst [vmem:[%s4475_s26 + $0x30] sm:$0xff] %v2204_v12   ;;  %2209 = vst [vmem:[%s4475_s26 + $0x38] sm:$0xff] %v2208_v56   ;;  %v2300_v61 = vld [vmem:[%s3460_s30 + $0xf0] sm:$0xff]   ;;  %v2304_v16 = vld [vmem:[%s3460_s30 + $0xf8] sm:$0xff]  }
 0x314   : > { %2213 = vst [vmem:[%s4475_s26 + $0x80] sm:$0xff] %v2212_v24   ;;  %2217 = vst [vmem:[%s4475_s26 + $0x88] sm:$0xff] %v2216_v21  }
 0x315   : > { %2221 = vst [vmem:[%s4475_s26 + $0x90] sm:$0xff] %v2220_v25   ;;  %2225 = vst [vmem:[%s4475_s26 + $0x98] sm:$0xff] %v2224_v32  }
 0x316   : > { %2229 = vst [vmem:[%s4475_s26 + $0xa0] sm:$0xff] %v2228_v29   ;;  %2233 = vst [vmem:[%s4475_s26 + $0xa8] sm:$0xff] %v2232_v33  }
 0x317   : > { %2237 = vst [vmem:[%s4475_s26 + $0xb0] sm:$0xff] %v2236_v41   ;;  %2241 = vst [vmem:[%s4475_s26 + $0xb8] sm:$0xff] %v2240_v51  }
 0x318   : > { %2245 = vst [vmem:[%s4475_s26 + $0x100] sm:$0xff] %v2244_v27   ;;  %2249 = vst [vmem:[%s4475_s26 + $0x108] sm:$0xff] %v2248_v47  }
 0x319   : > { %2253 = vst [vmem:[%s4475_s26 + $0x110] sm:$0xff] %v2252_v54   ;;  %2257 = vst [vmem:[%s4475_s26 + $0x118] sm:$0xff] %v2256_v62  }
 0x31a   : > { %2261 = vst [vmem:[%s4475_s26 + $0x120] sm:$0xff] %v2260_v37   ;;  %2265 = vst [vmem:[%s4475_s26 + $0x128] sm:$0xff] %v2264_v38  }
 0x31b   : > { %2269 = vst [vmem:[%s4475_s26 + $0x130] sm:$0xff] %v2268_v44   ;;  %2273 = vst [vmem:[%s4475_s26 + $0x138] sm:$0xff] %v2272_v43  }
 0x31c   : > { %2277 = vst [vmem:[%s4475_s26 + $0x180] sm:$0xff] %v2276_v49   ;;  %2281 = vst [vmem:[%s4475_s26 + $0x188] sm:$0xff] %v2280_v46  }
 0x31d   : > { %2285 = vst [vmem:[%s4475_s26 + $0x190] sm:$0xff] %v2284_v3   ;;  %2289 = vst [vmem:[%s4475_s26 + $0x198] sm:$0xff] %v2288_v10  }
 0x31e   : > { %2293 = vst [vmem:[%s4475_s26 + $0x1a0] sm:$0xff] %v2292_v53   ;;  %2297 = vst [vmem:[%s4475_s26 + $0x1a8] sm:$0xff] %v2296_v14  }
 0x31f   : > { %2301 = vst [vmem:[%s4475_s26 + $0x1b0] sm:$0xff] %v2300_v61   ;;  %2305 = vst [vmem:[%s4475_s26 + $0x1b8] sm:$0xff] %v2304_v16  }
 0x320 PF: > { %s20_s25 = sadd.s32 1, %s3198_s25   ;;  %s4588_s6 = sld [smem:[#allocation11_spill]] }
 0x321   : > { %p17_p10 = scmp.ge.s32.totalorder %s20_s25, 6   ;;  %s4589_s18 = smov %s3174_s19 }
 0x322   : > { %s4590_s19 = smov %s3178_s20  ;;  %s4591_s20 = smov %s3354_s1 }
 0x323   : > { %s4592_s21 = smov %s3190_s23  ;;  %s4593_s22 = smov %s3194_s24 }
 0x324   : > { %s4595_s24 = smov %s4601_s10  ;;  %19 = sbr.rel (!%p17_p10) target bundleno = 11 (0xb), region = 232 }
 0x326   : > { %s4594_s23 = smov %s4588_s6 }
 0x32b   :  { %2482 = vsyncpa [#allocation3], 1 }
 0x32c   :  { %2484 = vsyncpa [#allocation3 + $0x1], 1 }
 0x32d   :  { %2485 = vsyncpa [#allocation5], 1 }

// kernel: tpu_custom_call.1
= control target key start
LH: loop header
LB: loop body
LE: loop exit
PB: predicated region body
PF: predicated region fallthrough
CT: control target
= control target key end

     0   :  { %s4556_s0 = inlined_call_operand.hbm [shape: f32[2,256,128], index: 0, kind: input, shape index: {}]   ;;  %s4557_s1 = inlined_call_operand.hbm [shape: bf16[128,384], index: 1, kind: input, shape index: {}]   ;;  %s4558_s2 = inlined_call_operand.vmem [shape: f32[1,384], index: 2, kind: input, shape index: {}]   ;;  %s4559_s3 = inlined_call_operand.vmem [shape: bf16[2,4,256,32], index: 3, kind: output, shape index: {0}]   ;;  %s4560_s4 = inlined_call_operand.vmem [shape: bf16[2,4,256,32], index: 4, kind: output, shape index: {1}]   ;;  %s4561_s5 = inlined_call_operand.vmem [shape: bf16[2,4,256,32], index: 5, kind: output, shape index: {2}]  }
   0x1   :  { %4567 = sst [smem:[#allocation12_spill]] %s4557_s1 }
   0x2   :  { %4568 = sst [smem:[#allocation13_spill]] %s4559_s3 }
   0x3   :  { %4569 = sst [smem:[#allocation14_spill]] %s4560_s4 }
   0x4   :  { %4570 = sst [smem:[#allocation15_spill]] %s4561_s5 }
   0x5   :  { %11 = vsyncpa [#allocation3], 0 }
   0x6   :  { %13 = vsyncpa [#allocation3 + $0x1], 0 }
   0x7   :  { %14 = vsyncpa [#allocation5], 0  ;;  %s3240_s18 = smov 0   ;;  %s3242_s19 = smov 0  }
   0x8   :  { %s3244_s20 = smov 0   ;;  %s3246_s21 = smov 0  }
   0x9   :  { %s3248_s22 = smov 0   ;;  %s3250_s23 = smov 0  }
   0xa   :  { %s3252_s24 = smov 0   ;;  %s3254_s25 = smov 0  }
   0xb LB: > { %s2607_s26 = sadd.s32 4294967295, %s3198_s25   ;;  %p54_p0 = scmp.ne.s32.totalorder %s3174_s19, %s3170_s18  ;;  %s3198_s25 = sphi %s3254_s25, %s20_s25   ;;  %s3194_s24 = sphi %s3252_s24, %s4595_s24   ;;  %s3190_s23 = sphi %s3250_s23, %s4594_s23   ;;  %s3186_s22 = sphi %s3248_s22, %s4593_s22   ;;  %s3182_s21 = sphi %s3246_s21, %s4592_s21   ;;  %s3178_s20 = sphi %s3244_s20, %s4591_s20   ;;  %s3174_s19 = sphi %s3242_s19, %s4590_s19   ;;  %s3170_s18 = sphi %s3240_s18, %s4589_s18  }
   0xc   : > { %p3280_p1 = scmp.eq.s32.totalorder %s2607_s26, 0  ;;  %p3284_p2 = scmp.eq.s32.totalorder %s2607_s26, 3 }
   0xd   : > { %p2609_p3 = scmp.ge.s32.totalorder %s3198_s25, 1  ;;  %p191_p4 = scmp.lt.s32.totalorder %s3198_s25, 5 }
   0xe   : > { %s4571_s27 = scalar_select %p3280_p1, 1, 0 }
   0xf   : > { %s4572_s28 = scalar_select %p3284_p2, 1, 0 }
  0x10   : > { %p3292_p5 = por %p3280_p1, %p54_p0  ;;  %p3296_p6 = pnand %p2609_p3, %p191_p4 }
  0x11   : > { %s3200_s6 = smov [#allocation4]   ;;  %s4576_s1 = sld [smem:[#allocation12_spill]] }
  0x12   : > { %s4573_s29 = scalar_select %p3292_p5, 1, 0 }
  0x13   : > { %s4574_s30 = scalar_select %p3296_p6, 1, 0 }
  0x14   : > { %s203_s7 = sshll.u32 %s3200_s6, 4  ;;  %p2954_p7 = pneg %p3296_p6  ;;  %s204_s7 = int_to_ptr.vmem [resolvable:$true] %s203_s7 }
  0x16   : > { %p3304_p8 = pnand %p2954_p7, %p3280_p1 }
  0x17   : > { %s3070_s11 = scalar_lea.hbm %s4576_s1, 3072 }
  0x18   : > { %p3071_p9 = scmp.ne.s32.totalorder %s4576_s1, %s3070_s11  ;;  %p3072_p10 = pneg %p3304_p8 }
  0x19   : > { %p3077_p13 = scmp.lt.u32.totalorder %s3070_s11, %s4576_s1 }
  0x1a   : > { %p3073_p11 = pnand %p3072_p10, %p3071_p9 }
  0x1c   : > { %p3074_p12 = pneg %p3073_p11 }
  0x1e   : > { %p3079_p0 = pnand %p3077_p13, %p3074_p12 }
  0x20   : > { %3082 = shalt.err (!%p3079_p0)
}
  0x21   : > { %s3083_s16 = scalar_lea.vmem %s204_s7, 3072  ;;  %p3091_p1 = scmp.lt.s32.totalorder %s204_s7, %s204_s7 }
  0x22   : > { %p3084_p3 = scmp.ne.s32.totalorder %s204_s7, %s3083_s16  ;;  %p3092_p5 = scmp.lt.s32.totalorder %s3083_s16, %s3083_s16 }
  0x24   : > { %p3086_p4 = pnand %p3084_p3, %p3072_p10  ;;  %p3093_p6 = por %p3092_p5, %p3091_p1 }
  0x26   : > { %p3087_p7 = pneg %p3086_p4 }
  0x28   : > { %p3094_p2 = pnand %p3093_p6, %p3087_p7 }
  0x2a   : > { %3097 = shalt.err (!%p3094_p2)
}
  0x2b   : > { %s3201_s17 = smov 192   ;;  %s3202_s18 = smov 12  }
  0x2c   : > { %2957 = dma.hbm_to_vmem [thread:$0]  (!%p3304_p8), %s4576_s1, 3072, %s204_s7, [#allocation5], %s3201_s17, %s3201_s17, %s3202_s18  }
  0x2d   : > { %s29_s9 = sadd.s32 1, %s3190_s23  ;;  %s32_s10 = sadd.s32 1, %s3194_s24 }
  0x2e   : > { %p30_p1 = scmp.ge.s32.totalorder %s29_s9, 2  ;;  %s41_s11 = sadd.s32 1, %s3178_s20 }
  0x2f   : > { %p48_p2 = scmp.ne.s32.totalorder %s3178_s20, %s3174_s19  ;;  %p49_p5 = scmp.eq.s32.totalorder %s3198_s25, 0 }
  0x30   : > { %s4597_s9 = smov (%p30_p1, %s29_s9), 0  ;;  %s4599_s10 = smov (!%p30_p1, %s32_s10), %s3194_s24 }
  0x31   : > { %4577 = sst [smem:[#allocation11_spill]] %s4597_s9  ;;  %s37_s12 = ssub.s32 %s3190_s23, %s4597_s9 }
  0x32   : > { %p3335_p6 = por %p49_p5, %p48_p2  ;;  %p34_p8 = scmp.ge.s32.totalorder %s4599_s10, 2 }
  0x33   : > { %p4579_p9 = scmp.ne.s32.totalorder %s4572_s28, 0  ;;  %p2963_p11 = scmp.lt.s32.totalorder %s3198_s25, 4 }
  0x34   : > { %s220_s13 = sand.u32 1, %s3178_s20   ;;  %s4601_s10 = smov (%p34_p8, %s4599_s10), 0 }
  0x35   : > { %p3341_p10 = por %p4579_p9, %p48_p2  ;;  %s2612_s14 = sshll.u32 %s220_s13, 7 }
  0x36   : > { %s36_s15 = ssub.s32 %s3194_s24, %s4601_s10  ;;  %s2613_s17 = sshll.u32 %s3190_s23, 4 }
  0x37   : > { %s38_s16 = sor.u32 %s37_s12, %s36_s15  ;;  %s2614_s18 = sshll.u32 %s3194_s24, 5 }
  0x38   : > { %p39_p12 = scmp.eq.s32.totalorder %s38_s16, 0  ;;  %s230_s26 = sadd.s32 %s2614_s18, %s2613_s17 }
  0x39   : > { %s224_s6 = scalar_lea.vmem [#allocation2], %s2612_s14  ;;  %s2615_s9 = sshll.u32 %s230_s26, 7 }
  0x3a   : > { %s233_s28 = sshll.u32 %s224_s6, 4  ;;  %s3361_s3 = scalar_lea.hbm %s4556_s0, %s2615_s9  ;;  %s3356_s28 = int_to_ptr.vmem [resolvable:$true] %s233_s28 }
  0x3b   : > { %s3354_s1 = scalar_select %p39_p12, %s3178_s20, %s41_s11  }
  0x3c   : > { %p3367_p13 = pnand %p2963_p11, %p3335_p6  ;;  %s3371_s11 = scalar_lea.sflag [#allocation3], %s220_s13 }
  0x3d   : > { %s3098_s14 = scalar_lea.hbm %s3361_s3, 2048  ;;  %s3103_s9 = scalar_lea.hbm %s4556_s0, 8192 }
  0x3e   : > { %p3099_p0 = scmp.ne.s32.totalorder %s3361_s3, %s3098_s14  ;;  %p3100_p3 = pneg %p3367_p13 }
  0x3f   : > { %p3104_p1 = scmp.lt.u32.totalorder %s3361_s3, %s4556_s0  ;;  %p3105_p2 = scmp.lt.u32.totalorder %s3103_s9, %s3098_s14 }
  0x40   : > { %p3101_p4 = pnand %p3100_p3, %p3099_p0  ;;  %p3107_p6 = scmp.lt.u32.totalorder %s3098_s14, %s3361_s3 }
  0x41   : > { %p3106_p5 = por %p3105_p2, %p3104_p1 }
  0x42   : > { %p3102_p7 = pneg %p3101_p4 }
  0x43   : > { %p3108_p8 = por %p3107_p6, %p3106_p5 }
  0x45   : > { %p3109_p9 = pnand %p3108_p8, %p3102_p7 }
  0x47   : > { %3112 = shalt.err (!%p3109_p9)
}
  0x48   : > { %s3113_s13 = scalar_lea.vmem %s3356_s28, 2048  ;;  %s3203_s16 = smov [#allocation2]  }
  0x49   : > { %p3114_p11 = scmp.ne.s32.totalorder %s3356_s28, %s3113_s13  ;;  %s3118_s17 = sshll.u32 %s3203_s16, 4  ;;  %s3119_s17 = int_to_ptr.vmem [resolvable:$false] %s3118_s17 }
  0x4a   : > { %s3120_s18 = scalar_lea.vmem %s3119_s17, 4096  ;;  %p3121_p4 = scmp.lt.s32.totalorder %s3356_s28, %s3119_s17 }
  0x4b   : > { %p3116_p12 = pnand %p3114_p11, %p3100_p3  ;;  %p3122_p1 = scmp.lt.s32.totalorder %s3120_s18, %s3113_s13 }
  0x4d   : > { %p3117_p0 = pneg %p3116_p12  ;;  %p3123_p2 = por %p3122_p1, %p3121_p4 }
  0x4f   : > { %p3124_p5 = pnand %p3123_p2, %p3117_p0 }
  0x51   : > { %3127 = shalt.err (!%p3124_p5)
}
  0x52   : > { %s3204_s26 = smov 128   ;;  %s3205_s6 = smov 8  }
  0x53   : > { %2961 = dma.hbm_to_vmem [thread:$0]  (!%p3367_p13), %s3361_s3, 2048, %s3356_s28, %s3371_s11, %s3204_s26, %s3204_s26, %s3205_s6  }
  0x54   : > { %p4582_p3 = scmp.ne.s32.totalorder %s4574_s30, 0 }
  0x55   : > { %s3402_s14 = sand.u32 (!%p4582_p3), 1, %s3174_s19   ;;  %p4583_p7 = scmp.ne.s32.totalorder (!%p4582_p3), %s4573_s29, 0 }
  0x56   : > { %245 = sbr.rel (%p4582_p3) target bundleno = 800 (0x320), region = 32  ;;  %s2617_s4 = sshll.u32 (!%p4582_p3), %s3402_s14, 7 }
  0x57   : > { %s248_s5 = scalar_lea.sflag (!%p4582_p3), [#allocation3], %s3402_s14  ;;  %s3406_s9 = scalar_lea.vmem (!%p4582_p3), [#allocation2], %s2617_s4 }
  0x5d   : > { %3161 = dma.done.wait (%p4583_p7), %s248_s5, 2048  }
  0x5e   : > { %3163 = vsyncadd (%p4583_p7), %s248_s5, 4294965248  ;;  %p4584_p13 = scmp.ne.s32.totalorder %s4571_s27, 0 }
  0x60   : > { %3165 = dma.done.wait (%p4584_p13), [#allocation5], 3072  }
  0x61   : > { %3167 = vsyncadd (%p4584_p13), [#allocation5], 4294964224  ;;  %v3206_v0 = vmov 0   ;;  %v3038_v1 = vld [vmem:[#allocation4 + $0x8] ss:$12 sps:$4 sm:$0xff]   ;;  %v294_v16 = vld [vmem:[%s3406_s9] sm:$0xff]  ;;  %v352_v49 = vlaneseq }
  0x62   : > { %527 = vmatprep.mubr.bf16.mxu0 %v3206_v0  ;;  %v3039_v2 = vld [vmem:[#allocation4 + $0x20] ss:$12 sps:$4 sm:$0xff]   ;;  %2916 = vmatprep.subr.bf16.mxu1 %v3038_v1  ;;  %v3040_v3 = vld [vmem:[#allocation4 + $0x4] ss:$12 sps:$4 sm:$0xff]   ;;  %v3044_v6 = vld [vmem:[#allocation4 + $0x1c] ss:$12 sps:$4 sm:$0xff]  }
  0x63   : > { %2917 = vmatpush3.bf16.msra.mxu1 %v3038_v1  ;;  %v3042_v4 = vld [vmem:[#allocation4 + $0x38] ss:$12 sps:$4 sm:$0xff]   ;;  %495 = vmatprep.subr.bf16.mxu0 %v3040_v3  ;;  %v3043_v5 = vld [vmem:[#allocation4] ss:$12 sps:$4 sm:$0xff]   ;;  %v3046_v9 = vld [vmem:[#allocation4 + $0x50] ss:$12 sps:$4 sm:$0xff]  }
  0x64   : > { %2918 = vmatprep.subr.bf16.mxu1 %v3039_v2  ;;  %496 = vmatpush1.bf16.msra.mxu0 %v3043_v5  ;;  %v3047_v7 = vld [vmem:[#allocation4 + $0x18] ss:$12 sps:$4 sm:$0xff]   ;;  %v3048_v8 = vld [vmem:[#allocation4 + $0x34] ss:$12 sps:$4 sm:$0xff]   ;;  %v3051_v10 = vld [vmem:[#allocation4 + $0x30] ss:$12 sps:$4 sm:$0xff]  }
  0x65   : > { %497 = vmatprep.subr.bf16.mxu0 %v3044_v6  ;;  %v3052_v11 = vld [vmem:[#allocation4 + $0x4c] ss:$12 sps:$4 sm:$0xff]   ;;  %v3050_v12 = vld [vmem:[#allocation4 + $0x68] ss:$12 sps:$4 sm:$0xff]   ;;  %v3056_v15 = vld [vmem:[#allocation4 + $0x64] ss:$12 sps:$4 sm:$0xff]  }
  0x66   : > { %v3055_v13 = vld [vmem:[#allocation4 + $0x48] ss:$12 sps:$4 sm:$0xff]   ;;  %v3054_v14 = vld [vmem:[#allocation4 + $0x80] ss:$12 sps:$4 sm:$0xff]   ;;  %v3058_v21 = vld [vmem:[#allocation4 + $0x98] ss:$12 sps:$4 sm:$0xff]  }
  0x67   : > { %2919 = vmatpush3.bf16.msra.mxu1 %v3039_v2  ;;  %v295_v17 = vld [vmem:[%s3406_s9 + $0x8] sm:$0xff]  ;;  %v3063_v22 = vld [vmem:[#allocation4 + $0x78] ss:$12 sps:$4 sm:$0xff]   ;;  %v3064_v23 = vld [vmem:[#allocation4 + $0x94] ss:$12 sps:$4 sm:$0xff]   ;;  %v353_v50 = vshrl.u32 %v352_v49, 7 }
  0x68   : > { %2920 = vmatprep.subr.bf16.mxu1 %v3042_v4  ;;  %498 = vmatpush1.bf16.msra.mxu0 %v3047_v7  ;;  %v310_v18 = vpack.c.bf16 %v295_v17, %v294_v16  ;;  %v3059_v19 = vld [vmem:[#allocation4 + $0x60] ss:$12 sps:$4 sm:$0xff]   ;;  %v3060_v20 = vld [vmem:[#allocation4 + $0x7c] ss:$12 sps:$4 sm:$0xff]   ;;  %v296_v26 = vld [vmem:[%s3406_s9 + $0x10] sm:$0xff]  ;;  %s3446_s29 = sshll.u32 %s3402_s14, 8 }
  0x69   : > { %499 = vmatprep.subr.bf16.mxu0 %v3048_v8  ;;  %v3062_v24 = vld [vmem:[#allocation4 + $0xb0] ss:$12 sps:$4 sm:$0xff]   ;;  %v3067_v28 = vld [vmem:[#allocation4 + $0xac] ss:$12 sps:$4 sm:$0xff]   ;;  %v298_v29 = vld [vmem:[%s3406_s9 + $0x20] sm:$0xff]  ;;  %v362_v51 = vsub.s32 2, %v353_v50 }
  0x6a   : > { %2932 = vmatprep.mubr.bf16.mxu1 %v310_v18  ;;  %v3066_v25 = vld [vmem:[#allocation4 + $0x90] ss:$12 sps:$4 sm:$0xff]   ;;  %v299_v30 = vld [vmem:[%s3406_s9 + $0x28] sm:$0xff]  ;;  %v302_v36 = vld [vmem:[%s3406_s9 + $0x40] sm:$0xff]  ;;  %v354_v53 = vsub.s32 0, %v353_v50  ;;  %v358_v55 = vsub.s32 1, %v353_v50 }
  0x6b   : > { %2921 = vmatpush3.bf16.msra.mxu1 %v3042_v4  ;;  %v297_v27 = vld [vmem:[%s3406_s9 + $0x18] sm:$0xff]  ;;  %v3069_v32 = vld [vmem:[#allocation4 + $0xa8] ss:$12 sps:$4 sm:$0xff]   ;;  %v312_v33 = vpack.c.bf16 %v299_v30, %v298_v29  ;;  %v306_v42 = vld [vmem:[%s3406_s9 + $0x60] sm:$0xff]  ;;  %vm785_vm0 = vcmask 257024   ;;  %s3460_s30 = scalar_lea.vmem [#allocation8], %s3446_s29 }
  0x6c   : > { %2922 = vmatprep.subr.bf16.mxu1 %v3046_v9  ;;  %500 = vmatpush1.bf16.msra.mxu0 %v3051_v10  ;;  %v311_v31 = vpack.c.bf16 %v297_v27, %v296_v26  ;;  %v300_v34 = vld [vmem:[%s3406_s9 + $0x30] sm:$0xff]  ;;  %v301_v35 = vld [vmem:[%s3406_s9 + $0x38] sm:$0xff]  ;;  %v303_v37 = vld [vmem:[%s3406_s9 + $0x48] sm:$0xff]  ;;  %s3207_s28 = smov 96   ;;  %s3208_s12 = smov 64  }
  0x6d   : > { %501 = vmatprep.subr.bf16.mxu0 %v3052_v11  ;;  %v313_v38 = vpack.c.bf16 %v301_v35, %v300_v34  ;;  %v314_v39 = vpack.c.bf16 %v303_v37, %v302_v36  ;;  %v304_v40 = vld [vmem:[%s3406_s9 + $0x50] sm:$0xff]  ;;  %v305_v41 = vld [vmem:[%s3406_s9 + $0x58] sm:$0xff]  ;;  %v307_v43 = vld [vmem:[%s3406_s9 + $0x68] sm:$0xff]  ;;  %s3485_s11 = scalar_lea.vmem [#allocation7], %s3446_s29  ;;  %s3494_s8 = scalar_lea.vmem [#allocation6], %s3446_s29 }
  0x6e   : > { %v315_v44 = vpack.c.bf16 %v305_v41, %v304_v40  ;;  %v316_v45 = vpack.c.bf16 %v307_v43, %v306_v42  ;;  %v308_v46 = vld [vmem:[%s3406_s9 + $0x70] sm:$0xff]  ;;  %v309_v47 = vld [vmem:[%s3406_s9 + $0x78] sm:$0xff]  ;;  %v350_v52 = vld [vmem:[%s4558_s2] sm:$0x7]  ;;  %s3209_s15 = smov 32   ;;  %s2841_s13 = sshll.u32 (%p3341_p10), %s3182_s21, 4 }
  0x6f   : > { %2923 = vmatpush3.bf16.msra.mxu1 %v3046_v9  ;;  %v317_v48 = vpack.c.bf16 %v309_v47, %v308_v46  ;;  %v3443_v54 = vrot.slane %v350_v52, %v362_v51  ;;  %v3448_v57 = vrot.slane %v350_v52, %v354_v53  ;;  %v3451_v60 = vrot.slane %v350_v52, %v358_v55  ;;  %s2842_s16 = sshll.u32 (%p3341_p10), %s3186_s22, 7  ;;  %s4585_s14 = sld [smem:[#allocation13_spill]] (%p3341_p10) }
  0x70   : > { %2924 = vmatprep.subr.bf16.mxu1 %v3050_v12  ;;  %502 = vmatpush1.bf16.msra.mxu0 %v3055_v13  ;;  %s1564_s17 = sadd.s32 (%p3341_p10), %s2842_s16, %s2841_s13 }
  0x71   : > { %503 = vmatprep.subr.bf16.mxu0 %v3056_v15  ;;  %s2843_s18 = sshll.u32 (%p3341_p10), %s1564_s17, 2 }
  0x73   : > { %2925 = vmatpush3.bf16.msra.mxu1 %v3050_v12 }
  0x74   : > { %2926 = vmatprep.subr.bf16.mxu1 %v3054_v14  ;;  %504 = vmatpush1.bf16.msra.mxu0 %v3059_v19 }
  0x75   : > { %505 = vmatprep.subr.bf16.mxu0 %v3060_v20  ;;  %s4329_s4 = scalar_lea.vmem (%p3341_p10), %s4585_s14, %s2843_s18 }
  0x77   : > { %2927 = vmatpush3.bf16.msra.mxu1 %v3054_v14 }
  0x78   : > { %2928 = vmatprep.subr.bf16.mxu1 %v3058_v21  ;;  %506 = vmatpush1.bf16.msra.mxu0 %v3063_v22 }
  0x79   : > { %507 = vmatprep.subr.bf16.mxu0 %v3064_v23 }
  0x7b   : > { %2929 = vmatpush3.bf16.msra.mxu1 %v3058_v21 }
  0x7c   : > { %2930 = vmatprep.subr.bf16.mxu1 %v3062_v24  ;;  %508 = vmatpush1.bf16.msra.mxu0 %v3066_v25 }
  0x7d   : > { %509 = vmatprep.subr.bf16.mxu0 %v3067_v28 }
  0x7f   : > { %2931 = vmatpush3.bf16.msra.mxu1 %v3062_v24 }
  0x80   : > { %510 = vmatpush1.bf16.msra.mxu0 %v3069_v32 }
  0x82   : > { %2933 = vmatmul.mubr.bf16.vlgmr.msra.gmra.mrb[0].mxu1 %v311_v31 }
  0x83   : > { %2936 = vmatprep.mubr.bf16.mxu1 %v312_v33  ;;  %528 = vmatmul.mubr.bf16.vlgmr.msra.gmra.mrb[0].mxu0 %v310_v18 }
  0x84   : > { %537 = vmatprep.mubr.bf16.mxu0 %v3206_v0 }
  0x8a   : > { %2937 = vmatmul.mubr.bf16.gmra.mrb[4].mxu1 %v313_v38 }
  0x8b   : > { %2940 = vmatprep.mubr.bf16.mxu1 %v314_v39  ;;  %538 = vmatmul.mubr.bf16.gmra.mrb[4].mxu0 %v311_v31 }
  0x8c   : > { %547 = vmatprep.mubr.bf16.mxu0 %v3206_v0 }
  0x92   : > { %2941 = vmatmul.mubr.bf16.gmra.mrb[8].mxu1 %v315_v44 }
  0x93   : > { %2944 = vmatprep.mubr.bf16.mxu1 %v316_v45  ;;  %548 = vmatmul.mubr.bf16.gmra.mrb[8].mxu0 %v312_v33 }
  0x94   : > { %557 = vmatprep.mubr.bf16.mxu0 %v3206_v0 }
  0x9a   : > { %2945 = vmatmul.mubr.bf16.gmra.mrb[12].mxu1 %v317_v48 }
  0x9b   : > { %558 = vmatmul.mubr.bf16.gmra.mrb[12].mxu0 %v313_v38 }
  0x9c   : > { %567 = vmatprep.mubr.bf16.mxu0 %v3206_v0 }
  0xa3   : > { %568 = vmatmul.mubr.bf16.gmra.mrb[16].mxu0 %v314_v39 }
  0xa4   : > { %577 = vmatprep.mubr.bf16.mxu0 %v3206_v0 }
  0xab   : > { %578 = vmatmul.mubr.bf16.gmra.mrb[20].mxu0 %v315_v44 }
  0xac   : > { %587 = vmatprep.mubr.bf16.mxu0 %v3206_v0 }
  0xb3   : > { %588 = vmatmul.mubr.bf16.gmra.mrb[24].mxu0 %v316_v45 }
  0xb4   : > { %597 = vmatprep.mubr.bf16.mxu0 %v3206_v0 }
  0xbb   : > { %598 = vmatmul.mubr.bf16.gmra.mrb[28].mxu0 %v317_v48 }
 0x155   : > { %v2934_v56 = vpop.f32.mrb[0].mxu1 }
 0x156   : > { %v651_v58 = vadd.f32 %v2934_v56, %v3443_v54  ;;  %v642_v59 = vpop.f32.mrb[1].mxu1  ;;  %v529_v2 = vpop.f32.mrb[0].mxu0 }
 0x157   : > { %v643_v61 = vadd.f32 %v642_v59, %v3443_v54  ;;  %v2935_v62 = vpop.f32.mrb[2].mxu1  ;;  %v530_v5 = vadd.f32 %v529_v2, %v3448_v57  ;;  %v531_v6 = vpop.f32.mrb[1].mxu0 }
 0x158   : > { %v2886_v63 = vpack.c.bf16 %v651_v58, %v651_v58  ;;  %v654_v0 = vadd.f32 %v2935_v62, %v3443_v54  ;;  %v645_v1 = vpop.f32.mrb[3].mxu1  ;;  %v532_v8 = vadd.f32 %v531_v6, %v3451_v60  ;;  %v533_v9 = vpop.f32.mrb[2].mxu0 }
 0x159   : > { %v3455_v3 = vpack.c.bf16 %v643_v61, %v643_v61  ;;  %v646_v4 = vadd.f32 %v645_v1, %v3443_v54  ;;  %v705_v11 = vmul.f32 0.17677669, %v530_v5  ;;  %v534_v12 = vadd.f32 %v533_v9, %v3448_v57  ;;  %v535_v13 = vpop.f32.mrb[3].mxu0 }
 0x15a   : > { %948 = vst.msk [vmem:[%s3460_s30 + $0x8] sm:$0xf] %vm785_vm0, %v2886_v63  ;;  %v2887_v7 = vpack.c.bf16 %v654_v0, %v654_v0  ;;  %1096 = vrot.lane.b32.xlu0 %v2886_v63, %s3207_s28  ;;  %v3475_v14 = vpack.c.bf16 %v532_v8, %v532_v8  ;;  %v536_v15 = vadd.f32 %v535_v13, %v3451_v60 }
 0x15b   : > { %946 = vst.msk [vmem:[%s3460_s30] sm:$0xf] %vm785_vm0, %v3455_v3  ;;  %v3469_v10 = vpack.c.bf16 %v646_v4, %v646_v4  ;;  %v3481_v16 = vpack.c.bf16 %v705_v11, %v705_v11  ;;  %v706_v17 = vmul.f32 0.17677669, %v534_v12 }
 0x15c   : > { %949 = vst.msk [vmem:[%s3460_s30 + $0xc] sm:$0xf] %vm785_vm0, %v2887_v7  ;;  %1098 = vrot.lane.b32.xlu1 %v2887_v7, %s3207_s28  ;;  %866 = vst.msk [vmem:[%s3485_s11] sm:$0xf] %vm785_vm0, %v3475_v14  ;;  %v3490_v19 = vpack.c.bf16 %v536_v15, %v536_v15 }
 0x15d   : > { %947 = vst.msk [vmem:[%s3460_s30 + $0x4] sm:$0xf] %vm785_vm0, %v3469_v10  ;;  %v2938_v18 = vpop.f32.mrb[4].mxu1  ;;  %786 = vst.msk [vmem:[%s3494_s8] sm:$0xf] %vm785_vm0, %v3481_v16  ;;  %v3499_v22 = vpack.c.bf16 %v706_v17, %v706_v17 }
 0x15e   : > { %1291 = vrot.lane.b32.xlu0 %v2886_v63, %s3208_s12  ;;  %v667_v20 = vadd.f32 %v2938_v18, %v3443_v54  ;;  %v658_v21 = vpop.f32.mrb[5].mxu1  ;;  %867 = vst.msk [vmem:[%s3485_s11 + $0x4] sm:$0xf] %vm785_vm0, %v3490_v19  ;;  %v539_v25 = vpop.f32.mrb[4].mxu0 }
 0x15f   : > { %v659_v23 = vadd.f32 %v658_v21, %v3443_v54  ;;  %v2939_v24 = vpop.f32.mrb[6].mxu1  ;;  %787 = vst.msk [vmem:[%s3494_s8 + $0x4] sm:$0xf] %vm785_vm0, %v3499_v22  ;;  %v540_v29 = vadd.f32 %v539_v25, %v3448_v57  ;;  %v541_v30 = vpop.f32.mrb[5].mxu0 }
 0x160   : > { %1293 = vrot.lane.b32.xlu1 %v2887_v7, %s3208_s12  ;;  %v3506_v26 = vpack.c.bf16 %v667_v20, %v667_v20  ;;  %v670_v27 = vadd.f32 %v2939_v24, %v3443_v54  ;;  %v661_v28 = vpop.f32.mrb[7].mxu1  ;;  %v542_v33 = vadd.f32 %v541_v30, %v3451_v60  ;;  %v543_v34 = vpop.f32.mrb[6].mxu0 }
 0x161   : > { %v3513_v31 = vpack.c.bf16 %v659_v23, %v659_v23  ;;  %v662_v32 = vadd.f32 %v661_v28, %v3443_v54  ;;  %v707_v36 = vmul.f32 0.17677669, %v540_v29  ;;  %v544_v37 = vadd.f32 %v543_v34, %v3448_v57  ;;  %v545_v38 = vpop.f32.mrb[7].mxu0 }
 0x162   : > { %1486 = vrot.lane.b32.xlu0 %v2886_v63, %s3209_s15  ;;  %952 = vst.msk [vmem:[%s3460_s30 + $0x18] sm:$0xf] %vm785_vm0, %v3506_v26  ;;  %v3521_v35 = vpack.c.bf16 %v670_v27, %v670_v27  ;;  %v3530_v40 = vpack.c.bf16 %v542_v33, %v542_v33  ;;  %v546_v41 = vadd.f32 %v545_v38, %v3451_v60 }
 0x163   : > { %950 = vst.msk [vmem:[%s3460_s30 + $0x10] sm:$0xf] %vm785_vm0, %v3513_v31  ;;  %v3527_v39 = vpack.c.bf16 %v662_v32, %v662_v32  ;;  %v3536_v42 = vpack.c.bf16 %v707_v36, %v707_v36  ;;  %v708_v43 = vmul.f32 0.17677669, %v544_v37 }
 0x164   : > { %1488 = vrot.lane.b32.xlu1 %v2887_v7, %s3209_s15  ;;  %953 = vst.msk [vmem:[%s3460_s30 + $0x1c] sm:$0xf] %vm785_vm0, %v3521_v35  ;;  %868 = vst.msk [vmem:[%s3485_s11 + $0x8] sm:$0xf] %vm785_vm0, %v3530_v40  ;;  %v3546_v45 = vpack.c.bf16 %v546_v41, %v546_v41 }
 0x165   : > { %951 = vst.msk [vmem:[%s3460_s30 + $0x14] sm:$0xf] %vm785_vm0, %v3527_v39  ;;  %v2942_v44 = vpop.f32.mrb[8].mxu1  ;;  %788 = vst.msk [vmem:[%s3494_s8 + $0x8] sm:$0xf] %vm785_vm0, %v3536_v42  ;;  %v3552_v48 = vpack.c.bf16 %v708_v43, %v708_v43 }
 0x166   : > { %1027 = vrot.lane.b32.xlu0 %v3475_v14, %s3207_s28  ;;  %v683_v46 = vadd.f32 %v2942_v44, %v3443_v54  ;;  %v674_v47 = vpop.f32.mrb[9].mxu1  ;;  %869 = vst.msk [vmem:[%s3485_s11 + $0xc] sm:$0xf] %vm785_vm0, %v3546_v45  ;;  %v549_v55 = vpop.f32.mrb[8].mxu0 }
 0x167   : > { %v675_v49 = vadd.f32 %v674_v47, %v3443_v54  ;;  %v2943_v50 = vpop.f32.mrb[10].mxu1  ;;  %789 = vst.msk [vmem:[%s3494_s8 + $0xc] sm:$0xf] %vm785_vm0, %v3552_v48  ;;  %v550_v59 = vadd.f32 %v549_v55, %v3448_v57  ;;  %v551_v61 = vpop.f32.mrb[9].mxu0 }
 0x168   : > { %1029 = vrot.lane.b32.xlu1 %v3490_v19, %s3207_s28  ;;  %v3560_v51 = vpack.c.bf16 %v683_v46, %v683_v46  ;;  %v686_v52 = vadd.f32 %v2943_v50, %v3443_v54  ;;  %v677_v53 = vpop.f32.mrb[11].mxu1  ;;  %v552_v63 = vadd.f32 %v551_v61, %v3451_v60  ;;  %v553_v0 = vpop.f32.mrb[10].mxu0 }
 0x169   : > { %v3566_v56 = vpack.c.bf16 %v675_v49, %v675_v49  ;;  %v678_v58 = vadd.f32 %v677_v53, %v3443_v54  ;;  %v709_v2 = vmul.f32 0.17677669, %v550_v59  ;;  %v554_v4 = vadd.f32 %v553_v0, %v3448_v57  ;;  %v555_v5 = vpop.f32.mrb[11].mxu0 }
 0x16a   : > { %1092 = vrot.lane.b32.xlu0 %v3455_v3, %s3207_s28  ;;  %956 = vst.msk [vmem:[%s3460_s30 + $0x28] sm:$0xf] %vm785_vm0, %v3560_v51  ;;  %v3575_v62 = vpack.c.bf16 %v686_v52, %v686_v52  ;;  %v3589_v6 = vpack.c.bf16 %v552_v63, %v552_v63  ;;  %v556_v7 = vadd.f32 %v555_v5, %v3451_v60 }
 0x16b   : > { %954 = vst.msk [vmem:[%s3460_s30 + $0x20] sm:$0xf] %vm785_vm0, %v3566_v56  ;;  %v3581_v1 = vpack.c.bf16 %v678_v58, %v678_v58  ;;  %v3595_v8 = vpack.c.bf16 %v709_v2, %v709_v2  ;;  %v710_v9 = vmul.f32 0.17677669, %v554_v4 }
 0x16c   : > { %1094 = vrot.lane.b32.xlu1 %v3469_v10, %s3207_s28  ;;  %957 = vst.msk [vmem:[%s3460_s30 + $0x2c] sm:$0xf] %vm785_vm0, %v3575_v62  ;;  %870 = vst.msk [vmem:[%s3485_s11 + $0x10] sm:$0xf] %vm785_vm0, %v3589_v6  ;;  %v3602_v12 = vpack.c.bf16 %v556_v7, %v556_v7 }
 0x16d   : > { %955 = vst.msk [vmem:[%s3460_s30 + $0x24] sm:$0xf] %vm785_vm0, %v3581_v1  ;;  %v2946_v11 = vpop.f32.mrb[12].mxu1  ;;  %790 = vst.msk [vmem:[%s3494_s8 + $0x10] sm:$0xf] %vm785_vm0, %v3595_v8  ;;  %v3608_v17 = vpack.c.bf16 %v710_v9, %v710_v9 }
 0x16e   : > { %1222 = vrot.lane.b32.xlu0 %v3475_v14, %s3208_s12  ;;  %v699_v13 = vadd.f32 %v2946_v11, %v3443_v54  ;;  %v690_v15 = vpop.f32.mrb[13].mxu1  ;;  %871 = vst.msk [vmem:[%s3485_s11 + $0x14] sm:$0xf] %vm785_vm0, %v3602_v12  ;;  %v559_v25 = vpop.f32.mrb[12].mxu0 }
 0x16f   : > { %v691_v18 = vadd.f32 %v690_v15, %v3443_v54  ;;  %v2947_v20 = vpop.f32.mrb[14].mxu1  ;;  %791 = vst.msk [vmem:[%s3494_s8 + $0x14] sm:$0xf] %vm785_vm0, %v3608_v17  ;;  %v560_v29 = vadd.f32 %v559_v25, %v3448_v57  ;;  %v561_v30 = vpop.f32.mrb[13].mxu0 }
 0x170   : > { %1224 = vrot.lane.b32.xlu1 %v3490_v19, %s3208_s12  ;;  %v3616_v21 = vpack.c.bf16 %v699_v13, %v699_v13  ;;  %v702_v23 = vadd.f32 %v2947_v20, %v3443_v54  ;;  %v693_v24 = vpop.f32.mrb[15].mxu1  ;;  %v562_v33 = vadd.f32 %v561_v30, %v3451_v60  ;;  %v563_v34 = vpop.f32.mrb[14].mxu0 }
 0x171   : > { %v3622_v27 = vpack.c.bf16 %v691_v18, %v691_v18  ;;  %v694_v28 = vadd.f32 %v693_v24, %v3443_v54  ;;  %v711_v36 = vmul.f32 0.17677669, %v560_v29  ;;  %v564_v37 = vadd.f32 %v563_v34, %v3448_v57  ;;  %v565_v38 = vpop.f32.mrb[15].mxu0 }
 0x172   : > { %1287 = vrot.lane.b32.xlu0 %v3455_v3, %s3208_s12  ;;  %960 = vst.msk [vmem:[%s3460_s30 + $0x38] sm:$0xf] %vm785_vm0, %v3616_v21  ;;  %v3631_v32 = vpack.c.bf16 %v702_v23, %v702_v23  ;;  %v3645_v41 = vpack.c.bf16 %v562_v33, %v562_v33  ;;  %v566_v43 = vadd.f32 %v565_v38, %v3451_v60 }
 0x173   : > { %958 = vst.msk [vmem:[%s3460_s30 + $0x30] sm:$0xf] %vm785_vm0, %v3622_v27  ;;  %v3637_v54 = vpack.c.bf16 %v694_v28, %v694_v28  ;;  %v3651_v44 = vpack.c.bf16 %v711_v36, %v711_v36  ;;  %v712_v46 = vmul.f32 0.17677669, %v564_v37 }
 0x174   : > { %1289 = vrot.lane.b32.xlu1 %v3469_v10, %s3208_s12  ;;  %961 = vst.msk [vmem:[%s3460_s30 + $0x3c] sm:$0xf] %vm785_vm0, %v3631_v32  ;;  %872 = vst.msk [vmem:[%s3485_s11 + $0x18] sm:$0xf] %vm785_vm0, %v3645_v41  ;;  %v3658_v47 = vpack.c.bf16 %v566_v43, %v566_v43 }
 0x175   : > { %959 = vst.msk [vmem:[%s3460_s30 + $0x34] sm:$0xf] %vm785_vm0, %v3637_v54  ;;  %792 = vst.msk [vmem:[%s3494_s8 + $0x18] sm:$0xf] %vm785_vm0, %v3651_v44  ;;  %v3663_v49 = vpack.c.bf16 %v712_v46, %v712_v46 }
 0x176   : > { %1417 = vrot.lane.b32.xlu0 %v3475_v14, %s3209_s15  ;;  %873 = vst.msk [vmem:[%s3485_s11 + $0x1c] sm:$0xf] %vm785_vm0, %v3658_v47 }
 0x177   : > { %793 = vst.msk [vmem:[%s3494_s8 + $0x1c] sm:$0xf] %vm785_vm0, %v3663_v49 }
 0x178   : > { %1419 = vrot.lane.b32.xlu1 %v3490_v19, %s3209_s15 }
 0x17a   : > { %1482 = vrot.lane.b32.xlu0 %v3455_v3, %s3209_s15  ;;  %v569_v3 = vpop.f32.mrb[16].mxu0 }
 0x17b   : > { %v571_v14 = vpop.f32.mrb[17].mxu0 }
 0x17c   : > { %1484 = vrot.lane.b32.xlu1 %v3469_v10, %s3209_s15  ;;  %v570_v10 = vadd.f32 %v569_v3, %v3448_v57  ;;  %v573_v19 = vpop.f32.mrb[18].mxu0 }
 0x17d   : > { %v574_v50 = vadd.f32 %v573_v19, %v3448_v57  ;;  %v575_v52 = vpop.f32.mrb[19].mxu0 }
 0x17e   : > { %962 = vrot.lane.b32.xlu0 %v3481_v16, %s3207_s28  ;;  %v576_v55 = vadd.f32 %v575_v52, %v3451_v60 }
 0x17f   : > { %v714_v59 = vmul.f32 0.17677669, %v574_v50 }
 0x180   : > { %1159 = vrot.lane.b32.xlu1 %v3499_v22, %s3208_s12  ;;  %v3710_v61 = vpack.c.bf16 %v576_v55, %v576_v55 }
 0x181   : > { %v3717_v63 = vpack.c.bf16 %v714_v59, %v714_v59 }
 0x182   : > { %1157 = vrot.lane.b32.xlu0 %v3481_v16, %s3208_s12  ;;  %875 = vst.msk [vmem:[%s3485_s11 + $0x24] sm:$0xf] %vm785_vm0, %v3710_v61 }
 0x183   : > { %795 = vst.msk [vmem:[%s3494_s8 + $0x24] sm:$0xf] %vm785_vm0, %v3717_v63 }
 0x184   : > { %1354 = vrot.lane.b32.xlu1 %v3499_v22, %s3209_s15 }
 0x186   : > { %1352 = vrot.lane.b32.xlu0 %v3481_v16, %s3209_s15  ;;  %v572_v16 = vadd.f32 %v571_v14, %v3451_v60 }
 0x188   : > { %966 = vrot.lane.b32.xlu1 %v3536_v42, %s3207_s28  ;;  %v3700_v53 = vpack.c.bf16 %v572_v16, %v572_v16 }
 0x18a   : > { %964 = vrot.lane.b32.xlu0 %v3499_v22, %s3207_s28  ;;  %v713_v22 = vmul.f32 0.17677669, %v570_v10  ;;  %874 = vst.msk [vmem:[%s3485_s11 + $0x20] sm:$0xf] %vm785_vm0, %v3700_v53 }
 0x18c   : > { %1106 = vrot.lane.b32.xlu1 %v3521_v35, %s3207_s28  ;;  %v3705_v58 = vpack.c.bf16 %v713_v22, %v713_v22 }
 0x18e   : > { %1104 = vrot.lane.b32.xlu0 %v3506_v26, %s3207_s28  ;;  %794 = vst.msk [vmem:[%s3494_s8 + $0x20] sm:$0xf] %vm785_vm0, %v3705_v58 }
 0x190   : > { %1301 = vrot.lane.b32.xlu1 %v3521_v35, %s3208_s12 }
 0x192   : > { %1299 = vrot.lane.b32.xlu0 %v3506_v26, %s3208_s12 }
 0x194   : > { %1496 = vrot.lane.b32.xlu1 %v3521_v35, %s3209_s15 }
 0x196   : > { %1494 = vrot.lane.b32.xlu0 %v3506_v26, %s3209_s15  ;;  %v579_v26 = vpop.f32.mrb[20].mxu0 }
 0x197   : > { %v580_v35 = vadd.f32 %v579_v26, %v3448_v57  ;;  %v581_v0 = vpop.f32.mrb[21].mxu0 }
 0x198   : > { %1033 = vrot.lane.b32.xlu1 %v3546_v45, %s3207_s28  ;;  %v582_v2 = vadd.f32 %v581_v0, %v3451_v60  ;;  %v583_v4 = vpop.f32.mrb[22].mxu0 }
 0x199   : > { %v715_v5 = vmul.f32 0.17677669, %v580_v35  ;;  %v584_v7 = vadd.f32 %v583_v4, %v3448_v57  ;;  %v585_v9 = vpop.f32.mrb[23].mxu0 }
 0x19a   : > { %1031 = vrot.lane.b32.xlu0 %v3530_v40, %s3207_s28  ;;  %v3748_v11 = vpack.c.bf16 %v582_v2, %v582_v2  ;;  %v586_v13 = vadd.f32 %v585_v9, %v3451_v60 }
 0x19b   : > { %v3753_v15 = vpack.c.bf16 %v715_v5, %v715_v5  ;;  %v716_v18 = vmul.f32 0.17677669, %v584_v7 }
 0x19c   : > { %1102 = vrot.lane.b32.xlu1 %v3527_v39, %s3207_s28  ;;  %876 = vst.msk [vmem:[%s3485_s11 + $0x28] sm:$0xf] %vm785_vm0, %v3748_v11  ;;  %v3758_v20 = vpack.c.bf16 %v586_v13, %v586_v13 }
 0x19d   : > { %796 = vst.msk [vmem:[%s3494_s8 + $0x28] sm:$0xf] %vm785_vm0, %v3753_v15 }
 0x19e   : > { %1100 = vrot.lane.b32.xlu0 %v3513_v31, %s3207_s28  ;;  %877 = vst.msk [vmem:[%s3485_s11 + $0x2c] sm:$0xf] %vm785_vm0, %v3758_v20 }
 0x1a0   : > { %1228 = vrot.lane.b32.xlu1 %v3546_v45, %s3208_s12 }
 0x1a2   : > { %1226 = vrot.lane.b32.xlu0 %v3530_v40, %s3208_s12 }
 0x1a4   : > { %1297 = vrot.lane.b32.xlu1 %v3527_v39, %s3208_s12 }
 0x1a6   : > { %1295 = vrot.lane.b32.xlu0 %v3513_v31, %s3208_s12 }
 0x1a8   : > { %1423 = vrot.lane.b32.xlu1 %v3546_v45, %s3209_s15  ;;  %v3765_v45 = vpack.c.bf16 %v716_v18, %v716_v18 }
 0x1aa   : > { %1421 = vrot.lane.b32.xlu0 %v3530_v40, %s3209_s15  ;;  %797 = vst.msk [vmem:[%s3494_s8 + $0x2c] sm:$0xf] %vm785_vm0, %v3765_v45 }
 0x1ac   : > { %1492 = vrot.lane.b32.xlu1 %v3527_v39, %s3209_s15 }
 0x1ae   : > { %1490 = vrot.lane.b32.xlu0 %v3513_v31, %s3209_s15  ;;  %v589_v31 = vpop.f32.mrb[24].mxu0 }
 0x1af   : > { %v590_v39 = vadd.f32 %v589_v31, %v3448_v57  ;;  %v591_v40 = vpop.f32.mrb[25].mxu0 }
 0x1b0   : > { %968 = vrot.lane.b32.xlu1 %v3552_v48, %s3207_s28  ;;  %v593_v23 = vpop.f32.mrb[26].mxu0 }
 0x1b1   : > { %v594_v24 = vadd.f32 %v593_v23, %v3448_v57  ;;  %v595_v25 = vpop.f32.mrb[27].mxu0 }
 0x1b2   : > { %1161 = vrot.lane.b32.xlu0 %v3536_v42, %s3208_s12  ;;  %v596_v29 = vadd.f32 %v595_v25, %v3451_v60  ;;  %v599_v46 = vpop.f32.mrb[28].mxu0 }
 0x1b3   : > { %v718_v33 = vmul.f32 0.17677669, %v594_v24  ;;  %v600_v10 = vadd.f32 %v599_v46, %v3448_v57  ;;  %v601_v14 = vpop.f32.mrb[29].mxu0 }
 0x1b4   : > { %1163 = vrot.lane.b32.xlu1 %v3552_v48, %s3208_s12  ;;  %v3806_v34 = vpack.c.bf16 %v596_v29, %v596_v29  ;;  %v602_v16 = vadd.f32 %v601_v14, %v3451_v60  ;;  %v603_v19 = vpop.f32.mrb[30].mxu0 }
 0x1b5   : > { %v3813_v36 = vpack.c.bf16 %v718_v33, %v718_v33  ;;  %v719_v50 = vmul.f32 0.17677669, %v600_v10  ;;  %v604_v52 = vadd.f32 %v603_v19, %v3448_v57 }
 0x1b6   : > { %1356 = vrot.lane.b32.xlu0 %v3536_v42, %s3209_s15  ;;  %v592_v42 = vadd.f32 %v591_v40, %v3451_v60  ;;  %879 = vst.msk [vmem:[%s3485_s11 + $0x34] sm:$0xf] %vm785_vm0, %v3806_v34  ;;  %v3858_v55 = vpack.c.bf16 %v602_v16, %v602_v16 }
 0x1b7   : > { %799 = vst.msk [vmem:[%s3494_s8 + $0x34] sm:$0xf] %vm785_vm0, %v3813_v36  ;;  %v720_v35 = vmul.f32 0.17677669, %v604_v52 }
 0x1b8   : > { %1358 = vrot.lane.b32.xlu1 %v3552_v48, %s3209_s15  ;;  %v717_v48 = vmul.f32 0.17677669, %v590_v39  ;;  %v3796_v28 = vpack.c.bf16 %v592_v42, %v592_v42  ;;  %880 = vst.msk [vmem:[%s3485_s11 + $0x38] sm:$0xf] %vm785_vm0, %v3858_v55 }
 0x1ba   : > { %1112 = vrot.lane.b32.xlu0 %v3560_v51, %s3207_s28  ;;  %v3801_v30 = vpack.c.bf16 %v717_v48, %v717_v48  ;;  %878 = vst.msk [vmem:[%s3485_s11 + $0x30] sm:$0xf] %vm785_vm0, %v3796_v28 }
 0x1bc   : > { %1114 = vrot.lane.b32.xlu1 %v3575_v62, %s3207_s28  ;;  %798 = vst.msk [vmem:[%s3494_s8 + $0x30] sm:$0xf] %vm785_vm0, %v3801_v30 }
 0x1be   : > { %1307 = vrot.lane.b32.xlu0 %v3560_v51, %s3208_s12 }
 0x1c0   : > { %1309 = vrot.lane.b32.xlu1 %v3575_v62, %s3208_s12 }
 0x1c2   : > { %1502 = vrot.lane.b32.xlu0 %v3560_v51, %s3209_s15 }
 0x1c4   : > { %1504 = vrot.lane.b32.xlu1 %v3575_v62, %s3209_s15 }
 0x1c6   : > { %1035 = vrot.lane.b32.xlu0 %v3589_v6, %s3207_s28 }
 0x1c8   : > { %1037 = vrot.lane.b32.xlu1 %v3602_v12, %s3207_s28 }
 0x1ca   : > { %1108 = vrot.lane.b32.xlu0 %v3566_v56, %s3207_s28 }
 0x1cc   : > { %v1097_v51 = vpop.permute.xlu0 %1096  ;;  %1110 = vrot.lane.b32.xlu1 %v3581_v1, %s3207_s28 }
 0x1cd   : > { %2728 = vst.msk [vmem:[%s3460_s30 + $0x48] sm:$0xf] %vm785_vm0, %v1097_v51 }
 0x1ce   : > { %v1099_v62 = vpop.permute.xlu1 %1098  ;;  %1230 = vrot.lane.b32.xlu0 %v3589_v6, %s3208_s12 }
 0x1cf   : > { %2729 = vst.msk [vmem:[%s3460_s30 + $0x4c] sm:$0xf] %vm785_vm0, %v1099_v62 }
 0x1d0   : > { %v1292_v37 = vpop.permute.xlu0 %1291  ;;  %1232 = vrot.lane.b32.xlu1 %v3602_v12, %s3208_s12 }
 0x1d1   : > { %2776 = vst.msk [vmem:[%s3460_s30 + $0x88] sm:$0xf] %vm785_vm0, %v1292_v37 }
 0x1d2   : > { %v1294_v38 = vpop.permute.xlu1 %1293  ;;  %1303 = vrot.lane.b32.xlu0 %v3566_v56, %s3208_s12 }
 0x1d3   : > { %2777 = vst.msk [vmem:[%s3460_s30 + $0x8c] sm:$0xf] %vm785_vm0, %v1294_v38 }
 0x1d4   : > { %v1487_v43 = vpop.permute.xlu0 %1486  ;;  %1305 = vrot.lane.b32.xlu1 %v3581_v1, %s3208_s12 }
 0x1d5   : > { %2824 = vst.msk [vmem:[%s3460_s30 + $0xc8] sm:$0xf] %vm785_vm0, %v1487_v43 }
 0x1d6   : > { %v1489_v3 = vpop.permute.xlu1 %1488  ;;  %1425 = vrot.lane.b32.xlu0 %v3589_v6, %s3209_s15  ;;  %v605_v6 = vpop.f32.mrb[31].mxu0 }
 0x1d7   : > { %2825 = vst.msk [vmem:[%s3460_s30 + $0xcc] sm:$0xf] %vm785_vm0, %v1489_v3  ;;  %v606_v59 = vadd.f32 %v605_v6, %v3451_v60 }
 0x1d8   : > { %1427 = vrot.lane.b32.xlu1 %v3602_v12, %s3209_s15  ;;  %v1028_v22 = vpop.permute.xlu0 %1027  ;;  %v3863_v12 = vpack.c.bf16 %v719_v50, %v719_v50 }
 0x1d9   : > { %2710 = vst.msk [vmem:[%s3485_s11 + $0x40] sm:$0xf] %vm785_vm0, %v1028_v22  ;;  %v3870_v57 = vpack.c.bf16 %v606_v59, %v606_v59 }
 0x1da   : > { %v1030_v26 = vpop.permute.xlu1 %1029  ;;  %1498 = vrot.lane.b32.xlu0 %v3566_v56, %s3209_s15  ;;  %800 = vst.msk [vmem:[%s3494_s8 + $0x38] sm:$0xf] %vm785_vm0, %v3863_v12  ;;  %v3877_v56 = vpack.c.bf16 %v720_v35, %v720_v35 }
 0x1db   : > { %2711 = vst.msk [vmem:[%s3485_s11 + $0x44] sm:$0xf] %vm785_vm0, %v1030_v26  ;;  %881 = vst.msk [vmem:[%s3485_s11 + $0x3c] sm:$0xf] %vm785_vm0, %v3870_v57 }
 0x1dc   : > { %1500 = vrot.lane.b32.xlu1 %v3581_v1, %s3209_s15  ;;  %v1093_v60 = vpop.permute.xlu0 %1092  ;;  %801 = vst.msk [vmem:[%s3494_s8 + $0x3c] sm:$0xf] %vm785_vm0, %v3877_v56 }
 0x1dd   : > { %2726 = vst.msk [vmem:[%s3460_s30 + $0x40] sm:$0xf] %vm785_vm0, %v1093_v60 }
 0x1de   : > { %v1095_v0 = vpop.permute.xlu1 %1094  ;;  %970 = vrot.lane.b32.xlu0 %v3595_v8, %s3207_s28 }
 0x1df   : > { %2727 = vst.msk [vmem:[%s3460_s30 + $0x44] sm:$0xf] %vm785_vm0, %v1095_v0 }
 0x1e0   : > { %972 = vrot.lane.b32.xlu1 %v3608_v17, %s3207_s28  ;;  %v1223_v1 = vpop.permute.xlu0 %1222 }
 0x1e1   : > { %2758 = vst.msk [vmem:[%s3485_s11 + $0x80] sm:$0xf] %vm785_vm0, %v1223_v1 }
 0x1e2   : > { %v1225_v2 = vpop.permute.xlu1 %1224  ;;  %1165 = vrot.lane.b32.xlu0 %v3595_v8, %s3208_s12 }
 0x1e3   : > { %2759 = vst.msk [vmem:[%s3485_s11 + $0x84] sm:$0xf] %vm785_vm0, %v1225_v2 }
 0x1e4   : > { %1167 = vrot.lane.b32.xlu1 %v3608_v17, %s3208_s12  ;;  %v1288_v4 = vpop.permute.xlu0 %1287 }
 0x1e5   : > { %2774 = vst.msk [vmem:[%s3460_s30 + $0x80] sm:$0xf] %vm785_vm0, %v1288_v4 }
 0x1e6   : > { %v1290_v5 = vpop.permute.xlu1 %1289  ;;  %1360 = vrot.lane.b32.xlu0 %v3595_v8, %s3209_s15 }
 0x1e7   : > { %2775 = vst.msk [vmem:[%s3460_s30 + $0x84] sm:$0xf] %vm785_vm0, %v1290_v5 }
 0x1e8   : > { %1362 = vrot.lane.b32.xlu1 %v3608_v17, %s3209_s15  ;;  %v1418_v7 = vpop.permute.xlu0 %1417 }
 0x1e9   : > { %2806 = vst.msk [vmem:[%s3485_s11 + $0xc0] sm:$0xf] %vm785_vm0, %v1418_v7 }
 0x1ea   : > { %v1420_v9 = vpop.permute.xlu1 %1419  ;;  %1120 = vrot.lane.b32.xlu0 %v3616_v21, %s3207_s28 }
 0x1eb   : > { %2807 = vst.msk [vmem:[%s3485_s11 + $0xc4] sm:$0xf] %vm785_vm0, %v1420_v9 }
 0x1ec   : > { %1122 = vrot.lane.b32.xlu1 %v3631_v32, %s3207_s28  ;;  %v1483_v8 = vpop.permute.xlu0 %1482 }
 0x1ed   : > { %2822 = vst.msk [vmem:[%s3460_s30 + $0xc0] sm:$0xf] %vm785_vm0, %v1483_v8 }
 0x1ee   : > { %v1485_v13 = vpop.permute.xlu1 %1484  ;;  %1315 = vrot.lane.b32.xlu0 %v3616_v21, %s3208_s12 }
 0x1ef   : > { %2823 = vst.msk [vmem:[%s3460_s30 + $0xc4] sm:$0xf] %vm785_vm0, %v1485_v13 }
 0x1f0   : > { %1317 = vrot.lane.b32.xlu1 %v3631_v32, %s3208_s12  ;;  %v963_v17 = vpop.permute.xlu0 %962 }
 0x1f1   : > { %2694 = vst.msk [vmem:[%s3494_s8 + $0x40] sm:$0xf] %vm785_vm0, %v963_v17 }
 0x1f2   : > { %v1160_v18 = vpop.permute.xlu1 %1159  ;;  %1039 = vrot.lane.b32.xlu0 %v3645_v41, %s3207_s28 }
 0x1f3   : > { %2743 = vst.msk [vmem:[%s3494_s8 + $0x84] sm:$0xf] %vm785_vm0, %v1160_v18 }
 0x1f4   : > { %1041 = vrot.lane.b32.xlu1 %v3658_v47, %s3207_s28  ;;  %v1158_v31 = vpop.permute.xlu0 %1157 }
 0x1f5   : > { %2742 = vst.msk [vmem:[%s3494_s8 + $0x80] sm:$0xf] %vm785_vm0, %v1158_v31 }
 0x1f6   : > { %v1355_v39 = vpop.permute.xlu1 %1354  ;;  %1116 = vrot.lane.b32.xlu0 %v3622_v27, %s3207_s28 }
 0x1f7   : > { %2791 = vst.msk [vmem:[%s3494_s8 + $0xc4] sm:$0xf] %vm785_vm0, %v1355_v39 }
 0x1f8   : > { %1118 = vrot.lane.b32.xlu1 %v3637_v54, %s3207_s28  ;;  %v1353_v40 = vpop.permute.xlu0 %1352 }
 0x1f9   : > { %2790 = vst.msk [vmem:[%s3494_s8 + $0xc0] sm:$0xf] %vm785_vm0, %v1353_v40 }
 0x1fa   : > { %v967_v42 = vpop.permute.xlu1 %966  ;;  %1234 = vrot.lane.b32.xlu0 %v3645_v41, %s3208_s12 }
 0x1fb   : > { %2696 = vst.msk [vmem:[%s3494_s8 + $0x48] sm:$0xf] %vm785_vm0, %v967_v42 }
 0x1fc   : > { %1236 = vrot.lane.b32.xlu1 %v3658_v47, %s3208_s12  ;;  %v965_v23 = vpop.permute.xlu0 %964 }
 0x1fd   : > { %2695 = vst.msk [vmem:[%s3494_s8 + $0x44] sm:$0xf] %vm785_vm0, %v965_v23 }
 0x1fe   : > { %v1107_v48 = vpop.permute.xlu1 %1106  ;;  %1311 = vrot.lane.b32.xlu0 %v3622_v27, %s3208_s12 }
 0x1ff   : > { %2733 = vst.msk [vmem:[%s3460_s30 + $0x5c] sm:$0xf] %vm785_vm0, %v1107_v48 }
 0x200   : > { %1313 = vrot.lane.b32.xlu1 %v3637_v54, %s3208_s12  ;;  %v1105_v24 = vpop.permute.xlu0 %1104 }
 0x201   : > { %2732 = vst.msk [vmem:[%s3460_s30 + $0x58] sm:$0xf] %vm785_vm0, %v1105_v24 }
 0x202   : > { %v1302_v25 = vpop.permute.xlu1 %1301  ;;  %1429 = vrot.lane.b32.xlu0 %v3645_v41, %s3209_s15 }
 0x203   : > { %2781 = vst.msk [vmem:[%s3460_s30 + $0x9c] sm:$0xf] %vm785_vm0, %v1302_v25 }
 0x204   : > { %1431 = vrot.lane.b32.xlu1 %v3658_v47, %s3209_s15  ;;  %v1300_v29 = vpop.permute.xlu0 %1299 }
 0x205   : > { %2780 = vst.msk [vmem:[%s3460_s30 + $0x98] sm:$0xf] %vm785_vm0, %v1300_v29 }
 0x206   : > { %v1497_v33 = vpop.permute.xlu1 %1496  ;;  %1506 = vrot.lane.b32.xlu0 %v3622_v27, %s3209_s15 }
 0x207   : > { %2829 = vst.msk [vmem:[%s3460_s30 + $0xdc] sm:$0xf] %vm785_vm0, %v1497_v33 }
 0x208   : > { %1508 = vrot.lane.b32.xlu1 %v3637_v54, %s3209_s15  ;;  %v1495_v41 = vpop.permute.xlu0 %1494 }
 0x209   : > { %2828 = vst.msk [vmem:[%s3460_s30 + $0xd8] sm:$0xf] %vm785_vm0, %v1495_v41 }
 0x20a   : > { %v1034_v51 = vpop.permute.xlu1 %1033  ;;  %974 = vrot.lane.b32.xlu0 %v3651_v44, %s3207_s28 }
 0x20b   : > { %2713 = vst.msk [vmem:[%s3485_s11 + $0x4c] sm:$0xf] %vm785_vm0, %v1034_v51 }
 0x20c   : > { %976 = vrot.lane.b32.xlu1 %v3663_v49, %s3207_s28  ;;  %v1032_v27 = vpop.permute.xlu0 %1031 }
 0x20d   : > { %2712 = vst.msk [vmem:[%s3485_s11 + $0x48] sm:$0xf] %vm785_vm0, %v1032_v27 }
 0x20e   : > { %v1103_v47 = vpop.permute.xlu1 %1102  ;;  %1169 = vrot.lane.b32.xlu0 %v3651_v44, %s3208_s12 }
 0x20f   : > { %2731 = vst.msk [vmem:[%s3460_s30 + $0x54] sm:$0xf] %vm785_vm0, %v1103_v47 }
 0x210   : > { %1171 = vrot.lane.b32.xlu1 %v3663_v49, %s3208_s12  ;;  %v1101_v54 = vpop.permute.xlu0 %1100 }
 0x211   : > { %2730 = vst.msk [vmem:[%s3460_s30 + $0x50] sm:$0xf] %vm785_vm0, %v1101_v54 }
 0x212   : > { %v1229_v62 = vpop.permute.xlu1 %1228  ;;  %1364 = vrot.lane.b32.xlu0 %v3651_v44, %s3209_s15 }
 0x213   : > { %2761 = vst.msk [vmem:[%s3485_s11 + $0x8c] sm:$0xf] %vm785_vm0, %v1229_v62 }
 0x214   : > { %1366 = vrot.lane.b32.xlu1 %v3663_v49, %s3209_s15  ;;  %v1227_v37 = vpop.permute.xlu0 %1226 }
 0x215   : > { %2760 = vst.msk [vmem:[%s3485_s11 + $0x88] sm:$0xf] %vm785_vm0, %v1227_v37 }
 0x216   : > { %v1298_v38 = vpop.permute.xlu1 %1297  ;;  %1043 = vrot.lane.b32.xlu0 %v3700_v53, %s3207_s28 }
 0x217   : > { %2779 = vst.msk [vmem:[%s3460_s30 + $0x94] sm:$0xf] %vm785_vm0, %v1298_v38 }
 0x218   : > { %1045 = vrot.lane.b32.xlu1 %v3710_v61, %s3207_s28  ;;  %v1296_v44 = vpop.permute.xlu0 %1295 }
 0x219   : > { %2778 = vst.msk [vmem:[%s3460_s30 + $0x90] sm:$0xf] %vm785_vm0, %v1296_v44 }
 0x21a   : > { %v1424_v43 = vpop.permute.xlu1 %1423  ;;  %1238 = vrot.lane.b32.xlu0 %v3700_v53, %s3208_s12 }
 0x21b   : > { %2809 = vst.msk [vmem:[%s3485_s11 + $0xcc] sm:$0xf] %vm785_vm0, %v1424_v43 }
 0x21c   : > { %1240 = vrot.lane.b32.xlu1 %v3710_v61, %s3208_s12  ;;  %v1422_v49 = vpop.permute.xlu0 %1421 }
 0x21d   : > { %2808 = vst.msk [vmem:[%s3485_s11 + $0xc8] sm:$0xf] %vm785_vm0, %v1422_v49 }
 0x21e   : > { %v1493_v46 = vpop.permute.xlu1 %1492  ;;  %1433 = vrot.lane.b32.xlu0 %v3700_v53, %s3209_s15 }
 0x21f   : > { %2827 = vst.msk [vmem:[%s3460_s30 + $0xd4] sm:$0xf] %vm785_vm0, %v1493_v46 }
 0x220   : > { %1435 = vrot.lane.b32.xlu1 %v3710_v61, %s3209_s15  ;;  %v1491_v3 = vpop.permute.xlu0 %1490 }
 0x221   : > { %2826 = vst.msk [vmem:[%s3460_s30 + $0xd0] sm:$0xf] %vm785_vm0, %v1491_v3 }
 0x222   : > { %v969_v10 = vpop.permute.xlu1 %968  ;;  %978 = vrot.lane.b32.xlu0 %v3705_v58, %s3207_s28 }
 0x223   : > { %2697 = vst.msk [vmem:[%s3494_s8 + $0x4c] sm:$0xf] %vm785_vm0, %v969_v10 }
 0x224   : > { %980 = vrot.lane.b32.xlu1 %v3717_v63, %s3207_s28  ;;  %v1162_v53 = vpop.permute.xlu0 %1161 }
 0x225   : > { %2744 = vst.msk [vmem:[%s3494_s8 + $0x88] sm:$0xf] %vm785_vm0, %v1162_v53 }
 0x226   : > { %v1164_v14 = vpop.permute.xlu1 %1163  ;;  %1173 = vrot.lane.b32.xlu0 %v3705_v58, %s3208_s12 }
 0x227   : > { %2745 = vst.msk [vmem:[%s3494_s8 + $0x8c] sm:$0xf] %vm785_vm0, %v1164_v14 }
 0x228   : > { %1175 = vrot.lane.b32.xlu1 %v3717_v63, %s3208_s12  ;;  %v1357_v61 = vpop.permute.xlu0 %1356 }
 0x229   : > { %2792 = vst.msk [vmem:[%s3494_s8 + $0xc8] sm:$0xf] %vm785_vm0, %v1357_v61 }
 0x22a   : > { %v1359_v16 = vpop.permute.xlu1 %1358  ;;  %1368 = vrot.lane.b32.xlu0 %v3705_v58, %s3209_s15 }
 0x22b   : > { %2793 = vst.msk [vmem:[%s3494_s8 + $0xcc] sm:$0xf] %vm785_vm0, %v1359_v16 }
 0x22c   : > { %1370 = vrot.lane.b32.xlu1 %v3717_v63, %s3209_s15  ;;  %v1113_v19 = vpop.permute.xlu0 %1112 }
 0x22d   : > { %2736 = vst.msk [vmem:[%s3460_s30 + $0x68] sm:$0xf] %vm785_vm0, %v1113_v19 }
 0x22e   : > { %v1115_v22 = vpop.permute.xlu1 %1114  ;;  %1047 = vrot.lane.b32.xlu0 %v3748_v11, %s3207_s28 }
 0x22f   : > { %2737 = vst.msk [vmem:[%s3460_s30 + $0x6c] sm:$0xf] %vm785_vm0, %v1115_v22 }
 0x230   : > { %1049 = vrot.lane.b32.xlu1 %v3758_v20, %s3207_s28  ;;  %v1308_v58 = vpop.permute.xlu0 %1307 }
 0x231   : > { %2784 = vst.msk [vmem:[%s3460_s30 + $0xa8] sm:$0xf] %vm785_vm0, %v1308_v58 }
 0x232   : > { %v1310_v50 = vpop.permute.xlu1 %1309  ;;  %1242 = vrot.lane.b32.xlu0 %v3748_v11, %s3208_s12 }
 0x233   : > { %2785 = vst.msk [vmem:[%s3460_s30 + $0xac] sm:$0xf] %vm785_vm0, %v1310_v50 }
 0x234   : > { %1244 = vrot.lane.b32.xlu1 %v3758_v20, %s3208_s12  ;;  %v1503_v63 = vpop.permute.xlu0 %1502 }
 0x235   : > { %2832 = vst.msk [vmem:[%s3460_s30 + $0xe8] sm:$0xf] %vm785_vm0, %v1503_v63 }
 0x236   : > { %v1505_v52 = vpop.permute.xlu1 %1504  ;;  %1437 = vrot.lane.b32.xlu0 %v3748_v11, %s3209_s15 }
 0x237   : > { %2833 = vst.msk [vmem:[%s3460_s30 + $0xec] sm:$0xf] %vm785_vm0, %v1505_v52 }
 0x238   : > { %1439 = vrot.lane.b32.xlu1 %v3758_v20, %s3209_s15  ;;  %v1036_v6 = vpop.permute.xlu0 %1035 }
 0x239   : > { %2714 = vst.msk [vmem:[%s3485_s11 + $0x50] sm:$0xf] %vm785_vm0, %v1036_v6 }
 0x23a   : > { %v1038_v59 = vpop.permute.xlu1 %1037  ;;  %982 = vrot.lane.b32.xlu0 %v3753_v15, %s3207_s28 }
 0x23b   : > { %2715 = vst.msk [vmem:[%s3485_s11 + $0x54] sm:$0xf] %vm785_vm0, %v1038_v59 }
 0x23c   : > { %984 = vrot.lane.b32.xlu1 %v3765_v45, %s3207_s28  ;;  %v1109_v11 = vpop.permute.xlu0 %1108 }
 0x23d   : > { %2734 = vst.msk [vmem:[%s3460_s30 + $0x60] sm:$0xf] %vm785_vm0, %v1109_v11 }
 0x23e   : > { %v1111_v26 = vpop.permute.xlu1 %1110  ;;  %1177 = vrot.lane.b32.xlu0 %v3753_v15, %s3208_s12 }
 0x23f   : > { %2735 = vst.msk [vmem:[%s3460_s30 + $0x64] sm:$0xf] %vm785_vm0, %v1111_v26 }
 0x240   : > { %1179 = vrot.lane.b32.xlu1 %v3765_v45, %s3208_s12  ;;  %v1231_v20 = vpop.permute.xlu0 %1230 }
 0x241   : > { %2762 = vst.msk [vmem:[%s3485_s11 + $0x90] sm:$0xf] %vm785_vm0, %v1231_v20 }
 0x242   : > { %v1233_v35 = vpop.permute.xlu1 %1232  ;;  %1372 = vrot.lane.b32.xlu0 %v3753_v15, %s3209_s15 }
 0x243   : > { %2763 = vst.msk [vmem:[%s3485_s11 + $0x94] sm:$0xf] %vm785_vm0, %v1233_v35 }
 0x244   : > { %1374 = vrot.lane.b32.xlu1 %v3765_v45, %s3209_s15  ;;  %v1304_v60 = vpop.permute.xlu0 %1303 }
 0x245   : > { %2782 = vst.msk [vmem:[%s3460_s30 + $0xa0] sm:$0xf] %vm785_vm0, %v1304_v60 }
 0x246   : > { %v1306_v0 = vpop.permute.xlu1 %1305  ;;  %1051 = vrot.lane.b32.xlu0 %v3796_v28, %s3207_s28 }
 0x247   : > { %2783 = vst.msk [vmem:[%s3460_s30 + $0xa4] sm:$0xf] %vm785_vm0, %v1306_v0 }
 0x248   : > { %1053 = vrot.lane.b32.xlu1 %v3806_v34, %s3207_s28  ;;  %v1426_v15 = vpop.permute.xlu0 %1425 }
 0x249   : > { %2810 = vst.msk [vmem:[%s3485_s11 + $0xd0] sm:$0xf] %vm785_vm0, %v1426_v15 }
 0x24a   : > { %v1428_v1 = vpop.permute.xlu1 %1427  ;;  %1246 = vrot.lane.b32.xlu0 %v3796_v28, %s3208_s12 }
 0x24b   : > { %2811 = vst.msk [vmem:[%s3485_s11 + $0xd4] sm:$0xf] %vm785_vm0, %v1428_v1 }
 0x24c   : > { %1248 = vrot.lane.b32.xlu1 %v3806_v34, %s3208_s12  ;;  %v1499_v45 = vpop.permute.xlu0 %1498 }
 0x24d   : > { %2830 = vst.msk [vmem:[%s3460_s30 + $0xe0] sm:$0xf] %vm785_vm0, %v1499_v45 }
 0x24e   : > { %v1501_v2 = vpop.permute.xlu1 %1500  ;;  %1441 = vrot.lane.b32.xlu0 %v3796_v28, %s3209_s15 }
 0x24f   : > { %2831 = vst.msk [vmem:[%s3460_s30 + $0xe4] sm:$0xf] %vm785_vm0, %v1501_v2 }
 0x250   : > { %1443 = vrot.lane.b32.xlu1 %v3806_v34, %s3209_s15  ;;  %v971_v4 = vpop.permute.xlu0 %970 }
 0x251   : > { %2698 = vst.msk [vmem:[%s3494_s8 + $0x50] sm:$0xf] %vm785_vm0, %v971_v4 }
 0x252   : > { %v973_v5 = vpop.permute.xlu1 %972  ;;  %986 = vrot.lane.b32.xlu0 %v3801_v30, %s3207_s28 }
 0x253   : > { %2699 = vst.msk [vmem:[%s3494_s8 + $0x54] sm:$0xf] %vm785_vm0, %v973_v5 }
 0x254   : > { %988 = vrot.lane.b32.xlu1 %v3813_v36, %s3207_s28  ;;  %v1166_v28 = vpop.permute.xlu0 %1165 }
 0x255   : > { %2746 = vst.msk [vmem:[%s3494_s8 + $0x90] sm:$0xf] %vm785_vm0, %v1166_v28 }
 0x256   : > { %v1168_v7 = vpop.permute.xlu1 %1167  ;;  %1181 = vrot.lane.b32.xlu0 %v3801_v30, %s3208_s12 }
 0x257   : > { %2747 = vst.msk [vmem:[%s3494_s8 + $0x94] sm:$0xf] %vm785_vm0, %v1168_v7 }
 0x258   : > { %1183 = vrot.lane.b32.xlu1 %v3813_v36, %s3208_s12  ;;  %v1361_v34 = vpop.permute.xlu0 %1360 }
 0x259   : > { %2794 = vst.msk [vmem:[%s3494_s8 + $0xd0] sm:$0xf] %vm785_vm0, %v1361_v34 }
 0x25a   : > { %v1363_v9 = vpop.permute.xlu1 %1362  ;;  %1376 = vrot.lane.b32.xlu0 %v3801_v30, %s3209_s15 }
 0x25b   : > { %2795 = vst.msk [vmem:[%s3494_s8 + $0xd4] sm:$0xf] %vm785_vm0, %v1363_v9 }
 0x25c   : > { %1378 = vrot.lane.b32.xlu1 %v3813_v36, %s3209_s15  ;;  %v1121_v8 = vpop.permute.xlu0 %1120 }
 0x25d   : > { %2740 = vst.msk [vmem:[%s3460_s30 + $0x78] sm:$0xf] %vm785_vm0, %v1121_v8 }
 0x25e   : > { %v1123_v13 = vpop.permute.xlu1 %1122  ;;  %1055 = vrot.lane.b32.xlu0 %v3858_v55, %s3207_s28 }
 0x25f   : > { %2741 = vst.msk [vmem:[%s3460_s30 + $0x7c] sm:$0xf] %vm785_vm0, %v1123_v13 }
 0x260   : > { %1057 = vrot.lane.b32.xlu1 %v3870_v57, %s3207_s28  ;;  %v1316_v30 = vpop.permute.xlu0 %1315 }
 0x261   : > { %2788 = vst.msk [vmem:[%s3460_s30 + $0xb8] sm:$0xf] %vm785_vm0, %v1316_v30 }
 0x262   : > { %v1318_v17 = vpop.permute.xlu1 %1317  ;;  %1250 = vrot.lane.b32.xlu0 %v3858_v55, %s3208_s12 }
 0x263   : > { %2789 = vst.msk [vmem:[%s3460_s30 + $0xbc] sm:$0xf] %vm785_vm0, %v1318_v17 }
 0x264   : > { %1252 = vrot.lane.b32.xlu1 %v3870_v57, %s3208_s12  ;;  %v1040_v36 = vpop.permute.xlu0 %1039 }
 0x265   : > { %2716 = vst.msk [vmem:[%s3485_s11 + $0x58] sm:$0xf] %vm785_vm0, %v1040_v36 }
 0x266   : > { %v1042_v18 = vpop.permute.xlu1 %1041  ;;  %1445 = vrot.lane.b32.xlu0 %v3858_v55, %s3209_s15 }
 0x267   : > { %2717 = vst.msk [vmem:[%s3485_s11 + $0x5c] sm:$0xf] %vm785_vm0, %v1042_v18 }
 0x268   : > { %1447 = vrot.lane.b32.xlu1 %v3870_v57, %s3209_s15  ;;  %v1117_v31 = vpop.permute.xlu0 %1116 }
 0x269   : > { %2738 = vst.msk [vmem:[%s3460_s30 + $0x70] sm:$0xf] %vm785_vm0, %v1117_v31 }
 0x26a   : > { %v1119_v39 = vpop.permute.xlu1 %1118  ;;  %990 = vrot.lane.b32.xlu0 %v3863_v12, %s3207_s28 }
 0x26b   : > { %2739 = vst.msk [vmem:[%s3460_s30 + $0x74] sm:$0xf] %vm785_vm0, %v1119_v39 }
 0x26c   : > { %992 = vrot.lane.b32.xlu1 %v3877_v56, %s3207_s28  ;;  %v1235_v55 = vpop.permute.xlu0 %1234 }
 0x26d   : > { %2764 = vst.msk [vmem:[%s3485_s11 + $0x98] sm:$0xf] %vm785_vm0, %v1235_v55  ;;  %v1582_v55 = vld [vmem:[%s3494_s8] sm:$0xff] (%p3341_p10)  }
 0x26e   : > { %v1237_v40 = vpop.permute.xlu1 %1236  ;;  %1185 = vrot.lane.b32.xlu0 %v3863_v12, %s3208_s12  ;;  %1583 = vst [vmem:[%s4329_s4] sm:$0xff] (%p3341_p10), %v1582_v55  }
 0x26f   : > { %2765 = vst.msk [vmem:[%s3485_s11 + $0x9c] sm:$0xf] %vm785_vm0, %v1237_v40  ;;  %v1586_v40 = vld [vmem:[%s3494_s8 + $0x8] sm:$0xff] (%p3341_p10)  }
 0x270   : > { %1187 = vrot.lane.b32.xlu1 %v3877_v56, %s3208_s12  ;;  %v1312_v57 = vpop.permute.xlu0 %1311  ;;  %1587 = vst [vmem:[%s4329_s4 + $0x8] sm:$0xff] (%p3341_p10), %v1586_v40  }
 0x271   : > { %2786 = vst.msk [vmem:[%s3460_s30 + $0xb0] sm:$0xf] %vm785_vm0, %v1312_v57  ;;  %v1590_v57 = vld [vmem:[%s3494_s8 + $0x10] sm:$0xff] (%p3341_p10)  }
 0x272   : > { %v1314_v42 = vpop.permute.xlu1 %1313  ;;  %1380 = vrot.lane.b32.xlu0 %v3863_v12, %s3209_s15  ;;  %1591 = vst [vmem:[%s4329_s4 + $0x10] sm:$0xff] (%p3341_p10), %v1590_v57  }
 0x273   : > { %2787 = vst.msk [vmem:[%s3460_s30 + $0xb4] sm:$0xf] %vm785_vm0, %v1314_v42  ;;  %v1594_v42 = vld [vmem:[%s3494_s8 + $0x18] sm:$0xff] (%p3341_p10)  }
 0x274   : > { %1382 = vrot.lane.b32.xlu1 %v3877_v56, %s3209_s15  ;;  %v1430_v23 = vpop.permute.xlu0 %1429  ;;  %1595 = vst [vmem:[%s4329_s4 + $0x18] sm:$0xff] (%p3341_p10), %v1594_v42  }
 0x275   : > { %2812 = vst.msk [vmem:[%s3485_s11 + $0xd8] sm:$0xf] %vm785_vm0, %v1430_v23  ;;  %v1598_v23 = vld [vmem:[%s3494_s8 + $0x20] sm:$0xff] (%p3341_p10)  }
 0x276   : > { %v1432_v48 = vpop.permute.xlu1 %1431  ;;  %1510 = vrot.lane.b32.xlu0 %v3616_v21, %s3209_s15  ;;  %1599 = vst [vmem:[%s4329_s4 + $0x20] sm:$0xff] (%p3341_p10), %v1598_v23  }
 0x277   : > { %2813 = vst.msk [vmem:[%s3485_s11 + $0xdc] sm:$0xf] %vm785_vm0, %v1432_v48  ;;  %v1602_v48 = vld [vmem:[%s3494_s8 + $0x28] sm:$0xff] (%p3341_p10)  }
 0x278   : > { %1512 = vrot.lane.b32.xlu1 %v3631_v32, %s3209_s15  ;;  %v1507_v12 = vpop.permute.xlu0 %1506  ;;  %1603 = vst [vmem:[%s4329_s4 + $0x28] sm:$0xff] (%p3341_p10), %v1602_v48  }
 0x279   : > { %2834 = vst.msk [vmem:[%s3460_s30 + $0xf0] sm:$0xf] %vm785_vm0, %v1507_v12  ;;  %v1606_v12 = vld [vmem:[%s3494_s8 + $0x30] sm:$0xff] (%p3341_p10)  }
 0x27a   : > { %v1509_v56 = vpop.permute.xlu1 %1508  ;;  %1607 = vst [vmem:[%s4329_s4 + $0x30] sm:$0xff] (%p3341_p10), %v1606_v12  }
 0x27b   : > { %2835 = vst.msk [vmem:[%s3460_s30 + $0xf4] sm:$0xf] %vm785_vm0, %v1509_v56  ;;  %v1610_v56 = vld [vmem:[%s3494_s8 + $0x38] sm:$0xff] (%p3341_p10)  }
 0x27c   : > { %v975_v24 = vpop.permute.xlu0 %974  ;;  %1611 = vst [vmem:[%s4329_s4 + $0x38] sm:$0xff] (%p3341_p10), %v1610_v56  }
 0x27d   : > { %2700 = vst.msk [vmem:[%s3494_s8 + $0x58] sm:$0xf] %vm785_vm0, %v975_v24  ;;  %v1614_v24 = vld [vmem:[%s3494_s8 + $0x40] sm:$0xff] (%p3341_p10)  }
 0x27e   : > { %v977_v21 = vpop.permute.xlu1 %976  ;;  %1615 = vst [vmem:[%s4329_s4 + $0x80] sm:$0xff] (%p3341_p10), %v1614_v24  }
 0x27f   : > { %2701 = vst.msk [vmem:[%s3494_s8 + $0x5c] sm:$0xf] %vm785_vm0, %v977_v21  ;;  %v1618_v21 = vld [vmem:[%s3494_s8 + $0x48] sm:$0xff] (%p3341_p10)  }
 0x280   : > { %v1170_v25 = vpop.permute.xlu0 %1169  ;;  %1619 = vst [vmem:[%s4329_s4 + $0x88] sm:$0xff] (%p3341_p10), %v1618_v21  }
 0x281   : > { %2748 = vst.msk [vmem:[%s3494_s8 + $0x98] sm:$0xf] %vm785_vm0, %v1170_v25  ;;  %v1622_v25 = vld [vmem:[%s3494_s8 + $0x50] sm:$0xff] (%p3341_p10)  }
 0x282   : > { %v1172_v32 = vpop.permute.xlu1 %1171  ;;  %1623 = vst [vmem:[%s4329_s4 + $0x90] sm:$0xff] (%p3341_p10), %v1622_v25  }
 0x283   : > { %2749 = vst.msk [vmem:[%s3494_s8 + $0x9c] sm:$0xf] %vm785_vm0, %v1172_v32 }
 0x284   : > { %v1365_v29 = vpop.permute.xlu0 %1364 }
 0x285   : > { %2796 = vst.msk [vmem:[%s3494_s8 + $0xd8] sm:$0xf] %vm785_vm0, %v1365_v29 }
 0x286   : > { %v1367_v33 = vpop.permute.xlu1 %1366  ;;  %v1626_v32 = vld [vmem:[%s3494_s8 + $0x58] sm:$0xff] (%p3341_p10)  }
 0x287   : > { %2797 = vst.msk [vmem:[%s3494_s8 + $0xdc] sm:$0xf] %vm785_vm0, %v1367_v33  ;;  %1627 = vst [vmem:[%s4329_s4 + $0x98] sm:$0xff] (%p3341_p10), %v1626_v32  }
 0x288   : > { %v1044_v41 = vpop.permute.xlu0 %1043 }
 0x289   : > { %2718 = vst.msk [vmem:[%s3485_s11 + $0x60] sm:$0xf] %vm785_vm0, %v1044_v41 }
 0x28a   : > { %v1046_v51 = vpop.permute.xlu1 %1045 }
 0x28b   : > { %2719 = vst.msk [vmem:[%s3485_s11 + $0x64] sm:$0xf] %vm785_vm0, %v1046_v51 }
 0x28c   : > { %v1239_v27 = vpop.permute.xlu0 %1238 }
 0x28d   : > { %2766 = vst.msk [vmem:[%s3485_s11 + $0xa0] sm:$0xf] %vm785_vm0, %v1239_v27  ;;  %v1646_v27 = vld [vmem:[%s3494_s8 + $0x80] sm:$0xff] (%p3341_p10)  }
 0x28e   : > { %v1241_v47 = vpop.permute.xlu1 %1240  ;;  %1647 = vst [vmem:[%s4329_s4 + $0x100] sm:$0xff] (%p3341_p10), %v1646_v27  }
 0x28f   : > { %2767 = vst.msk [vmem:[%s3485_s11 + $0xa4] sm:$0xf] %vm785_vm0, %v1241_v47  ;;  %v1650_v47 = vld [vmem:[%s3494_s8 + $0x88] sm:$0xff] (%p3341_p10)  }
 0x290   : > { %v1434_v54 = vpop.permute.xlu0 %1433  ;;  %1651 = vst [vmem:[%s4329_s4 + $0x108] sm:$0xff] (%p3341_p10), %v1650_v47  }
 0x291   : > { %2814 = vst.msk [vmem:[%s3485_s11 + $0xe0] sm:$0xf] %vm785_vm0, %v1434_v54  ;;  %v1654_v54 = vld [vmem:[%s3494_s8 + $0x90] sm:$0xff] (%p3341_p10)  }
 0x292   : > { %v1436_v62 = vpop.permute.xlu1 %1435  ;;  %1655 = vst [vmem:[%s4329_s4 + $0x110] sm:$0xff] (%p3341_p10), %v1654_v54  }
 0x293   : > { %2815 = vst.msk [vmem:[%s3485_s11 + $0xe4] sm:$0xf] %vm785_vm0, %v1436_v62  ;;  %v1658_v62 = vld [vmem:[%s3494_s8 + $0x98] sm:$0xff] (%p3341_p10)  }
 0x294   : > { %v979_v37 = vpop.permute.xlu0 %978  ;;  %1659 = vst [vmem:[%s4329_s4 + $0x118] sm:$0xff] (%p3341_p10), %v1658_v62  }
 0x295   : > { %2702 = vst.msk [vmem:[%s3494_s8 + $0x60] sm:$0xf] %vm785_vm0, %v979_v37 }
 0x296   : > { %v981_v38 = vpop.permute.xlu1 %980 }
 0x297   : > { %2703 = vst.msk [vmem:[%s3494_s8 + $0x64] sm:$0xf] %vm785_vm0, %v981_v38 }
 0x298   : > { %v1174_v44 = vpop.permute.xlu0 %1173 }
 0x299   : > { %2750 = vst.msk [vmem:[%s3494_s8 + $0xa0] sm:$0xf] %vm785_vm0, %v1174_v44 }
 0x29a   : > { %v1176_v43 = vpop.permute.xlu1 %1175 }
 0x29b   : > { %2751 = vst.msk [vmem:[%s3494_s8 + $0xa4] sm:$0xf] %vm785_vm0, %v1176_v43 }
 0x29c   : > { %v1369_v49 = vpop.permute.xlu0 %1368 }
 0x29d   : > { %2798 = vst.msk [vmem:[%s3494_s8 + $0xe0] sm:$0xf] %vm785_vm0, %v1369_v49  ;;  %v1678_v49 = vld [vmem:[%s3494_s8 + $0xc0] sm:$0xff] (%p3341_p10)  }
 0x29e   : > { %v1371_v46 = vpop.permute.xlu1 %1370  ;;  %v1630_v29 = vld [vmem:[%s3494_s8 + $0x60] sm:$0xff] (%p3341_p10)   ;;  %1679 = vst [vmem:[%s4329_s4 + $0x180] sm:$0xff] (%p3341_p10), %v1678_v49  }
 0x29f   : > { %2799 = vst.msk [vmem:[%s3494_s8 + $0xe4] sm:$0xf] %vm785_vm0, %v1371_v46  ;;  %1631 = vst [vmem:[%s4329_s4 + $0xa0] sm:$0xff] (%p3341_p10), %v1630_v29   ;;  %v1682_v46 = vld [vmem:[%s3494_s8 + $0xc8] sm:$0xff] (%p3341_p10)  }
 0x2a0   : > { %v1048_v3 = vpop.permute.xlu0 %1047  ;;  %1683 = vst [vmem:[%s4329_s4 + $0x188] sm:$0xff] (%p3341_p10), %v1682_v46  }
 0x2a1   : > { %2720 = vst.msk [vmem:[%s3485_s11 + $0x68] sm:$0xf] %vm785_vm0, %v1048_v3  ;;  %v1686_v3 = vld [vmem:[%s3494_s8 + $0xd0] sm:$0xff] (%p3341_p10)  }
 0x2a2   : > { %v1050_v10 = vpop.permute.xlu1 %1049  ;;  %v1662_v37 = vld [vmem:[%s3494_s8 + $0xa0] sm:$0xff] (%p3341_p10)   ;;  %1687 = vst [vmem:[%s4329_s4 + $0x190] sm:$0xff] (%p3341_p10), %v1686_v3  }
 0x2a3   : > { %2721 = vst.msk [vmem:[%s3485_s11 + $0x6c] sm:$0xf] %vm785_vm0, %v1050_v10  ;;  %1663 = vst [vmem:[%s4329_s4 + $0x120] sm:$0xff] (%p3341_p10), %v1662_v37   ;;  %v1690_v10 = vld [vmem:[%s3494_s8 + $0xd8] sm:$0xff] (%p3341_p10)  }
 0x2a4   : > { %v1243_v53 = vpop.permute.xlu0 %1242  ;;  %1691 = vst [vmem:[%s4329_s4 + $0x198] sm:$0xff] (%p3341_p10), %v1690_v10  }
 0x2a5   : > { %2768 = vst.msk [vmem:[%s3485_s11 + $0xa8] sm:$0xf] %vm785_vm0, %v1243_v53 }
 0x2a6   : > { %v1245_v14 = vpop.permute.xlu1 %1244  ;;  %v1694_v53 = vld [vmem:[%s3494_s8 + $0xe0] sm:$0xff] (%p3341_p10)  }
 0x2a7   : > { %2769 = vst.msk [vmem:[%s3485_s11 + $0xac] sm:$0xf] %vm785_vm0, %v1245_v14  ;;  %1695 = vst [vmem:[%s4329_s4 + $0x1a0] sm:$0xff] (%p3341_p10), %v1694_v53  }
 0x2a8   : > { %v1438_v61 = vpop.permute.xlu0 %1437 }
 0x2a9   : > { %2816 = vst.msk [vmem:[%s3485_s11 + $0xe8] sm:$0xf] %vm785_vm0, %v1438_v61 }
 0x2aa   : > { %v1440_v16 = vpop.permute.xlu1 %1439 }
 0x2ab   : > { %2817 = vst.msk [vmem:[%s3485_s11 + $0xec] sm:$0xf] %vm785_vm0, %v1440_v16 }
 0x2ac   : > { %v983_v19 = vpop.permute.xlu0 %982 }
 0x2ad   : > { %2704 = vst.msk [vmem:[%s3494_s8 + $0x68] sm:$0xf] %vm785_vm0, %v983_v19 }
 0x2ae   : > { %v985_v22 = vpop.permute.xlu1 %984 }
 0x2af   : > { %2705 = vst.msk [vmem:[%s3494_s8 + $0x6c] sm:$0xf] %vm785_vm0, %v985_v22 }
 0x2b0   : > { %v1178_v58 = vpop.permute.xlu0 %1177 }
 0x2b1   : > { %2752 = vst.msk [vmem:[%s3494_s8 + $0xa8] sm:$0xf] %vm785_vm0, %v1178_v58 }
 0x2b2   : > { %v1180_v50 = vpop.permute.xlu1 %1179 }
 0x2b3   : > { %2753 = vst.msk [vmem:[%s3494_s8 + $0xac] sm:$0xf] %vm785_vm0, %v1180_v50 }
 0x2b4   : > { %v1373_v63 = vpop.permute.xlu0 %1372 }
 0x2b5   : > { %2800 = vst.msk [vmem:[%s3494_s8 + $0xe8] sm:$0xf] %vm785_vm0, %v1373_v63 }
 0x2b6   : > { %v1375_v52 = vpop.permute.xlu1 %1374  ;;  %v1634_v33 = vld [vmem:[%s3494_s8 + $0x68] sm:$0xff] (%p3341_p10)  }
 0x2b7   : > { %2801 = vst.msk [vmem:[%s3494_s8 + $0xec] sm:$0xf] %vm785_vm0, %v1375_v52  ;;  %1635 = vst [vmem:[%s4329_s4 + $0xa8] sm:$0xff] (%p3341_p10), %v1634_v33  }
 0x2b8   : > { %v1052_v6 = vpop.permute.xlu0 %1051 }
 0x2b9   : > { %2722 = vst.msk [vmem:[%s3485_s11 + $0x70] sm:$0xf] %vm785_vm0, %v1052_v6 }
 0x2ba   : > { %v1054_v59 = vpop.permute.xlu1 %1053  ;;  %v1666_v38 = vld [vmem:[%s3494_s8 + $0xa8] sm:$0xff] (%p3341_p10)  }
 0x2bb   : > { %2723 = vst.msk [vmem:[%s3485_s11 + $0x74] sm:$0xf] %vm785_vm0, %v1054_v59  ;;  %1667 = vst [vmem:[%s4329_s4 + $0x128] sm:$0xff] (%p3341_p10), %v1666_v38  }
 0x2bc   : > { %v1247_v11 = vpop.permute.xlu0 %1246 }
 0x2bd   : > { %2770 = vst.msk [vmem:[%s3485_s11 + $0xb0] sm:$0xf] %vm785_vm0, %v1247_v11 }
 0x2be   : > { %v1249_v26 = vpop.permute.xlu1 %1248  ;;  %v1698_v14 = vld [vmem:[%s3494_s8 + $0xe8] sm:$0xff] (%p3341_p10)  }
 0x2bf   : > { %2771 = vst.msk [vmem:[%s3485_s11 + $0xb4] sm:$0xf] %vm785_vm0, %v1249_v26  ;;  %1699 = vst [vmem:[%s4329_s4 + $0x1a8] sm:$0xff] (%p3341_p10), %v1698_v14  }
 0x2c0   : > { %v1442_v20 = vpop.permute.xlu0 %1441 }
 0x2c1   : > { %2818 = vst.msk [vmem:[%s3485_s11 + $0xf0] sm:$0xf] %vm785_vm0, %v1442_v20 }
 0x2c2   : > { %v1444_v35 = vpop.permute.xlu1 %1443 }
 0x2c3   : > { %2819 = vst.msk [vmem:[%s3485_s11 + $0xf4] sm:$0xf] %vm785_vm0, %v1444_v35 }
 0x2c4   : > { %v987_v60 = vpop.permute.xlu0 %986 }
 0x2c5   : > { %2706 = vst.msk [vmem:[%s3494_s8 + $0x70] sm:$0xf] %vm785_vm0, %v987_v60 }
 0x2c6   : > { %v989_v0 = vpop.permute.xlu1 %988 }
 0x2c7   : > { %2707 = vst.msk [vmem:[%s3494_s8 + $0x74] sm:$0xf] %vm785_vm0, %v989_v0 }
 0x2c8   : > { %v1182_v15 = vpop.permute.xlu0 %1181 }
 0x2c9   : > { %2754 = vst.msk [vmem:[%s3494_s8 + $0xb0] sm:$0xf] %vm785_vm0, %v1182_v15 }
 0x2ca   : > { %v1184_v1 = vpop.permute.xlu1 %1183 }
 0x2cb   : > { %2755 = vst.msk [vmem:[%s3494_s8 + $0xb4] sm:$0xf] %vm785_vm0, %v1184_v1 }
 0x2cc   : > { %v1377_v45 = vpop.permute.xlu0 %1376 }
 0x2cd   : > { %2802 = vst.msk [vmem:[%s3494_s8 + $0xf0] sm:$0xf] %vm785_vm0, %v1377_v45 }
 0x2ce   : > { %v1379_v2 = vpop.permute.xlu1 %1378  ;;  %v1638_v41 = vld [vmem:[%s3494_s8 + $0x70] sm:$0xff] (%p3341_p10)  }
 0x2cf   : > { %2803 = vst.msk [vmem:[%s3494_s8 + $0xf4] sm:$0xf] %vm785_vm0, %v1379_v2  ;;  %1639 = vst [vmem:[%s4329_s4 + $0xb0] sm:$0xff] (%p3341_p10), %v1638_v41  }
 0x2d0   : > { %v1056_v4 = vpop.permute.xlu0 %1055 }
 0x2d1   : > { %2724 = vst.msk [vmem:[%s3485_s11 + $0x78] sm:$0xf] %vm785_vm0, %v1056_v4 }
 0x2d2   : > { %v1058_v5 = vpop.permute.xlu1 %1057  ;;  %v1670_v44 = vld [vmem:[%s3494_s8 + $0xb0] sm:$0xff] (%p3341_p10)  }
 0x2d3   : > { %2725 = vst.msk [vmem:[%s3485_s11 + $0x7c] sm:$0xf] %vm785_vm0, %v1058_v5  ;;  %1671 = vst [vmem:[%s4329_s4 + $0x130] sm:$0xff] (%p3341_p10), %v1670_v44  }
 0x2d4   : > { %v1251_v28 = vpop.permute.xlu0 %1250 }
 0x2d5   : > { %2772 = vst.msk [vmem:[%s3485_s11 + $0xb8] sm:$0xf] %vm785_vm0, %v1251_v28 }
 0x2d6   : > { %v1253_v7 = vpop.permute.xlu1 %1252  ;;  %v1702_v61 = vld [vmem:[%s3494_s8 + $0xf0] sm:$0xff] (%p3341_p10)  }
 0x2d7   : > { %2773 = vst.msk [vmem:[%s3485_s11 + $0xbc] sm:$0xf] %vm785_vm0, %v1253_v7  ;;  %1703 = vst [vmem:[%s4329_s4 + $0x1b0] sm:$0xff] (%p3341_p10), %v1702_v61  }
 0x2d8   : > { %v1446_v34 = vpop.permute.xlu0 %1445 }
 0x2d9   : > { %2820 = vst.msk [vmem:[%s3485_s11 + $0xf8] sm:$0xf] %vm785_vm0, %v1446_v34 }
 0x2da   : > { %v1448_v9 = vpop.permute.xlu1 %1447 }
 0x2db   : > { %2821 = vst.msk [vmem:[%s3485_s11 + $0xfc] sm:$0xf] %vm785_vm0, %v1448_v9 }
 0x2dc   : > { %v991_v8 = vpop.permute.xlu0 %990 }
 0x2dd   : > { %2708 = vst.msk [vmem:[%s3494_s8 + $0x78] sm:$0xf] %vm785_vm0, %v991_v8 }
 0x2de   : > { %v993_v13 = vpop.permute.xlu1 %992 }
 0x2df   : > { %2709 = vst.msk [vmem:[%s3494_s8 + $0x7c] sm:$0xf] %vm785_vm0, %v993_v13 }
 0x2e0   : > { %v1186_v30 = vpop.permute.xlu0 %1185 }
 0x2e1   : > { %2756 = vst.msk [vmem:[%s3494_s8 + $0xb8] sm:$0xf] %vm785_vm0, %v1186_v30 }
 0x2e2   : > { %v1188_v17 = vpop.permute.xlu1 %1187 }
 0x2e3   : > { %2757 = vst.msk [vmem:[%s3494_s8 + $0xbc] sm:$0xf] %vm785_vm0, %v1188_v17 }
 0x2e4   : > { %v1381_v36 = vpop.permute.xlu0 %1380 }
 0x2e5   : > { %2804 = vst.msk [vmem:[%s3494_s8 + $0xf8] sm:$0xf] %vm785_vm0, %v1381_v36  ;;  %1561 = sbr.rel (!%p3341_p10) target bundleno = 752 (0x2f0), region = 44 }
 0x2e6   : > { %v1383_v18 = vpop.permute.xlu1 %1382  ;;  %v1642_v51 = vld [vmem:[%s3494_s8 + $0x78] sm:$0xff] (%p3341_p10)  }
 0x2e7   : > { %2805 = vst.msk [vmem:[%s3494_s8 + $0xfc] sm:$0xf] %vm785_vm0, %v1383_v18  ;;  %1643 = vst [vmem:[%s4329_s4 + $0xb8] sm:$0xff] (%p3341_p10), %v1642_v51  }
 0x2e8   : > { %v1511_v31 = vpop.permute.xlu0 %1510 }
 0x2e9   : > { %2836 = vst.msk [vmem:[%s3460_s30 + $0xf8] sm:$0xf] %vm785_vm0, %v1511_v31 }
 0x2ea   : > { %v1513_v39 = vpop.permute.xlu1 %1512  ;;  %v1674_v43 = vld [vmem:[%s3494_s8 + $0xb8] sm:$0xff] (%p3341_p10)  }
 0x2eb   : > { %2837 = vst.msk [vmem:[%s3460_s30 + $0xfc] sm:$0xf] %vm785_vm0, %v1513_v39  ;;  %1675 = vst [vmem:[%s4329_s4 + $0x138] sm:$0xff] (%p3341_p10), %v1674_v43  }
 0x2ee   : > { %v1706_v16 = vld [vmem:[%s3494_s8 + $0xf8] sm:$0xff]  }
 0x2ef   : > { %1707 = vst [vmem:[%s4329_s4 + $0x1b8] sm:$0xff] %v1706_v16  }
 0x2f0 PF: > { %1860 = sbr.rel (!%p3341_p10) target bundleno = 776 (0x308), region = 85  ;;  %s2844_s5 = sshll.u32 (%p3341_p10), %s3182_s21, 4  ;;  %v1881_v19 = vld [vmem:[%s3485_s11] sm:$0xff] (%p3341_p10)   ;;  %v1885_v22 = vld [vmem:[%s3485_s11 + $0x8] sm:$0xff] (%p3341_p10)   ;;  %v1889_v58 = vld [vmem:[%s3485_s11 + $0x10] sm:$0xff] (%p3341_p10)  }
 0x2f1   : > { %s2845_s9 = sshll.u32 (%p3341_p10), %s3186_s22, 7  ;;  %v1893_v50 = vld [vmem:[%s3485_s11 + $0x18] sm:$0xff] (%p3341_p10)   ;;  %v1897_v63 = vld [vmem:[%s3485_s11 + $0x20] sm:$0xff] (%p3341_p10)   ;;  %v1901_v52 = vld [vmem:[%s3485_s11 + $0x28] sm:$0xff] (%p3341_p10)   ;;  %s4586_s12 = sld [smem:[#allocation14_spill]] (%p3341_p10) }
 0x2f2   : > { %s1863_s3 = sadd.s32 (%p3341_p10), %s2845_s9, %s2844_s5  ;;  %v1905_v6 = vld [vmem:[%s3485_s11 + $0x30] sm:$0xff] (%p3341_p10)   ;;  %v1909_v59 = vld [vmem:[%s3485_s11 + $0x38] sm:$0xff] (%p3341_p10)   ;;  %v1913_v11 = vld [vmem:[%s3485_s11 + $0x40] sm:$0xff] (%p3341_p10)  }
 0x2f3   : > { %s2846_s27 = sshll.u32 (%p3341_p10), %s1863_s3, 2  ;;  %v1917_v26 = vld [vmem:[%s3485_s11 + $0x48] sm:$0xff] (%p3341_p10)   ;;  %v1921_v20 = vld [vmem:[%s3485_s11 + $0x50] sm:$0xff] (%p3341_p10)   ;;  %v1925_v35 = vld [vmem:[%s3485_s11 + $0x58] sm:$0xff] (%p3341_p10)  }
 0x2f4   : > { %v1929_v60 = vld [vmem:[%s3485_s11 + $0x60] sm:$0xff] (%p3341_p10)   ;;  %v1933_v0 = vld [vmem:[%s3485_s11 + $0x68] sm:$0xff] (%p3341_p10)   ;;  %v1937_v15 = vld [vmem:[%s3485_s11 + $0x70] sm:$0xff] (%p3341_p10)  }
 0x2f5   : > { %v1941_v1 = vld [vmem:[%s3485_s11 + $0x78] sm:$0xff] (%p3341_p10)   ;;  %v1945_v45 = vld [vmem:[%s3485_s11 + $0x80] sm:$0xff] (%p3341_p10)   ;;  %v1949_v2 = vld [vmem:[%s3485_s11 + $0x88] sm:$0xff] (%p3341_p10)  }
 0x2f6   : > { %v1953_v4 = vld [vmem:[%s3485_s11 + $0x90] sm:$0xff] (%p3341_p10)   ;;  %v1957_v5 = vld [vmem:[%s3485_s11 + $0x98] sm:$0xff] (%p3341_p10)   ;;  %v1961_v28 = vld [vmem:[%s3485_s11 + $0xa0] sm:$0xff] (%p3341_p10)  }
 0x2f7   : > { %s4402_s8 = scalar_lea.vmem %s4586_s12, %s2846_s27  ;;  %v1965_v7 = vld [vmem:[%s3485_s11 + $0xa8] sm:$0xff]   ;;  %v1969_v34 = vld [vmem:[%s3485_s11 + $0xb0] sm:$0xff]   ;;  %v1973_v9 = vld [vmem:[%s3485_s11 + $0xb8] sm:$0xff]  }
 0x2f8   : > { %1882 = vst [vmem:[%s4402_s8] sm:$0xff] %v1881_v19   ;;  %1886 = vst [vmem:[%s4402_s8 + $0x8] sm:$0xff] %v1885_v22   ;;  %v1977_v8 = vld [vmem:[%s3485_s11 + $0xc0] sm:$0xff]   ;;  %v1981_v13 = vld [vmem:[%s3485_s11 + $0xc8] sm:$0xff]  }
 0x2f9   : > { %1890 = vst [vmem:[%s4402_s8 + $0x10] sm:$0xff] %v1889_v58   ;;  %1894 = vst [vmem:[%s4402_s8 + $0x18] sm:$0xff] %v1893_v50   ;;  %v1985_v30 = vld [vmem:[%s3485_s11 + $0xd0] sm:$0xff]   ;;  %v1989_v17 = vld [vmem:[%s3485_s11 + $0xd8] sm:$0xff]  }
 0x2fa   : > { %1898 = vst [vmem:[%s4402_s8 + $0x20] sm:$0xff] %v1897_v63   ;;  %1902 = vst [vmem:[%s4402_s8 + $0x28] sm:$0xff] %v1901_v52   ;;  %v1993_v36 = vld [vmem:[%s3485_s11 + $0xe0] sm:$0xff]   ;;  %v1997_v18 = vld [vmem:[%s3485_s11 + $0xe8] sm:$0xff]  }
 0x2fb   : > { %1906 = vst [vmem:[%s4402_s8 + $0x30] sm:$0xff] %v1905_v6   ;;  %1910 = vst [vmem:[%s4402_s8 + $0x38] sm:$0xff] %v1909_v59   ;;  %v2001_v31 = vld [vmem:[%s3485_s11 + $0xf0] sm:$0xff]   ;;  %v2005_v39 = vld [vmem:[%s3485_s11 + $0xf8] sm:$0xff]  }
 0x2fc   : > { %1914 = vst [vmem:[%s4402_s8 + $0x80] sm:$0xff] %v1913_v11   ;;  %1918 = vst [vmem:[%s4402_s8 + $0x88] sm:$0xff] %v1917_v26  }
 0x2fd   : > { %1922 = vst [vmem:[%s4402_s8 + $0x90] sm:$0xff] %v1921_v20   ;;  %1926 = vst [vmem:[%s4402_s8 + $0x98] sm:$0xff] %v1925_v35  }
 0x2fe   : > { %1930 = vst [vmem:[%s4402_s8 + $0xa0] sm:$0xff] %v1929_v60   ;;  %1934 = vst [vmem:[%s4402_s8 + $0xa8] sm:$0xff] %v1933_v0  }
 0x2ff   : > { %1938 = vst [vmem:[%s4402_s8 + $0xb0] sm:$0xff] %v1937_v15   ;;  %1942 = vst [vmem:[%s4402_s8 + $0xb8] sm:$0xff] %v1941_v1  }
 0x300   : > { %1946 = vst [vmem:[%s4402_s8 + $0x100] sm:$0xff] %v1945_v45   ;;  %1950 = vst [vmem:[%s4402_s8 + $0x108] sm:$0xff] %v1949_v2  }
 0x301   : > { %1954 = vst [vmem:[%s4402_s8 + $0x110] sm:$0xff] %v1953_v4   ;;  %1958 = vst [vmem:[%s4402_s8 + $0x118] sm:$0xff] %v1957_v5  }
 0x302   : > { %1962 = vst [vmem:[%s4402_s8 + $0x120] sm:$0xff] %v1961_v28   ;;  %1966 = vst [vmem:[%s4402_s8 + $0x128] sm:$0xff] %v1965_v7  }
 0x303   : > { %1970 = vst [vmem:[%s4402_s8 + $0x130] sm:$0xff] %v1969_v34   ;;  %1974 = vst [vmem:[%s4402_s8 + $0x138] sm:$0xff] %v1973_v9  }
 0x304   : > { %1978 = vst [vmem:[%s4402_s8 + $0x180] sm:$0xff] %v1977_v8   ;;  %1982 = vst [vmem:[%s4402_s8 + $0x188] sm:$0xff] %v1981_v13  }
 0x305   : > { %1986 = vst [vmem:[%s4402_s8 + $0x190] sm:$0xff] %v1985_v30   ;;  %1990 = vst [vmem:[%s4402_s8 + $0x198] sm:$0xff] %v1989_v17  }
 0x306   : > { %1994 = vst [vmem:[%s4402_s8 + $0x1a0] sm:$0xff] %v1993_v36   ;;  %1998 = vst [vmem:[%s4402_s8 + $0x1a8] sm:$0xff] %v1997_v18  }
 0x307   : > { %2002 = vst [vmem:[%s4402_s8 + $0x1b0] sm:$0xff] %v2001_v31   ;;  %2006 = vst [vmem:[%s4402_s8 + $0x1b8] sm:$0xff] %v2005_v39  }
 0x308 PF: > { %2159 = sbr.rel (!%p3341_p10) target bundleno = 800 (0x320), region = 126  ;;  %s2847_s11 = sshll.u32 (%p3341_p10), %s3182_s21, 4  ;;  %v2180_v55 = vld [vmem:[%s3460_s30] sm:$0xff] (%p3341_p10)   ;;  %v2184_v40 = vld [vmem:[%s3460_s30 + $0x8] sm:$0xff] (%p3341_p10)   ;;  %v2188_v57 = vld [vmem:[%s3460_s30 + $0x10] sm:$0xff] (%p3341_p10)  }
 0x309   : > { %s2848_s15 = sshll.u32 (%p3341_p10), %s3186_s22, 7  ;;  %v2192_v42 = vld [vmem:[%s3460_s30 + $0x18] sm:$0xff] (%p3341_p10)   ;;  %v2196_v23 = vld [vmem:[%s3460_s30 + $0x20] sm:$0xff] (%p3341_p10)   ;;  %v2200_v48 = vld [vmem:[%s3460_s30 + $0x28] sm:$0xff] (%p3341_p10)   ;;  %s4587_s18 = sld [smem:[#allocation15_spill]] (%p3341_p10) }
 0x30a   : > { %s2162_s7 = sadd.s32 (%p3341_p10), %s2848_s15, %s2847_s11  ;;  %v2204_v12 = vld [vmem:[%s3460_s30 + $0x30] sm:$0xff] (%p3341_p10)   ;;  %v2208_v56 = vld [vmem:[%s3460_s30 + $0x38] sm:$0xff] (%p3341_p10)   ;;  %v2212_v24 = vld [vmem:[%s3460_s30 + $0x40] sm:$0xff] (%p3341_p10)  }
 0x30b   : > { %s2849_s13 = sshll.u32 (%p3341_p10), %s2162_s7, 2  ;;  %v2216_v21 = vld [vmem:[%s3460_s30 + $0x48] sm:$0xff] (%p3341_p10)   ;;  %v2220_v25 = vld [vmem:[%s3460_s30 + $0x50] sm:$0xff] (%p3341_p10)   ;;  %v2224_v32 = vld [vmem:[%s3460_s30 + $0x58] sm:$0xff] (%p3341_p10)  }
 0x30c   : > { %v2228_v29 = vld [vmem:[%s3460_s30 + $0x60] sm:$0xff] (%p3341_p10)   ;;  %v2232_v33 = vld [vmem:[%s3460_s30 + $0x68] sm:$0xff] (%p3341_p10)   ;;  %v2236_v41 = vld [vmem:[%s3460_s30 + $0x70] sm:$0xff] (%p3341_p10)  }
 0x30d   : > { %v2240_v51 = vld [vmem:[%s3460_s30 + $0x78] sm:$0xff] (%p3341_p10)   ;;  %v2244_v27 = vld [vmem:[%s3460_s30 + $0x80] sm:$0xff] (%p3341_p10)   ;;  %v2248_v47 = vld [vmem:[%s3460_s30 + $0x88] sm:$0xff] (%p3341_p10)  }
 0x30e   : > { %v2252_v54 = vld [vmem:[%s3460_s30 + $0x90] sm:$0xff] (%p3341_p10)   ;;  %v2256_v62 = vld [vmem:[%s3460_s30 + $0x98] sm:$0xff] (%p3341_p10)   ;;  %v2260_v37 = vld [vmem:[%s3460_s30 + $0xa0] sm:$0xff] (%p3341_p10)  }
 0x30f   : > { %s4475_s26 = scalar_lea.vmem %s4587_s18, %s2849_s13  ;;  %v2264_v38 = vld [vmem:[%s3460_s30 + $0xa8] sm:$0xff]   ;;  %v2268_v44 = vld [vmem:[%s3460_s30 + $0xb0] sm:$0xff]   ;;  %v2272_v43 = vld [vmem:[%s3460_s30 + $0xb8] sm:$0xff]  }
 0x310   : > { %2181 = vst [vmem:[%s4475_s26] sm:$0xff] %v2180_v55   ;;  %2185 = vst [vmem:[%s4475_s26 + $0x8] sm:$0xff] %v2184_v40   ;;  %v2276_v49 = vld [vmem:[%s3460_s30 + $0xc0] sm:$0xff]   ;;  %v2280_v46 = vld [vmem:[%s3460_s30 + $0xc8] sm:$0xff]  }
 0x311   : > { %2189 = vst [vmem:[%s4475_s26 + $0x10] sm:$0xff] %v2188_v57   ;;  %2193 = vst [vmem:[%s4475_s26 + $0x18] sm:$0xff] %v2192_v42   ;;  %v2284_v3 = vld [vmem:[%s3460_s30 + $0xd0] sm:$0xff]   ;;  %v2288_v10 = vld [vmem:[%s3460_s30 + $0xd8] sm:$0xff]  }
 0x312   : > { %2197 = vst [vmem:[%s4475_s26 + $0x20] sm:$0xff] %v2196_v23   ;;  %2201 = vst [vmem:[%s4475_s26 + $0x28] sm:$0xff] %v2200_v48   ;;  %v2292_v53 = vld [vmem:[%s3460_s30 + $0xe0] sm:$0xff]   ;;  %v2296_v14 = vld [vmem:[%s3460_s30 + $0xe8] sm:$0xff]  }
 0x313   : > { %2205 = vst [vmem:[%s4475_s26 + $0x30] sm:$0xff] %v2204_v12   ;;  %2209 = vst [vmem:[%s4475_s26 + $0x38] sm:$0xff] %v2208_v56   ;;  %v2300_v61 = vld [vmem:[%s3460_s30 + $0xf0] sm:$0xff]   ;;  %v2304_v16 = vld [vmem:[%s3460_s30 + $0xf8] sm:$0xff]  }
 0x314   : > { %2213 = vst [vmem:[%s4475_s26 + $0x80] sm:$0xff] %v2212_v24   ;;  %2217 = vst [vmem:[%s4475_s26 + $0x88] sm:$0xff] %v2216_v21  }
 0x315   : > { %2221 = vst [vmem:[%s4475_s26 + $0x90] sm:$0xff] %v2220_v25   ;;  %2225 = vst [vmem:[%s4475_s26 + $0x98] sm:$0xff] %v2224_v32  }
 0x316   : > { %2229 = vst [vmem:[%s4475_s26 + $0xa0] sm:$0xff] %v2228_v29   ;;  %2233 = vst [vmem:[%s4475_s26 + $0xa8] sm:$0xff] %v2232_v33  }
 0x317   : > { %2237 = vst [vmem:[%s4475_s26 + $0xb0] sm:$0xff] %v2236_v41   ;;  %2241 = vst [vmem:[%s4475_s26 + $0xb8] sm:$0xff] %v2240_v51  }
 0x318   : > { %2245 = vst [vmem:[%s4475_s26 + $0x100] sm:$0xff] %v2244_v27   ;;  %2249 = vst [vmem:[%s4475_s26 + $0x108] sm:$0xff] %v2248_v47  }
 0x319   : > { %2253 = vst [vmem:[%s4475_s26 + $0x110] sm:$0xff] %v2252_v54   ;;  %2257 = vst [vmem:[%s4475_s26 + $0x118] sm:$0xff] %v2256_v62  }
 0x31a   : > { %2261 = vst [vmem:[%s4475_s26 + $0x120] sm:$0xff] %v2260_v37   ;;  %2265 = vst [vmem:[%s4475_s26 + $0x128] sm:$0xff] %v2264_v38  }
 0x31b   : > { %2269 = vst [vmem:[%s4475_s26 + $0x130] sm:$0xff] %v2268_v44   ;;  %2273 = vst [vmem:[%s4475_s26 + $0x138] sm:$0xff] %v2272_v43  }
 0x31c   : > { %2277 = vst [vmem:[%s4475_s26 + $0x180] sm:$0xff] %v2276_v49   ;;  %2281 = vst [vmem:[%s4475_s26 + $0x188] sm:$0xff] %v2280_v46  }
 0x31d   : > { %2285 = vst [vmem:[%s4475_s26 + $0x190] sm:$0xff] %v2284_v3   ;;  %2289 = vst [vmem:[%s4475_s26 + $0x198] sm:$0xff] %v2288_v10  }
 0x31e   : > { %2293 = vst [vmem:[%s4475_s26 + $0x1a0] sm:$0xff] %v2292_v53   ;;  %2297 = vst [vmem:[%s4475_s26 + $0x1a8] sm:$0xff] %v2296_v14  }
 0x31f   : > { %2301 = vst [vmem:[%s4475_s26 + $0x1b0] sm:$0xff] %v2300_v61   ;;  %2305 = vst [vmem:[%s4475_s26 + $0x1b8] sm:$0xff] %v2304_v16  }
 0x320 PF: > { %s20_s25 = sadd.s32 1, %s3198_s25   ;;  %s4588_s6 = sld [smem:[#allocation11_spill]] }
 0x321   : > { %p17_p10 = scmp.ge.s32.totalorder %s20_s25, 6   ;;  %s4589_s18 = smov %s3174_s19 }
 0x322   : > { %s4590_s19 = smov %s3178_s20  ;;  %s4591_s20 = smov %s3354_s1 }
 0x323   : > { %s4592_s21 = smov %s3190_s23  ;;  %s4593_s22 = smov %s3194_s24 }
 0x324   : > { %s4595_s24 = smov %s4601_s10  ;;  %19 = sbr.rel (!%p17_p10) target bundleno = 11 (0xb), region = 232 }
 0x326   : > { %s4594_s23 = smov %s4588_s6 }
 0x32b   :  { %2482 = vsyncpa [#allocation3], 1 }
 0x32c   :  { %2484 = vsyncpa [#allocation3 + $0x1], 1 }
 0x32d   :  { %2485 = vsyncpa [#allocation5], 1 }

</bundles_post_ra>
